<compile_context>
chip_gen: v6e
topology: v6e:2x2x1
jax: 0.10.0
libtpu: 0.0.40
codegen_flags: <defaults>
</compile_context>

<pallas_src>
import functools

import jax
import jax.numpy as jnp
from jax import lax
from jax.experimental import pallas as pl
from jax.experimental.pallas import tpu as pltpu

# MXU operand dtype (accumulation is always f32).  Set to jnp.float32 for
# bit-parity testing against the f32 PyTorch reference.
MATMUL_DTYPE = jnp.bfloat16

C1, C2 = 32, 64   # channel widths after conv1 / conv2 (fixed by the module)


# ----------------------------------------------------------------------------
# Fused TinyBlock1 kernel (one grid step == one video's T frames).
# ----------------------------------------------------------------------------
def _make_tiny_block1_kernel(T, H, W, Cin):
    To = T // 2
    H2, W2 = H // 2, W // 2
    H3, W3 = H2 // 2, W2 // 2

    def conv3x3_s1(pad_ref, x_hwc, w_ref, b_ref):
        """3x3 stride-1 'same' conv as one im2col GEMM.

        x_hwc:   (h, w, cin) f32 value.
        pad_ref: (h+2, w+2, >=cin) f32 VMEM scratch whose border is already 0.
        w_ref:   (9*cin, cout) MATMUL_DTYPE.   b_ref: (1, cout) f32.
        Returns (h*w, cout) f32.
        """
        h, w, cin = x_hwc.shape
        pad_ref[1:h + 1, 1:w + 1, :cin] = x_hwc           # interior write only
        cols = []
        for kh in range(3):
            for kw in range(3):
                cols.append(
                    pad_ref[kh:kh + h, kw:kw + w, :cin]
                    .astype(MATMUL_DTYPE).reshape(h * w, cin))
        col = jnp.concatenate(cols, axis=-1)              # (h*w, 9*cin) bf16
        y = jnp.dot(col, w_ref[...], preferred_element_type=jnp.float32)
        return y + b_ref[...]

    def conv3x3_s2(pad_ref, x_hwc, w_ref, b_ref):
        """3x3 stride-2 pad-1 conv: im2col gathered at strided output positions."""
        h, w, cin = x_hwc.shape
        ho, wo = h // 2, w // 2
        pad_ref[1:h + 1, 1:w + 1, :] = x_hwc              # interior write only
        cols = []
        for kh in range(3):
            for kw in range(3):
                cols.append(
                    pad_ref[pl.ds(kh, ho, stride=2), pl.ds(kw, wo, stride=2), :]
                    .astype(MATMUL_DTYPE).reshape(ho * wo, cin))
        col = jnp.concatenate(cols, axis=-1)              # (ho*wo, 9*cin) bf16
        y = jnp.dot(col, w_ref[...], preferred_element_type=jnp.float32)
        return y + b_ref[...]

    def gate(y, wg_ref, bg_ref):
        """S3D-style self context gating: y * sigmoid(mean_HW(y) @ Wg + bg)."""
        m = jnp.mean(y, axis=0, keepdims=True)            # (1, C) f32
        g = jax.nn.sigmoid(
            jnp.dot(m, wg_ref[...], preferred_element_type=jnp.float32)
            + bg_ref[...])
        return y * g

    def kernel(x_ref,
               w1_ref, b1_ref,
               wcg1_ref, bcg1_ref, wg1_ref, bg1_ref,
               w2_ref, b2_ref,
               wcg2_ref, bcg2_ref, wg2_ref, bg2_ref,
               o_ref,
               pad_a_ref, pad_b_ref):
        # --- zero ONLY the 1-pixel borders, once per grid step (megacore-safe;
        #     every conv fully rewrites the interior region it reads) ---
        pad_a_ref[0:1, :, :] = jnp.zeros((1, W + 2, C1), jnp.float32)
        pad_a_ref[H + 1:H + 2, :, :] = jnp.zeros((1, W + 2, C1), jnp.float32)
        pad_a_ref[:, 0:1, :] = jnp.zeros((H + 2, 1, C1), jnp.float32)
        pad_a_ref[:, W + 1:W + 2, :] = jnp.zeros((H + 2, 1, C1), jnp.float32)
        pad_b_ref[0:1, :, :] = jnp.zeros((1, W2 + 2, C2), jnp.float32)
        pad_b_ref[H2 + 1:H2 + 2, :, :] = jnp.zeros((1, W2 + 2, C2), jnp.float32)
        pad_b_ref[:, 0:1, :] = jnp.zeros((H2 + 2, 1, C2), jnp.float32)
        pad_b_ref[:, W2 + 1:W2 + 2, :] = jnp.zeros((H2 + 2, 1, C2), jnp.float32)

        def finalize(j, avg):
            """Temporal-avg frame j -> context_gate2 -> output frame j."""
            y2 = conv3x3_s2(pad_b_ref, avg.reshape(H2, W2, C2),
                            wcg2_ref, bcg2_ref)           # (H3*W3, 64) f32
            o_ref[0, j, :, :] = gate(y2, wg2_ref, bg2_ref)

        def body(i, carry):
            f2_m2, f2_m1 = carry            # conv2 outputs of frames i-2, i-1
            # ---- stage A (output frame i) ----
            # spatial_conv1 (3x3 s1 p1, Cin -> 32) on frames 2i and 2i+1.
            a0 = conv3x3_s1(pad_a_ref, x_ref[0, 2 * i], w1_ref, b1_ref)
            a1 = conv3x3_s1(pad_a_ref, x_ref[0, 2 * i + 1], w1_ref, b1_ref)
            # temporal_pool: MultiMaxPool(k=2, s=2) over the frame pair.
            pooled = jnp.maximum(a0, a1).reshape(H, W, C1)
            # context_gate1: 3x3 s2 p1 conv (32->32) + channel gating.
            y1 = conv3x3_s2(pad_a_ref, pooled, wcg1_ref, bcg1_ref)
            g1 = gate(y1, wg1_ref, bg1_ref).reshape(H2, W2, C1)
            # spatial_conv2: 3x3 s1 p1, 32 -> 64.
            f2_i = conv3x3_s1(pad_b_ref, g1, w2_ref, b2_ref)   # (H2*W2, 64)

            # ---- stage B (finalize frame i-1: MultiAvg(k=3,s=1,p=1) + CG2) ----
            @pl.when(i >= 1)
            def _():
                finalize(i - 1, (f2_m2 + f2_m1 + f2_i) * (1.0 / 3.0))

            return (f2_m1, f2_i)

        zero_f2 = jnp.zeros((H2 * W2, C2), jnp.float32)
        f2_m2, f2_m1 = lax.fori_loop(0, To, body, (zero_f2, zero_f2))
        # Last output frame: right temporal neighbour is zero padding.
        finalize(To - 1, (f2_m2 + f2_m1) * (1.0 / 3.0))

    return kernel


# ----------------------------------------------------------------------------
# Parameters (deterministic synthetic init, PyTorch shapes -> im2col layout).
# ----------------------------------------------------------------------------
def _conv_params(key, cin, cout):
    kw, kb = jax.random.split(key)
    fan_in = cin * 9
    w = jax.random.normal(kw, (cout, cin, 3, 3), jnp.float32) / jnp.sqrt(float(fan_in))
    b = jax.random.normal(kb, (cout,), jnp.float32) * 0.01
    # OIHW -> (kh, kw, Cin, Cout) -> (9*Cin, Cout): matches im2col column order.
    w_mat = jnp.transpose(w, (2, 3, 1, 0)).reshape(9 * cin, cout).astype(MATMUL_DTYPE)
    return w_mat, b.reshape(1, cout)


def _gate_params(key, c):
    kw, kb = jax.random.split(key)
    wg = jax.random.normal(kw, (c, c), jnp.float32) / jnp.sqrt(float(c))
    bg = jax.random.normal(kb, (c,), jnp.float32) * 0.01
    return wg, bg.reshape(1, c)            # gating math stays f32


def init_params(key, in_channels=3):
    ks = jax.random.split(key, 6)
    p = {}
    p["w1"], p["b1"] = _conv_params(ks[0], in_channels, C1)        # spatial_conv1
    p["w_cg1"], p["b_cg1"] = _conv_params(ks[1], C1, C1)           # context_gate1 conv
    p["wg1"], p["bg1"] = _gate_params(ks[2], C1)                   # context_gate1 gate
    p["w2"], p["b2"] = _conv_params(ks[3], C1, C2)                 # spatial_conv2
    p["w_cg2"], p["b_cg2"] = _conv_params(ks[4], C2, C2)           # context_gate2 conv
    p["wg2"], p["bg2"] = _gate_params(ks[5], C2)                   # context_gate2 gate
    return p


# ----------------------------------------------------------------------------
# TinyBlock1 forward: NCHW in, NCHW out.  One fused pallas_call over grid=(B,).
# ----------------------------------------------------------------------------
@functools.partial(jax.jit, static_argnames=("num_frames",))
def tiny_block1_forward(x_nchw, vid_lens, params, num_frames=2):
    x = jnp.transpose(x_nchw, (0, 2, 3, 1)).astype(jnp.float32)    # (B*T, H, W, Cin)
    B = vid_lens.shape[0]
    T = num_frames
    N, H, W, Cin = x.shape
    assert N == B * T and T % 2 == 0 and H % 4 == 0 and W % 4 == 0
    To = T // 2
    H2, W2, H3, W3 = H // 2, W // 2, H // 4, W // 4
    x = x.reshape(B, T, H, W, Cin)

    kernel = _make_tiny_block1_kernel(T, H, W, Cin)

    def wspec(a):
        nd = a.ndim
        return pl.BlockSpec(a.shape, lambda b, _nd=nd: (0,) * _nd)

    out = pl.pallas_call(
        kernel,
        out_shape=jax.ShapeDtypeStruct((B, To, H3 * W3, C2), jnp.float32),
        grid=(B,),
        in_specs=[
            pl.BlockSpec((1, T, H, W, Cin), lambda b: (b, 0, 0, 0, 0)),
            wspec(params["w1"]), wspec(params["b1"]),
            wspec(params["w_cg1"]), wspec(params["b_cg1"]),
            wspec(params["wg1"]), wspec(params["bg1"]),
            wspec(params["w2"]), wspec(params["b2"]),
            wspec(params["w_cg2"]), wspec(params["b_cg2"]),
            wspec(params["wg2"]), wspec(params["bg2"]),
        ],
        out_specs=pl.BlockSpec((1, To, H3 * W3, C2), lambda b: (b, 0, 0, 0)),
        scratch_shapes=[
            # Shared pad scratches (border zeroed once per grid step):
            pltpu.VMEM((H + 2, W + 2, C1), jnp.float32),      # conv1 (:Cin) + CG1 conv
            pltpu.VMEM((H2 + 2, W2 + 2, C2), jnp.float32),    # conv2 (:32)  + CG2 conv
        ],
        compiler_params=pltpu.CompilerParams(
            dimension_semantics=("parallel",),        # v7x: split batch over 2 TCs
            vmem_limit_bytes=32 * 1024 * 1024,        # explicit; well under v7x 64 MiB/TC
        ),
    )(x, params["w1"], params["b1"],
      params["w_cg1"], params["b_cg1"], params["wg1"], params["bg1"],
      params["w2"], params["b2"],
      params["w_cg2"], params["b_cg2"], params["wg2"], params["bg2"])

    out = out.reshape(B * To, H3, W3, C2)
    return jnp.transpose(out, (0, 3, 1, 2)), vid_lens // 2


if __name__ == "__main__":
    key = jax.random.PRNGKey(0)
    k_x, k_p = jax.random.split(key)

    B, T, Cin, H, W = 2, 2, 3, 16, 16
    x = jax.random.normal(k_x, (B * T, Cin, H, W), jnp.float32)
    vid_lens = jnp.full((B,), T, jnp.int32)
    params = init_params(k_p, in_channels=Cin)

    out, new_lens = tiny_block1_forward(x, vid_lens, params, num_frames=T)
    out = jax.block_until_ready(out)
    new_lens = jax.block_until_ready(new_lens)

    assert out.shape == (B * (T // 2), 64, 4, 4), out.shape
    assert new_lens.shape == (B,), new_lens.shape
    assert bool(jnp.all(jnp.isfinite(out)))
    print("KERNEL_OK")
</pallas_src>

<mosaic_0001>
module attributes {stable_mosaic.version = 11 : i64} {
  func.func @kernel(%arg0: i32, %arg1: memref<1x2x16x16x3xf32, #tpu.memory_space<vmem>>, %arg2: memref<27x32xbf16, #tpu.memory_space<vmem>>, %arg3: memref<1x32xf32, #tpu.memory_space<vmem>>, %arg4: memref<288x32xbf16, #tpu.memory_space<vmem>>, %arg5: memref<1x32xf32, #tpu.memory_space<vmem>>, %arg6: memref<32x32xf32, #tpu.memory_space<vmem>>, %arg7: memref<1x32xf32, #tpu.memory_space<vmem>>, %arg8: memref<288x64xbf16, #tpu.memory_space<vmem>>, %arg9: memref<1x64xf32, #tpu.memory_space<vmem>>, %arg10: memref<576x64xbf16, #tpu.memory_space<vmem>>, %arg11: memref<1x64xf32, #tpu.memory_space<vmem>>, %arg12: memref<64x64xf32, #tpu.memory_space<vmem>>, %arg13: memref<1x64xf32, #tpu.memory_space<vmem>>, %arg14: memref<1x1x16x64xf32, #tpu.memory_space<vmem>>, %arg15: memref<18x18x32xf32, #tpu.memory_space<vmem>>, %arg16: memref<10x10x64xf32, #tpu.memory_space<vmem>>) attributes {dimension_semantics = [#tpu.dimension_semantics<parallel>], iteration_bounds = array<i64: 2>, scalar_prefetch = 0 : i64, scratch_operands = 2 : i64, tpu.core_type = #tpu.core_type<tc>, window_params = [{transform_indices = @transform_0, window_bounds = array<i64: 1, 2, 16, 16, 3>}, {pipeline_mode = #tpu.pipeline_mode<synchronous>, transform_indices = @transform_1, window_bounds = array<i64: 27, 32>}, {pipeline_mode = #tpu.pipeline_mode<synchronous>, transform_indices = @transform_2, window_bounds = array<i64: 1, 32>}, {pipeline_mode = #tpu.pipeline_mode<synchronous>, transform_indices = @transform_3, window_bounds = array<i64: 288, 32>}, {pipeline_mode = #tpu.pipeline_mode<synchronous>, transform_indices = @transform_4, window_bounds = array<i64: 1, 32>}, {pipeline_mode = #tpu.pipeline_mode<synchronous>, transform_indices = @transform_5, window_bounds = array<i64: 32, 32>}, {pipeline_mode = #tpu.pipeline_mode<synchronous>, transform_indices = @transform_6, window_bounds = array<i64: 1, 32>}, {pipeline_mode = #tpu.pipeline_mode<synchronous>, transform_indices = @transform_7, window_bounds = array<i64: 288, 64>}, {pipeline_mode = #tpu.pipeline_mode<synchronous>, transform_indices = @transform_8, window_bounds = array<i64: 1, 64>}, {pipeline_mode = #tpu.pipeline_mode<synchronous>, transform_indices = @transform_9, window_bounds = array<i64: 576, 64>}, {pipeline_mode = #tpu.pipeline_mode<synchronous>, transform_indices = @transform_10, window_bounds = array<i64: 1, 64>}, {pipeline_mode = #tpu.pipeline_mode<synchronous>, transform_indices = @transform_11, window_bounds = array<i64: 64, 64>}, {pipeline_mode = #tpu.pipeline_mode<synchronous>, transform_indices = @transform_12, window_bounds = array<i64: 1, 64>}, {transform_indices = @transform_13, window_bounds = array<i64: 1, 1, 16, 64>}]} {
    %cst = arith.constant 0.000000e+00 : f32
    %0 = vector.broadcast %cst : f32 to vector<1x18x32xf32>
    %c0 = arith.constant 0 : index
    %c0_0 = arith.constant 0 : index
    %c0_1 = arith.constant 0 : index
    %1 = vector.load %arg15[%c0, %c0_0, %c0_1] : memref<18x18x32xf32, #tpu.memory_space<vmem>>, vector<1x18x32xf32>
    tpu.vector_store %arg15[%c0, %c0_0, %c0_1], %0 {strides = array<i32>} : memref<18x18x32xf32, #tpu.memory_space<vmem>>, vector<1x18x32xf32>,
    %cst_2 = arith.constant 0.000000e+00 : f32
    %2 = vector.broadcast %cst_2 : f32 to vector<1x18x32xf32>
    %c17 = arith.constant 17 : index
    %c0_3 = arith.constant 0 : index
    %c0_4 = arith.constant 0 : index
    %3 = vector.load %arg15[%c17, %c0_3, %c0_4] : memref<18x18x32xf32, #tpu.memory_space<vmem>>, vector<1x18x32xf32>
    tpu.vector_store %arg15[%c17, %c0_3, %c0_4], %2 {strides = array<i32>} : memref<18x18x32xf32, #tpu.memory_space<vmem>>, vector<1x18x32xf32>,
    %cst_5 = arith.constant 0.000000e+00 : f32
    %4 = vector.broadcast %cst_5 : f32 to vector<18x1x32xf32>
    %c0_6 = arith.constant 0 : index
    %c0_7 = arith.constant 0 : index
    %c0_8 = arith.constant 0 : index
    %5 = vector.load %arg15[%c0_6, %c0_7, %c0_8] : memref<18x18x32xf32, #tpu.memory_space<vmem>>, vector<18x1x32xf32>
    tpu.vector_store %arg15[%c0_6, %c0_7, %c0_8], %4 {strides = array<i32>} : memref<18x18x32xf32, #tpu.memory_space<vmem>>, vector<18x1x32xf32>,
    %cst_9 = arith.constant 0.000000e+00 : f32
    %6 = vector.broadcast %cst_9 : f32 to vector<18x1x32xf32>
    %c0_10 = arith.constant 0 : index
    %c17_11 = arith.constant 17 : index
    %c0_12 = arith.constant 0 : index
    %7 = vector.load %arg15[%c0_10, %c17_11, %c0_12] : memref<18x18x32xf32, #tpu.memory_space<vmem>>, vector<18x1x32xf32>
    tpu.vector_store %arg15[%c0_10, %c17_11, %c0_12], %6 {strides = array<i32>} : memref<18x18x32xf32, #tpu.memory_space<vmem>>, vector<18x1x32xf32>,
    %cst_13 = arith.constant 0.000000e+00 : f32
    %8 = vector.broadcast %cst_13 : f32 to vector<1x10x64xf32>
    %c0_14 = arith.constant 0 : index
    %c0_15 = arith.constant 0 : index
    %c0_16 = arith.constant 0 : index
    %9 = vector.load %arg16[%c0_14, %c0_15, %c0_16] : memref<10x10x64xf32, #tpu.memory_space<vmem>>, vector<1x10x64xf32>
    tpu.vector_store %arg16[%c0_14, %c0_15, %c0_16], %8 {strides = array<i32>} : memref<10x10x64xf32, #tpu.memory_space<vmem>>, vector<1x10x64xf32>,
    %cst_17 = arith.constant 0.000000e+00 : f32
    %10 = vector.broadcast %cst_17 : f32 to vector<1x10x64xf32>
    %c9 = arith.constant 9 : index
    %c0_18 = arith.constant 0 : index
    %c0_19 = arith.constant 0 : index
    %11 = vector.load %arg16[%c9, %c0_18, %c0_19] : memref<10x10x64xf32, #tpu.memory_space<vmem>>, vector<1x10x64xf32>
    tpu.vector_store %arg16[%c9, %c0_18, %c0_19], %10 {strides = array<i32>} : memref<10x10x64xf32, #tpu.memory_space<vmem>>, vector<1x10x64xf32>,
    %cst_20 = arith.constant 0.000000e+00 : f32
    %12 = vector.broadcast %cst_20 : f32 to vector<10x1x64xf32>
    %c0_21 = arith.constant 0 : index
    %c0_22 = arith.constant 0 : index
    %c0_23 = arith.constant 0 : index
    %13 = vector.load %arg16[%c0_21, %c0_22, %c0_23] : memref<10x10x64xf32, #tpu.memory_space<vmem>>, vector<10x1x64xf32>
    tpu.vector_store %arg16[%c0_21, %c0_22, %c0_23], %12 {strides = array<i32>} : memref<10x10x64xf32, #tpu.memory_space<vmem>>, vector<10x1x64xf32>,
    %cst_24 = arith.constant 0.000000e+00 : f32
    %14 = vector.broadcast %cst_24 : f32 to vector<10x1x64xf32>
    %c0_25 = arith.constant 0 : index
    %c9_26 = arith.constant 9 : index
    %c0_27 = arith.constant 0 : index
    %15 = vector.load %arg16[%c0_25, %c9_26, %c0_27] : memref<10x10x64xf32, #tpu.memory_space<vmem>>, vector<10x1x64xf32>
    tpu.vector_store %arg16[%c0_25, %c9_26, %c0_27], %14 {strides = array<i32>} : memref<10x10x64xf32, #tpu.memory_space<vmem>>, vector<10x1x64xf32>,
    %cst_28 = arith.constant 0.000000e+00 : f32
    %16 = vector.broadcast %cst_28 : f32 to vector<64x64xf32>
    %c0_i32 = arith.constant 0 : i32
    %c2_i32 = arith.constant 2 : i32
    %17 = arith.muli %c2_i32, %c0_i32 : i32
    %c0_29 = arith.constant 0 : index
    %18 = arith.index_cast %17 : i32 to index
    %c0_30 = arith.constant 0 : index
    %c0_31 = arith.constant 0 : index
    %c0_32 = arith.constant 0 : index
    %19 = vector.load %arg1[%c0_29, %18, %c0_30, %c0_31, %c0_32] : memref<1x2x16x16x3xf32, #tpu.memory_space<vmem>>, vector<1x1x16x16x3xf32>
    %20 = vector.shape_cast %19 : vector<1x1x16x16x3xf32> to vector<16x16x3xf32>
    %c1 = arith.constant 1 : index
    %c1_33 = arith.constant 1 : index
    %c0_34 = arith.constant 0 : index
    %21 = vector.load %arg15[%c1, %c1_33, %c0_34] : memref<18x18x32xf32, #tpu.memory_space<vmem>>, vector<16x16x3xf32>
    tpu.vector_store %arg15[%c1, %c1_33, %c0_34], %20 {strides = array<i32>} : memref<18x18x32xf32, #tpu.memory_space<vmem>>, vector<16x16x3xf32>,
    %c0_35 = arith.constant 0 : index
    %c0_36 = arith.constant 0 : index
    %c0_37 = arith.constant 0 : index
    %22 = vector.load %arg15[%c0_35, %c0_36, %c0_37] : memref<18x18x32xf32, #tpu.memory_space<vmem>>, vector<16x16x3xf32>
    %23 = arith.truncf %22 : vector<16x16x3xf32> to vector<16x16x3xbf16>
    %24 = vector.shape_cast %23 : vector<16x16x3xbf16> to vector<256x3xbf16>
    %c0_38 = arith.constant 0 : index
    %c1_39 = arith.constant 1 : index
    %c0_40 = arith.constant 0 : index
    %25 = vector.load %arg15[%c0_38, %c1_39, %c0_40] : memref<18x18x32xf32, #tpu.memory_space<vmem>>, vector<16x16x3xf32>
    %26 = arith.truncf %25 : vector<16x16x3xf32> to vector<16x16x3xbf16>
    %27 = vector.shape_cast %26 : vector<16x16x3xbf16> to vector<256x3xbf16>
    %c0_41 = arith.constant 0 : index
    %c2 = arith.constant 2 : index
    %c0_42 = arith.constant 0 : index
    %28 = vector.load %arg15[%c0_41, %c2, %c0_42] : memref<18x18x32xf32, #tpu.memory_space<vmem>>, vector<16x16x3xf32>
    %29 = arith.truncf %28 : vector<16x16x3xf32> to vector<16x16x3xbf16>
    %30 = vector.shape_cast %29 : vector<16x16x3xbf16> to vector<256x3xbf16>
    %c1_43 = arith.constant 1 : index
    %c0_44 = arith.constant 0 : index
    %c0_45 = arith.constant 0 : index
    %31 = vector.load %arg15[%c1_43, %c0_44, %c0_45] : memref<18x18x32xf32, #tpu.memory_space<vmem>>, vector<16x16x3xf32>
    %32 = arith.truncf %31 : vector<16x16x3xf32> to vector<16x16x3xbf16>
    %33 = vector.shape_cast %32 : vector<16x16x3xbf16> to vector<256x3xbf16>
    %c1_46 = arith.constant 1 : index
    %c1_47 = arith.constant 1 : index
    %c0_48 = arith.constant 0 : index
    %34 = vector.load %arg15[%c1_46, %c1_47, %c0_48] : memref<18x18x32xf32, #tpu.memory_space<vmem>>, vector<16x16x3xf32>
    %35 = arith.truncf %34 : vector<16x16x3xf32> to vector<16x16x3xbf16>
    %36 = vector.shape_cast %35 : vector<16x16x3xbf16> to vector<256x3xbf16>
    %c1_49 = arith.constant 1 : index
    %c2_50 = arith.constant 2 : index
    %c0_51 = arith.constant 0 : index
    %37 = vector.load %arg15[%c1_49, %c2_50, %c0_51] : memref<18x18x32xf32, #tpu.memory_space<vmem>>, vector<16x16x3xf32>
    %38 = arith.truncf %37 : vector<16x16x3xf32> to vector<16x16x3xbf16>
    %39 = vector.shape_cast %38 : vector<16x16x3xbf16> to vector<256x3xbf16>
    %c2_52 = arith.constant 2 : index
    %c0_53 = arith.constant 0 : index
    %c0_54 = arith.constant 0 : index
    %40 = vector.load %arg15[%c2_52, %c0_53, %c0_54] : memref<18x18x32xf32, #tpu.memory_space<vmem>>, vector<16x16x3xf32>
    %41 = arith.truncf %40 : vector<16x16x3xf32> to vector<16x16x3xbf16>
    %42 = vector.shape_cast %41 : vector<16x16x3xbf16> to vector<256x3xbf16>
    %c2_55 = arith.constant 2 : index
    %c1_56 = arith.constant 1 : index
    %c0_57 = arith.constant 0 : index
    %43 = vector.load %arg15[%c2_55, %c1_56, %c0_57] : memref<18x18x32xf32, #tpu.memory_space<vmem>>, vector<16x16x3xf32>
    %44 = arith.truncf %43 : vector<16x16x3xf32> to vector<16x16x3xbf16>
    %45 = vector.shape_cast %44 : vector<16x16x3xbf16> to vector<256x3xbf16>
    %c2_58 = arith.constant 2 : index
    %c2_59 = arith.constant 2 : index
    %c0_60 = arith.constant 0 : index
    %46 = vector.load %arg15[%c2_58, %c2_59, %c0_60] : memref<18x18x32xf32, #tpu.memory_space<vmem>>, vector<16x16x3xf32>
    %47 = arith.truncf %46 : vector<16x16x3xf32> to vector<16x16x3xbf16>
    %48 = vector.shape_cast %47 : vector<16x16x3xbf16> to vector<256x3xbf16>
    %49 = tpu.concatenate %24, %27, %30, %33, %36, %39, %42, %45, %48 in 1 : vector<256x3xbf16>, vector<256x3xbf16>, vector<256x3xbf16>, vector<256x3xbf16>, vector<256x3xbf16>, vector<256x3xbf16>, vector<256x3xbf16>, vector<256x3xbf16>, vector<256x3xbf16> -> vector<256x27xbf16>
    %c0_61 = arith.constant 0 : index
    %c0_62 = arith.constant 0 : index
    %50 = vector.load %arg2[%c0_61, %c0_62] : memref<27x32xbf16, #tpu.memory_space<vmem>>, vector<27x32xbf16>
    %cst_63 = arith.constant dense<0.000000e+00> : vector<256x32xf32>
    %51 = tpu.matmul %49, %50, %cst_63 {dimension_numbers = #tpu.dot_dimension_numbers<[1], [0], [0], [1], [0, 0, 1, 1], [], []>} : vector<256x27xbf16>, vector<27x32xbf16>, vector<256x32xf32> -> vector<256x32xf32>
    %c0_64 = arith.constant 0 : index
    %c0_65 = arith.constant 0 : index
    %52 = vector.load %arg3[%c0_64, %c0_65] : memref<1x32xf32, #tpu.memory_space<vmem>>, vector<1x32xf32>
    %53 = vector.broadcast %52 : vector<1x32xf32> to vector<256x32xf32>
    %54 = arith.addf %51, %53 : vector<256x32xf32>
    %c2_i32_66 = arith.constant 2 : i32
    %55 = arith.muli %c2_i32_66, %c0_i32 : i32
    %c1_i32 = arith.constant 1 : i32
    %56 = arith.addi %55, %c1_i32 : i32
    %c0_67 = arith.constant 0 : index
    %57 = arith.index_cast %56 : i32 to index
    %c0_68 = arith.constant 0 : index
    %c0_69 = arith.constant 0 : index
    %c0_70 = arith.constant 0 : index
    %58 = vector.load %arg1[%c0_67, %57, %c0_68, %c0_69, %c0_70] : memref<1x2x16x16x3xf32, #tpu.memory_space<vmem>>, vector<1x1x16x16x3xf32>
    %59 = vector.shape_cast %58 : vector<1x1x16x16x3xf32> to vector<16x16x3xf32>
    %c1_71 = arith.constant 1 : index
    %c1_72 = arith.constant 1 : index
    %c0_73 = arith.constant 0 : index
    %60 = vector.load %arg15[%c1_71, %c1_72, %c0_73] : memref<18x18x32xf32, #tpu.memory_space<vmem>>, vector<16x16x3xf32>
    tpu.vector_store %arg15[%c1_71, %c1_72, %c0_73], %59 {strides = array<i32>} : memref<18x18x32xf32, #tpu.memory_space<vmem>>, vector<16x16x3xf32>,
    %c0_74 = arith.constant 0 : index
    %c0_75 = arith.constant 0 : index
    %c0_76 = arith.constant 0 : index
    %61 = vector.load %arg15[%c0_74, %c0_75, %c0_76] : memref<18x18x32xf32, #tpu.memory_space<vmem>>, vector<16x16x3xf32>
    %62 = arith.truncf %61 : vector<16x16x3xf32> to vector<16x16x3xbf16>
    %63 = vector.shape_cast %62 : vector<16x16x3xbf16> to vector<256x3xbf16>
    %c0_77 = arith.constant 0 : index
    %c1_78 = arith.constant 1 : index
    %c0_79 = arith.constant 0 : index
    %64 = vector.load %arg15[%c0_77, %c1_78, %c0_79] : memref<18x18x32xf32, #tpu.memory_space<vmem>>, vector<16x16x3xf32>
    %65 = arith.truncf %64 : vector<16x16x3xf32> to vector<16x16x3xbf16>
    %66 = vector.shape_cast %65 : vector<16x16x3xbf16> to vector<256x3xbf16>
    %c0_80 = arith.constant 0 : index
    %c2_81 = arith.constant 2 : index
    %c0_82 = arith.constant 0 : index
    %67 = vector.load %arg15[%c0_80, %c2_81, %c0_82] : memref<18x18x32xf32, #tpu.memory_space<vmem>>, vector<16x16x3xf32>
    %68 = arith.truncf %67 : vector<16x16x3xf32> to vector<16x16x3xbf16>
    %69 = vector.shape_cast %68 : vector<16x16x3xbf16> to vector<256x3xbf16>
    %c1_83 = arith.constant 1 : index
    %c0_84 = arith.constant 0 : index
    %c0_85 = arith.constant 0 : index
    %70 = vector.load %arg15[%c1_83, %c0_84, %c0_85] : memref<18x18x32xf32, #tpu.memory_space<vmem>>, vector<16x16x3xf32>
    %71 = arith.truncf %70 : vector<16x16x3xf32> to vector<16x16x3xbf16>
    %72 = vector.shape_cast %71 : vector<16x16x3xbf16> to vector<256x3xbf16>
    %c1_86 = arith.constant 1 : index
    %c1_87 = arith.constant 1 : index
    %c0_88 = arith.constant 0 : index
    %73 = vector.load %arg15[%c1_86, %c1_87, %c0_88] : memref<18x18x32xf32, #tpu.memory_space<vmem>>, vector<16x16x3xf32>
    %74 = arith.truncf %73 : vector<16x16x3xf32> to vector<16x16x3xbf16>
    %75 = vector.shape_cast %74 : vector<16x16x3xbf16> to vector<256x3xbf16>
    %c1_89 = arith.constant 1 : index
    %c2_90 = arith.constant 2 : index
    %c0_91 = arith.constant 0 : index
    %76 = vector.load %arg15[%c1_89, %c2_90, %c0_91] : memref<18x18x32xf32, #tpu.memory_space<vmem>>, vector<16x16x3xf32>
    %77 = arith.truncf %76 : vector<16x16x3xf32> to vector<16x16x3xbf16>
    %78 = vector.shape_cast %77 : vector<16x16x3xbf16> to vector<256x3xbf16>
    %c2_92 = arith.constant 2 : index
    %c0_93 = arith.constant 0 : index
    %c0_94 = arith.constant 0 : index
    %79 = vector.load %arg15[%c2_92, %c0_93, %c0_94] : memref<18x18x32xf32, #tpu.memory_space<vmem>>, vector<16x16x3xf32>
    %80 = arith.truncf %79 : vector<16x16x3xf32> to vector<16x16x3xbf16>
    %81 = vector.shape_cast %80 : vector<16x16x3xbf16> to vector<256x3xbf16>
    %c2_95 = arith.constant 2 : index
    %c1_96 = arith.constant 1 : index
    %c0_97 = arith.constant 0 : index
    %82 = vector.load %arg15[%c2_95, %c1_96, %c0_97] : memref<18x18x32xf32, #tpu.memory_space<vmem>>, vector<16x16x3xf32>
    %83 = arith.truncf %82 : vector<16x16x3xf32> to vector<16x16x3xbf16>
    %84 = vector.shape_cast %83 : vector<16x16x3xbf16> to vector<256x3xbf16>
    %c2_98 = arith.constant 2 : index
    %c2_99 = arith.constant 2 : index
    %c0_100 = arith.constant 0 : index
    %85 = vector.load %arg15[%c2_98, %c2_99, %c0_100] : memref<18x18x32xf32, #tpu.memory_space<vmem>>, vector<16x16x3xf32>
    %86 = arith.truncf %85 : vector<16x16x3xf32> to vector<16x16x3xbf16>
    %87 = vector.shape_cast %86 : vector<16x16x3xbf16> to vector<256x3xbf16>
    %88 = tpu.concatenate %63, %66, %69, %72, %75, %78, %81, %84, %87 in 1 : vector<256x3xbf16>, vector<256x3xbf16>, vector<256x3xbf16>, vector<256x3xbf16>, vector<256x3xbf16>, vector<256x3xbf16>, vector<256x3xbf16>, vector<256x3xbf16>, vector<256x3xbf16> -> vector<256x27xbf16>
    %c0_101 = arith.constant 0 : index
    %c0_102 = arith.constant 0 : index
    %89 = vector.load %arg2[%c0_101, %c0_102] : memref<27x32xbf16, #tpu.memory_space<vmem>>, vector<27x32xbf16>
    %cst_103 = arith.constant dense<0.000000e+00> : vector<256x32xf32>
    %90 = tpu.matmul %88, %89, %cst_103 {dimension_numbers = #tpu.dot_dimension_numbers<[1], [0], [0], [1], [0, 0, 1, 1], [], []>} : vector<256x27xbf16>, vector<27x32xbf16>, vector<256x32xf32> -> vector<256x32xf32>
    %c0_104 = arith.constant 0 : index
    %c0_105 = arith.constant 0 : index
    %91 = vector.load %arg3[%c0_104, %c0_105] : memref<1x32xf32, #tpu.memory_space<vmem>>, vector<1x32xf32>
    %92 = vector.broadcast %91 : vector<1x32xf32> to vector<256x32xf32>
    %93 = arith.addf %90, %92 : vector<256x32xf32>
    %94 = arith.maximumf %54, %93 : vector<256x32xf32>
    %95 = vector.shape_cast %94 : vector<256x32xf32> to vector<16x16x32xf32>
    %c1_106 = arith.constant 1 : index
    %c1_107 = arith.constant 1 : index
    %c0_108 = arith.constant 0 : index
    %96 = vector.load %arg15[%c1_106, %c1_107, %c0_108] : memref<18x18x32xf32, #tpu.memory_space<vmem>>, vector<16x16x32xf32>
    tpu.vector_store %arg15[%c1_106, %c1_107, %c0_108], %95 {strides = array<i32>} : memref<18x18x32xf32, #tpu.memory_space<vmem>>, vector<16x16x32xf32>,
    %c0_109 = arith.constant 0 : index
    %c0_110 = arith.constant 0 : index
    %c0_111 = arith.constant 0 : index
    %97 = tpu.strided_load %arg15[%c0_109, %c0_110, %c0_111] {strides = array<i32: 2, 2, 1>} : memref<18x18x32xf32, #tpu.memory_space<vmem>>, vector<8x8x32xf32>
    %98 = arith.truncf %97 : vector<8x8x32xf32> to vector<8x8x32xbf16>
    %99 = vector.shape_cast %98 : vector<8x8x32xbf16> to vector<64x32xbf16>
    %c0_112 = arith.constant 0 : index
    %c1_113 = arith.constant 1 : index
    %c0_114 = arith.constant 0 : index
    %100 = tpu.strided_load %arg15[%c0_112, %c1_113, %c0_114] {strides = array<i32: 2, 2, 1>} : memref<18x18x32xf32, #tpu.memory_space<vmem>>, vector<8x8x32xf32>
    %101 = arith.truncf %100 : vector<8x8x32xf32> to vector<8x8x32xbf16>
    %102 = vector.shape_cast %101 : vector<8x8x32xbf16> to vector<64x32xbf16>
    %c0_115 = arith.constant 0 : index
    %c2_116 = arith.constant 2 : index
    %c0_117 = arith.constant 0 : index
    %103 = tpu.strided_load %arg15[%c0_115, %c2_116, %c0_117] {strides = array<i32: 2, 2, 1>} : memref<18x18x32xf32, #tpu.memory_space<vmem>>, vector<8x8x32xf32>
    %104 = arith.truncf %103 : vector<8x8x32xf32> to vector<8x8x32xbf16>
    %105 = vector.shape_cast %104 : vector<8x8x32xbf16> to vector<64x32xbf16>
    %c1_118 = arith.constant 1 : index
    %c0_119 = arith.constant 0 : index
    %c0_120 = arith.constant 0 : index
    %106 = tpu.strided_load %arg15[%c1_118, %c0_119, %c0_120] {strides = array<i32: 2, 2, 1>} : memref<18x18x32xf32, #tpu.memory_space<vmem>>, vector<8x8x32xf32>
    %107 = arith.truncf %106 : vector<8x8x32xf32> to vector<8x8x32xbf16>
    %108 = vector.shape_cast %107 : vector<8x8x32xbf16> to vector<64x32xbf16>
    %c1_121 = arith.constant 1 : index
    %c1_122 = arith.constant 1 : index
    %c0_123 = arith.constant 0 : index
    %109 = tpu.strided_load %arg15[%c1_121, %c1_122, %c0_123] {strides = array<i32: 2, 2, 1>} : memref<18x18x32xf32, #tpu.memory_space<vmem>>, vector<8x8x32xf32>
    %110 = arith.truncf %109 : vector<8x8x32xf32> to vector<8x8x32xbf16>
    %111 = vector.shape_cast %110 : vector<8x8x32xbf16> to vector<64x32xbf16>
    %c1_124 = arith.constant 1 : index
    %c2_125 = arith.constant 2 : index
    %c0_126 = arith.constant 0 : index
    %112 = tpu.strided_load %arg15[%c1_124, %c2_125, %c0_126] {strides = array<i32: 2, 2, 1>} : memref<18x18x32xf32, #tpu.memory_space<vmem>>, vector<8x8x32xf32>
    %113 = arith.truncf %112 : vector<8x8x32xf32> to vector<8x8x32xbf16>
    %114 = vector.shape_cast %113 : vector<8x8x32xbf16> to vector<64x32xbf16>
    %c2_127 = arith.constant 2 : index
    %c0_128 = arith.constant 0 : index
    %c0_129 = arith.constant 0 : index
    %115 = tpu.strided_load %arg15[%c2_127, %c0_128, %c0_129] {strides = array<i32: 2, 2, 1>} : memref<18x18x32xf32, #tpu.memory_space<vmem>>, vector<8x8x32xf32>
    %116 = arith.truncf %115 : vector<8x8x32xf32> to vector<8x8x32xbf16>
    %117 = vector.shape_cast %116 : vector<8x8x32xbf16> to vector<64x32xbf16>
    %c2_130 = arith.constant 2 : index
    %c1_131 = arith.constant 1 : index
    %c0_132 = arith.constant 0 : index
    %118 = tpu.strided_load %arg15[%c2_130, %c1_131, %c0_132] {strides = array<i32: 2, 2, 1>} : memref<18x18x32xf32, #tpu.memory_space<vmem>>, vector<8x8x32xf32>
    %119 = arith.truncf %118 : vector<8x8x32xf32> to vector<8x8x32xbf16>
    %120 = vector.shape_cast %119 : vector<8x8x32xbf16> to vector<64x32xbf16>
    %c2_133 = arith.constant 2 : index
    %c2_134 = arith.constant 2 : index
    %c0_135 = arith.constant 0 : index
    %121 = tpu.strided_load %arg15[%c2_133, %c2_134, %c0_135] {strides = array<i32: 2, 2, 1>} : memref<18x18x32xf32, #tpu.memory_space<vmem>>, vector<8x8x32xf32>
    %122 = arith.truncf %121 : vector<8x8x32xf32> to vector<8x8x32xbf16>
    %123 = vector.shape_cast %122 : vector<8x8x32xbf16> to vector<64x32xbf16>
    %124 = tpu.concatenate %99, %102, %105, %108, %111, %114, %117, %120, %123 in 1 : vector<64x32xbf16>, vector<64x32xbf16>, vector<64x32xbf16>, vector<64x32xbf16>, vector<64x32xbf16>, vector<64x32xbf16>, vector<64x32xbf16>, vector<64x32xbf16>, vector<64x32xbf16> -> vector<64x288xbf16>
    %c0_136 = arith.constant 0 : index
    %c0_137 = arith.constant 0 : index
    %125 = vector.load %arg4[%c0_136, %c0_137] : memref<288x32xbf16, #tpu.memory_space<vmem>>, vector<288x32xbf16>
    %cst_138 = arith.constant dense<0.000000e+00> : vector<64x32xf32>
    %126 = tpu.matmul %124, %125, %cst_138 {dimension_numbers = #tpu.dot_dimension_numbers<[1], [0], [0], [1], [0, 0, 1, 1], [], []>} : vector<64x288xbf16>, vector<288x32xbf16>, vector<64x32xf32> -> vector<64x32xf32>
    %c0_139 = arith.constant 0 : index
    %c0_140 = arith.constant 0 : index
    %127 = vector.load %arg5[%c0_139, %c0_140] : memref<1x32xf32, #tpu.memory_space<vmem>>, vector<1x32xf32>
    %128 = vector.broadcast %127 : vector<1x32xf32> to vector<64x32xf32>
    %129 = arith.addf %126, %128 : vector<64x32xf32>
    %cst_141 = arith.constant dense<0.000000e+00> : vector<32xf32>
    %130 = vector.multi_reduction <add>, %129, %cst_141 [0] : vector<64x32xf32> to vector<32xf32>
    %131 = vector.shape_cast %130 : vector<32xf32> to vector<1x32xf32>
    %cst_142 = arith.constant 6.400000e+01 : f32
    %132 = vector.broadcast %cst_142 : f32 to vector<1x32xf32>
    %133 = arith.divf %131, %132 : vector<1x32xf32>
    %c0_143 = arith.constant 0 : index
    %c0_144 = arith.constant 0 : index
    %134 = vector.load %arg6[%c0_143, %c0_144] : memref<32x32xf32, #tpu.memory_space<vmem>>, vector<32x32xf32>
    %cst_145 = arith.constant dense<0.000000e+00> : vector<1x32xf32>
    %135 = tpu.matmul %133, %134, %cst_145 {dimension_numbers = #tpu.dot_dimension_numbers<[1], [0], [0], [1], [0, 0, 1, 1], [], []>} : vector<1x32xf32>, vector<32x32xf32>, vector<1x32xf32> -> vector<1x32xf32>
    %c0_146 = arith.constant 0 : index
    %c0_147 = arith.constant 0 : index
    %136 = vector.load %arg7[%c0_146, %c0_147] : memref<1x32xf32, #tpu.memory_space<vmem>>, vector<1x32xf32>
    %137 = arith.addf %135, %136 : vector<1x32xf32>
    %138 = arith.negf %137 : vector<1x32xf32>
    %139 = math.exp %138 : vector<1x32xf32>
    %cst_148 = arith.constant 1.000000e+00 : f32
    %140 = vector.broadcast %cst_148 : f32 to vector<1x32xf32>
    %141 = arith.addf %140, %139 : vector<1x32xf32>
    %142 = arith.divf %140, %141 : vector<1x32xf32>
    %143 = vector.broadcast %142 : vector<1x32xf32> to vector<64x32xf32>
    %144 = arith.mulf %129, %143 : vector<64x32xf32>
    %145 = vector.shape_cast %144 : vector<64x32xf32> to vector<8x8x32xf32>
    %c1_149 = arith.constant 1 : index
    %c1_150 = arith.constant 1 : index
    %c0_151 = arith.constant 0 : index
    %146 = vector.load %arg16[%c1_149, %c1_150, %c0_151] : memref<10x10x64xf32, #tpu.memory_space<vmem>>, vector<8x8x32xf32>
    tpu.vector_store %arg16[%c1_149, %c1_150, %c0_151], %145 {strides = array<i32>} : memref<10x10x64xf32, #tpu.memory_space<vmem>>, vector<8x8x32xf32>,
    %c0_152 = arith.constant 0 : index
    %c0_153 = arith.constant 0 : index
    %c0_154 = arith.constant 0 : index
    %147 = vector.load %arg16[%c0_152, %c0_153, %c0_154] : memref<10x10x64xf32, #tpu.memory_space<vmem>>, vector<8x8x32xf32>
    %148 = arith.truncf %147 : vector<8x8x32xf32> to vector<8x8x32xbf16>
    %149 = vector.shape_cast %148 : vector<8x8x32xbf16> to vector<64x32xbf16>
    %c0_155 = arith.constant 0 : index
    %c1_156 = arith.constant 1 : index
    %c0_157 = arith.constant 0 : index
    %150 = vector.load %arg16[%c0_155, %c1_156, %c0_157] : memref<10x10x64xf32, #tpu.memory_space<vmem>>, vector<8x8x32xf32>
    %151 = arith.truncf %150 : vector<8x8x32xf32> to vector<8x8x32xbf16>
    %152 = vector.shape_cast %151 : vector<8x8x32xbf16> to vector<64x32xbf16>
    %c0_158 = arith.constant 0 : index
    %c2_159 = arith.constant 2 : index
    %c0_160 = arith.constant 0 : index
    %153 = vector.load %arg16[%c0_158, %c2_159, %c0_160] : memref<10x10x64xf32, #tpu.memory_space<vmem>>, vector<8x8x32xf32>
    %154 = arith.truncf %153 : vector<8x8x32xf32> to vector<8x8x32xbf16>
    %155 = vector.shape_cast %154 : vector<8x8x32xbf16> to vector<64x32xbf16>
    %c1_161 = arith.constant 1 : index
    %c0_162 = arith.constant 0 : index
    %c0_163 = arith.constant 0 : index
    %156 = vector.load %arg16[%c1_161, %c0_162, %c0_163] : memref<10x10x64xf32, #tpu.memory_space<vmem>>, vector<8x8x32xf32>
    %157 = arith.truncf %156 : vector<8x8x32xf32> to vector<8x8x32xbf16>
    %158 = vector.shape_cast %157 : vector<8x8x32xbf16> to vector<64x32xbf16>
    %c1_164 = arith.constant 1 : index
    %c1_165 = arith.constant 1 : index
    %c0_166 = arith.constant 0 : index
    %159 = vector.load %arg16[%c1_164, %c1_165, %c0_166] : memref<10x10x64xf32, #tpu.memory_space<vmem>>, vector<8x8x32xf32>
    %160 = arith.truncf %159 : vector<8x8x32xf32> to vector<8x8x32xbf16>
    %161 = vector.shape_cast %160 : vector<8x8x32xbf16> to vector<64x32xbf16>
    %c1_167 = arith.constant 1 : index
    %c2_168 = arith.constant 2 : index
    %c0_169 = arith.constant 0 : index
    %162 = vector.load %arg16[%c1_167, %c2_168, %c0_169] : memref<10x10x64xf32, #tpu.memory_space<vmem>>, vector<8x8x32xf32>
    %163 = arith.truncf %162 : vector<8x8x32xf32> to vector<8x8x32xbf16>
    %164 = vector.shape_cast %163 : vector<8x8x32xbf16> to vector<64x32xbf16>
    %c2_170 = arith.constant 2 : index
    %c0_171 = arith.constant 0 : index
    %c0_172 = arith.constant 0 : index
    %165 = vector.load %arg16[%c2_170, %c0_171, %c0_172] : memref<10x10x64xf32, #tpu.memory_space<vmem>>, vector<8x8x32xf32>
    %166 = arith.truncf %165 : vector<8x8x32xf32> to vector<8x8x32xbf16>
    %167 = vector.shape_cast %166 : vector<8x8x32xbf16> to vector<64x32xbf16>
    %c2_173 = arith.constant 2 : index
    %c1_174 = arith.constant 1 : index
    %c0_175 = arith.constant 0 : index
    %168 = vector.load %arg16[%c2_173, %c1_174, %c0_175] : memref<10x10x64xf32, #tpu.memory_space<vmem>>, vector<8x8x32xf32>
    %169 = arith.truncf %168 : vector<8x8x32xf32> to vector<8x8x32xbf16>
    %170 = vector.shape_cast %169 : vector<8x8x32xbf16> to vector<64x32xbf16>
    %c2_176 = arith.constant 2 : index
    %c2_177 = arith.constant 2 : index
    %c0_178 = arith.constant 0 : index
    %171 = vector.load %arg16[%c2_176, %c2_177, %c0_178] : memref<10x10x64xf32, #tpu.memory_space<vmem>>, vector<8x8x32xf32>
    %172 = arith.truncf %171 : vector<8x8x32xf32> to vector<8x8x32xbf16>
    %173 = vector.shape_cast %172 : vector<8x8x32xbf16> to vector<64x32xbf16>
    %174 = tpu.concatenate %149, %152, %155, %158, %161, %164, %167, %170, %173 in 1 : vector<64x32xbf16>, vector<64x32xbf16>, vector<64x32xbf16>, vector<64x32xbf16>, vector<64x32xbf16>, vector<64x32xbf16>, vector<64x32xbf16>, vector<64x32xbf16>, vector<64x32xbf16> -> vector<64x288xbf16>
    %c0_179 = arith.constant 0 : index
    %c0_180 = arith.constant 0 : index
    %175 = vector.load %arg8[%c0_179, %c0_180] : memref<288x64xbf16, #tpu.memory_space<vmem>>, vector<288x64xbf16>
    %cst_181 = arith.constant dense<0.000000e+00> : vector<64x64xf32>
    %176 = tpu.matmul %174, %175, %cst_181 {dimension_numbers = #tpu.dot_dimension_numbers<[1], [0], [0], [1], [0, 0, 1, 1], [], []>} : vector<64x288xbf16>, vector<288x64xbf16>, vector<64x64xf32> -> vector<64x64xf32>
    %c0_182 = arith.constant 0 : index
    %c0_183 = arith.constant 0 : index
    %177 = vector.load %arg9[%c0_182, %c0_183] : memref<1x64xf32, #tpu.memory_space<vmem>>, vector<1x64xf32>
    %178 = vector.broadcast %177 : vector<1x64xf32> to vector<64x64xf32>
    %179 = arith.addf %176, %178 : vector<64x64xf32>
    %c1_i32_184 = arith.constant 1 : i32
    %180 = arith.cmpi sge, %c0_i32, %c1_i32_184 : i32
    %181 = arith.extui %180 : i1 to i32
    %c0_i32_185 = arith.constant 0 : i32
    %182 = arith.cmpi ne, %181, %c0_i32_185 : i32
    scf.if %182 {
      %c1_i32_235 = arith.constant 1 : i32
      %239 = arith.subi %c0_i32, %c1_i32_235 : i32
      %240 = arith.addf %16, %16 : vector<64x64xf32>
      %241 = arith.addf %240, %179 : vector<64x64xf32>
      %cst_236 = arith.constant 0.333333343 : f32
      %242 = vector.broadcast %cst_236 : f32 to vector<64x64xf32>
      %243 = arith.mulf %241, %242 : vector<64x64xf32>
      %244 = vector.shape_cast %243 : vector<64x64xf32> to vector<8x8x64xf32>
      %c1_237 = arith.constant 1 : index
      %c1_238 = arith.constant 1 : index
      %c0_239 = arith.constant 0 : index
      %245 = vector.load %arg16[%c1_237, %c1_238, %c0_239] : memref<10x10x64xf32, #tpu.memory_space<vmem>>, vector<8x8x64xf32>
      tpu.vector_store %arg16[%c1_237, %c1_238, %c0_239], %244 {strides = array<i32>} : memref<10x10x64xf32, #tpu.memory_space<vmem>>, vector<8x8x64xf32>,
      %c0_240 = arith.constant 0 : index
      %c0_241 = arith.constant 0 : index
      %c0_242 = arith.constant 0 : index
      %246 = tpu.strided_load %arg16[%c0_240, %c0_241, %c0_242] {strides = array<i32: 2, 2, 1>} : memref<10x10x64xf32, #tpu.memory_space<vmem>>, vector<4x4x64xf32>
      %247 = arith.truncf %246 : vector<4x4x64xf32> to vector<4x4x64xbf16>
      %248 = vector.shape_cast %247 : vector<4x4x64xbf16> to vector<16x64xbf16>
      %c0_243 = arith.constant 0 : index
      %c1_244 = arith.constant 1 : index
      %c0_245 = arith.constant 0 : index
      %249 = tpu.strided_load %arg16[%c0_243, %c1_244, %c0_245] {strides = array<i32: 2, 2, 1>} : memref<10x10x64xf32, #tpu.memory_space<vmem>>, vector<4x4x64xf32>
      %250 = arith.truncf %249 : vector<4x4x64xf32> to vector<4x4x64xbf16>
      %251 = vector.shape_cast %250 : vector<4x4x64xbf16> to vector<16x64xbf16>
      %c0_246 = arith.constant 0 : index
      %c2_247 = arith.constant 2 : index
      %c0_248 = arith.constant 0 : index
      %252 = tpu.strided_load %arg16[%c0_246, %c2_247, %c0_248] {strides = array<i32: 2, 2, 1>} : memref<10x10x64xf32, #tpu.memory_space<vmem>>, vector<4x4x64xf32>
      %253 = arith.truncf %252 : vector<4x4x64xf32> to vector<4x4x64xbf16>
      %254 = vector.shape_cast %253 : vector<4x4x64xbf16> to vector<16x64xbf16>
      %c1_249 = arith.constant 1 : index
      %c0_250 = arith.constant 0 : index
      %c0_251 = arith.constant 0 : index
      %255 = tpu.strided_load %arg16[%c1_249, %c0_250, %c0_251] {strides = array<i32: 2, 2, 1>} : memref<10x10x64xf32, #tpu.memory_space<vmem>>, vector<4x4x64xf32>
      %256 = arith.truncf %255 : vector<4x4x64xf32> to vector<4x4x64xbf16>
      %257 = vector.shape_cast %256 : vector<4x4x64xbf16> to vector<16x64xbf16>
      %c1_252 = arith.constant 1 : index
      %c1_253 = arith.constant 1 : index
      %c0_254 = arith.constant 0 : index
      %258 = tpu.strided_load %arg16[%c1_252, %c1_253, %c0_254] {strides = array<i32: 2, 2, 1>} : memref<10x10x64xf32, #tpu.memory_space<vmem>>, vector<4x4x64xf32>
      %259 = arith.truncf %258 : vector<4x4x64xf32> to vector<4x4x64xbf16>
      %260 = vector.shape_cast %259 : vector<4x4x64xbf16> to vector<16x64xbf16>
      %c1_255 = arith.constant 1 : index
      %c2_256 = arith.constant 2 : index
      %c0_257 = arith.constant 0 : index
      %261 = tpu.strided_load %arg16[%c1_255, %c2_256, %c0_257] {strides = array<i32: 2, 2, 1>} : memref<10x10x64xf32, #tpu.memory_space<vmem>>, vector<4x4x64xf32>
      %262 = arith.truncf %261 : vector<4x4x64xf32> to vector<4x4x64xbf16>
      %263 = vector.shape_cast %262 : vector<4x4x64xbf16> to vector<16x64xbf16>
      %c2_258 = arith.constant 2 : index
      %c0_259 = arith.constant 0 : index
      %c0_260 = arith.constant 0 : index
      %264 = tpu.strided_load %arg16[%c2_258, %c0_259, %c0_260] {strides = array<i32: 2, 2, 1>} : memref<10x10x64xf32, #tpu.memory_space<vmem>>, vector<4x4x64xf32>
      %265 = arith.truncf %264 : vector<4x4x64xf32> to vector<4x4x64xbf16>
      %266 = vector.shape_cast %265 : vector<4x4x64xbf16> to vector<16x64xbf16>
      %c2_261 = arith.constant 2 : index
      %c1_262 = arith.constant 1 : index
      %c0_263 = arith.constant 0 : index
      %267 = tpu.strided_load %arg16[%c2_261, %c1_262, %c0_263] {strides = array<i32: 2, 2, 1>} : memref<10x10x64xf32, #tpu.memory_space<vmem>>, vector<4x4x64xf32>
      %268 = arith.truncf %267 : vector<4x4x64xf32> to vector<4x4x64xbf16>
      %269 = vector.shape_cast %268 : vector<4x4x64xbf16> to vector<16x64xbf16>
      %c2_264 = arith.constant 2 : index
      %c2_265 = arith.constant 2 : index
      %c0_266 = arith.constant 0 : index
      %270 = tpu.strided_load %arg16[%c2_264, %c2_265, %c0_266] {strides = array<i32: 2, 2, 1>} : memref<10x10x64xf32, #tpu.memory_space<vmem>>, vector<4x4x64xf32>
      %271 = arith.truncf %270 : vector<4x4x64xf32> to vector<4x4x64xbf16>
      %272 = vector.shape_cast %271 : vector<4x4x64xbf16> to vector<16x64xbf16>
      %273 = tpu.concatenate %248, %251, %254, %257, %260, %263, %266, %269, %272 in 1 : vector<16x64xbf16>, vector<16x64xbf16>, vector<16x64xbf16>, vector<16x64xbf16>, vector<16x64xbf16>, vector<16x64xbf16>, vector<16x64xbf16>, vector<16x64xbf16>, vector<16x64xbf16> -> vector<16x576xbf16>
      %c0_267 = arith.constant 0 : index
      %c0_268 = arith.constant 0 : index
      %274 = vector.load %arg10[%c0_267, %c0_268] : memref<576x64xbf16, #tpu.memory_space<vmem>>, vector<576x64xbf16>
      %cst_269 = arith.constant dense<0.000000e+00> : vector<16x64xf32>
      %275 = tpu.matmul %273, %274, %cst_269 {dimension_numbers = #tpu.dot_dimension_numbers<[1], [0], [0], [1], [0, 0, 1, 1], [], []>} : vector<16x576xbf16>, vector<576x64xbf16>, vector<16x64xf32> -> vector<16x64xf32>
      %c0_270 = arith.constant 0 : index
      %c0_271 = arith.constant 0 : index
      %276 = vector.load %arg11[%c0_270, %c0_271] : memref<1x64xf32, #tpu.memory_space<vmem>>, vector<1x64xf32>
      %277 = vector.broadcast %276 : vector<1x64xf32> to vector<16x64xf32>
      %278 = arith.addf %275, %277 : vector<16x64xf32>
      %cst_272 = arith.constant dense<0.000000e+00> : vector<64xf32>
      %279 = vector.multi_reduction <add>, %278, %cst_272 [0] : vector<16x64xf32> to vector<64xf32>
      %280 = vector.shape_cast %279 : vector<64xf32> to vector<1x64xf32>
      %cst_273 = arith.constant 1.600000e+01 : f32
      %281 = vector.broadcast %cst_273 : f32 to vector<1x64xf32>
      %282 = arith.divf %280, %281 : vector<1x64xf32>
      %c0_274 = arith.constant 0 : index
      %c0_275 = arith.constant 0 : index
      %283 = vector.load %arg12[%c0_274, %c0_275] : memref<64x64xf32, #tpu.memory_space<vmem>>, vector<64x64xf32>
      %cst_276 = arith.constant dense<0.000000e+00> : vector<1x64xf32>
      %284 = tpu.matmul %282, %283, %cst_276 {dimension_numbers = #tpu.dot_dimension_numbers<[1], [0], [0], [1], [0, 0, 1, 1], [], []>} : vector<1x64xf32>, vector<64x64xf32>, vector<1x64xf32> -> vector<1x64xf32>
      %c0_277 = arith.constant 0 : index
      %c0_278 = arith.constant 0 : index
      %285 = vector.load %arg13[%c0_277, %c0_278] : memref<1x64xf32, #tpu.memory_space<vmem>>, vector<1x64xf32>
      %286 = arith.addf %284, %285 : vector<1x64xf32>
      %287 = arith.negf %286 : vector<1x64xf32>
      %288 = math.exp %287 : vector<1x64xf32>
      %cst_279 = arith.constant 1.000000e+00 : f32
      %289 = vector.broadcast %cst_279 : f32 to vector<1x64xf32>
      %290 = arith.addf %289, %288 : vector<1x64xf32>
      %291 = arith.divf %289, %290 : vector<1x64xf32>
      %292 = vector.broadcast %291 : vector<1x64xf32> to vector<16x64xf32>
      %293 = arith.mulf %278, %292 : vector<16x64xf32>
      %c0_280 = arith.constant 0 : index
      %294 = arith.index_cast %239 : i32 to index
      %c0_281 = arith.constant 0 : index
      %c0_282 = arith.constant 0 : index
      %295 = vector.load %arg14[%c0_280, %294, %c0_281, %c0_282] : memref<1x1x16x64xf32, #tpu.memory_space<vmem>>, vector<1x1x16x64xf32>
      %296 = vector.shape_cast %295 : vector<1x1x16x64xf32> to vector<16x64xf32>
      %297 = vector.shape_cast %293 : vector<16x64xf32> to vector<1x1x16x64xf32>
      tpu.vector_store %arg14[%c0_280, %294, %c0_281, %c0_282], %297 {strides = array<i32>} : memref<1x1x16x64xf32, #tpu.memory_space<vmem>>, vector<1x1x16x64xf32>,
    } else {
    }
    %c1_i32_186 = arith.constant 1 : i32
    %183 = arith.addf %16, %179 : vector<64x64xf32>
    %cst_187 = arith.constant 0.333333343 : f32
    %184 = vector.broadcast %cst_187 : f32 to vector<64x64xf32>
    %185 = arith.mulf %183, %184 : vector<64x64xf32>
    %186 = vector.shape_cast %185 : vector<64x64xf32> to vector<8x8x64xf32>
    %c1_188 = arith.constant 1 : index
    %c1_189 = arith.constant 1 : index
    %c0_190 = arith.constant 0 : index
    %187 = vector.load %arg16[%c1_188, %c1_189, %c0_190] : memref<10x10x64xf32, #tpu.memory_space<vmem>>, vector<8x8x64xf32>
    tpu.vector_store %arg16[%c1_188, %c1_189, %c0_190], %186 {strides = array<i32>} : memref<10x10x64xf32, #tpu.memory_space<vmem>>, vector<8x8x64xf32>,
    %c0_191 = arith.constant 0 : index
    %c0_192 = arith.constant 0 : index
    %c0_193 = arith.constant 0 : index
    %188 = tpu.strided_load %arg16[%c0_191, %c0_192, %c0_193] {strides = array<i32: 2, 2, 1>} : memref<10x10x64xf32, #tpu.memory_space<vmem>>, vector<4x4x64xf32>
    %189 = arith.truncf %188 : vector<4x4x64xf32> to vector<4x4x64xbf16>
    %190 = vector.shape_cast %189 : vector<4x4x64xbf16> to vector<16x64xbf16>
    %c0_194 = arith.constant 0 : index
    %c1_195 = arith.constant 1 : index
    %c0_196 = arith.constant 0 : index
    %191 = tpu.strided_load %arg16[%c0_194, %c1_195, %c0_196] {strides = array<i32: 2, 2, 1>} : memref<10x10x64xf32, #tpu.memory_space<vmem>>, vector<4x4x64xf32>
    %192 = arith.truncf %191 : vector<4x4x64xf32> to vector<4x4x64xbf16>
    %193 = vector.shape_cast %192 : vector<4x4x64xbf16> to vector<16x64xbf16>
    %c0_197 = arith.constant 0 : index
    %c2_198 = arith.constant 2 : index
    %c0_199 = arith.constant 0 : index
    %194 = tpu.strided_load %arg16[%c0_197, %c2_198, %c0_199] {strides = array<i32: 2, 2, 1>} : memref<10x10x64xf32, #tpu.memory_space<vmem>>, vector<4x4x64xf32>
    %195 = arith.truncf %194 : vector<4x4x64xf32> to vector<4x4x64xbf16>
    %196 = vector.shape_cast %195 : vector<4x4x64xbf16> to vector<16x64xbf16>
    %c1_200 = arith.constant 1 : index
    %c0_201 = arith.constant 0 : index
    %c0_202 = arith.constant 0 : index
    %197 = tpu.strided_load %arg16[%c1_200, %c0_201, %c0_202] {strides = array<i32: 2, 2, 1>} : memref<10x10x64xf32, #tpu.memory_space<vmem>>, vector<4x4x64xf32>
    %198 = arith.truncf %197 : vector<4x4x64xf32> to vector<4x4x64xbf16>
    %199 = vector.shape_cast %198 : vector<4x4x64xbf16> to vector<16x64xbf16>
    %c1_203 = arith.constant 1 : index
    %c1_204 = arith.constant 1 : index
    %c0_205 = arith.constant 0 : index
    %200 = tpu.strided_load %arg16[%c1_203, %c1_204, %c0_205] {strides = array<i32: 2, 2, 1>} : memref<10x10x64xf32, #tpu.memory_space<vmem>>, vector<4x4x64xf32>
    %201 = arith.truncf %200 : vector<4x4x64xf32> to vector<4x4x64xbf16>
    %202 = vector.shape_cast %201 : vector<4x4x64xbf16> to vector<16x64xbf16>
    %c1_206 = arith.constant 1 : index
    %c2_207 = arith.constant 2 : index
    %c0_208 = arith.constant 0 : index
    %203 = tpu.strided_load %arg16[%c1_206, %c2_207, %c0_208] {strides = array<i32: 2, 2, 1>} : memref<10x10x64xf32, #tpu.memory_space<vmem>>, vector<4x4x64xf32>
    %204 = arith.truncf %203 : vector<4x4x64xf32> to vector<4x4x64xbf16>
    %205 = vector.shape_cast %204 : vector<4x4x64xbf16> to vector<16x64xbf16>
    %c2_209 = arith.constant 2 : index
    %c0_210 = arith.constant 0 : index
    %c0_211 = arith.constant 0 : index
    %206 = tpu.strided_load %arg16[%c2_209, %c0_210, %c0_211] {strides = array<i32: 2, 2, 1>} : memref<10x10x64xf32, #tpu.memory_space<vmem>>, vector<4x4x64xf32>
    %207 = arith.truncf %206 : vector<4x4x64xf32> to vector<4x4x64xbf16>
    %208 = vector.shape_cast %207 : vector<4x4x64xbf16> to vector<16x64xbf16>
    %c2_212 = arith.constant 2 : index
    %c1_213 = arith.constant 1 : index
    %c0_214 = arith.constant 0 : index
    %209 = tpu.strided_load %arg16[%c2_212, %c1_213, %c0_214] {strides = array<i32: 2, 2, 1>} : memref<10x10x64xf32, #tpu.memory_space<vmem>>, vector<4x4x64xf32>
    %210 = arith.truncf %209 : vector<4x4x64xf32> to vector<4x4x64xbf16>
    %211 = vector.shape_cast %210 : vector<4x4x64xbf16> to vector<16x64xbf16>
    %c2_215 = arith.constant 2 : index
    %c2_216 = arith.constant 2 : index
    %c0_217 = arith.constant 0 : index
    %212 = tpu.strided_load %arg16[%c2_215, %c2_216, %c0_217] {strides = array<i32: 2, 2, 1>} : memref<10x10x64xf32, #tpu.memory_space<vmem>>, vector<4x4x64xf32>
    %213 = arith.truncf %212 : vector<4x4x64xf32> to vector<4x4x64xbf16>
    %214 = vector.shape_cast %213 : vector<4x4x64xbf16> to vector<16x64xbf16>
    %215 = tpu.concatenate %190, %193, %196, %199, %202, %205, %208, %211, %214 in 1 : vector<16x64xbf16>, vector<16x64xbf16>, vector<16x64xbf16>, vector<16x64xbf16>, vector<16x64xbf16>, vector<16x64xbf16>, vector<16x64xbf16>, vector<16x64xbf16>, vector<16x64xbf16> -> vector<16x576xbf16>
    %c0_218 = arith.constant 0 : index
    %c0_219 = arith.constant 0 : index
    %216 = vector.load %arg10[%c0_218, %c0_219] : memref<576x64xbf16, #tpu.memory_space<vmem>>, vector<576x64xbf16>
    %cst_220 = arith.constant dense<0.000000e+00> : vector<16x64xf32>
    %217 = tpu.matmul %215, %216, %cst_220 {dimension_numbers = #tpu.dot_dimension_numbers<[1], [0], [0], [1], [0, 0, 1, 1], [], []>} : vector<16x576xbf16>, vector<576x64xbf16>, vector<16x64xf32> -> vector<16x64xf32>
    %c0_221 = arith.constant 0 : index
    %c0_222 = arith.constant 0 : index
    %218 = vector.load %arg11[%c0_221, %c0_222] : memref<1x64xf32, #tpu.memory_space<vmem>>, vector<1x64xf32>
    %219 = vector.broadcast %218 : vector<1x64xf32> to vector<16x64xf32>
    %220 = arith.addf %217, %219 : vector<16x64xf32>
    %cst_223 = arith.constant dense<0.000000e+00> : vector<64xf32>
    %221 = vector.multi_reduction <add>, %220, %cst_223 [0] : vector<16x64xf32> to vector<64xf32>
    %222 = vector.shape_cast %221 : vector<64xf32> to vector<1x64xf32>
    %cst_224 = arith.constant 1.600000e+01 : f32
    %223 = vector.broadcast %cst_224 : f32 to vector<1x64xf32>
    %224 = arith.divf %222, %223 : vector<1x64xf32>
    %c0_225 = arith.constant 0 : index
    %c0_226 = arith.constant 0 : index
    %225 = vector.load %arg12[%c0_225, %c0_226] : memref<64x64xf32, #tpu.memory_space<vmem>>, vector<64x64xf32>
    %cst_227 = arith.constant dense<0.000000e+00> : vector<1x64xf32>
    %226 = tpu.matmul %224, %225, %cst_227 {dimension_numbers = #tpu.dot_dimension_numbers<[1], [0], [0], [1], [0, 0, 1, 1], [], []>} : vector<1x64xf32>, vector<64x64xf32>, vector<1x64xf32> -> vector<1x64xf32>
    %c0_228 = arith.constant 0 : index
    %c0_229 = arith.constant 0 : index
    %227 = vector.load %arg13[%c0_228, %c0_229] : memref<1x64xf32, #tpu.memory_space<vmem>>, vector<1x64xf32>
    %228 = arith.addf %226, %227 : vector<1x64xf32>
    %229 = arith.negf %228 : vector<1x64xf32>
    %230 = math.exp %229 : vector<1x64xf32>
    %cst_230 = arith.constant 1.000000e+00 : f32
    %231 = vector.broadcast %cst_230 : f32 to vector<1x64xf32>
    %232 = arith.addf %231, %230 : vector<1x64xf32>
    %233 = arith.divf %231, %232 : vector<1x64xf32>
    %234 = vector.broadcast %233 : vector<1x64xf32> to vector<16x64xf32>
    %235 = arith.mulf %220, %234 : vector<16x64xf32>
    %c0_231 = arith.constant 0 : index
    %c0_232 = arith.constant 0 : index
    %c0_233 = arith.constant 0 : index
    %c0_234 = arith.constant 0 : index
    %236 = vector.load %arg14[%c0_231, %c0_232, %c0_233, %c0_234] : memref<1x1x16x64xf32, #tpu.memory_space<vmem>>, vector<1x1x16x64xf32>
    %237 = vector.shape_cast %236 : vector<1x1x16x64xf32> to vector<16x64xf32>
    %238 = vector.shape_cast %235 : vector<16x64xf32> to vector<1x1x16x64xf32>
    tpu.vector_store %arg14[%c0_231, %c0_232, %c0_233, %c0_234], %238 {strides = array<i32>} : memref<1x1x16x64xf32, #tpu.memory_space<vmem>>, vector<1x1x16x64xf32>,
    return
  }
  func.func @transform_0(%arg0: i32) -> (i32, i32, i32, i32, i32) {
    %c0_i32 = arith.constant 0 : i32
    %c0_i32_0 = arith.constant 0 : i32
    %c0_i32_1 = arith.constant 0 : i32
    %c0_i32_2 = arith.constant 0 : i32
    %c0_i32_3 = arith.constant 0 : i32
    return %arg0, %c0_i32, %c0_i32_0, %c0_i32_1, %c0_i32_2 : i32, i32, i32, i32, i32
  }
  func.func @transform_1(%arg0: i32) -> (i32, i32) {
    %c0_i32 = arith.constant 0 : i32
    %c0_i32_0 = arith.constant 0 : i32
    %c0_i32_1 = arith.constant 0 : i32
    return %c0_i32, %c0_i32_0 : i32, i32
  }
  func.func @transform_2(%arg0: i32) -> (i32, i32) {
    %c0_i32 = arith.constant 0 : i32
    %c0_i32_0 = arith.constant 0 : i32
    %c0_i32_1 = arith.constant 0 : i32
    return %c0_i32, %c0_i32_0 : i32, i32
  }
  func.func @transform_3(%arg0: i32) -> (i32, i32) {
    %c0_i32 = arith.constant 0 : i32
    %c0_i32_0 = arith.constant 0 : i32
    %c0_i32_1 = arith.constant 0 : i32
    return %c0_i32, %c0_i32_0 : i32, i32
  }
  func.func @transform_4(%arg0: i32) -> (i32, i32) {
    %c0_i32 = arith.constant 0 : i32
    %c0_i32_0 = arith.constant 0 : i32
    %c0_i32_1 = arith.constant 0 : i32
    return %c0_i32, %c0_i32_0 : i32, i32
  }
  func.func @transform_5(%arg0: i32) -> (i32, i32) {
    %c0_i32 = arith.constant 0 : i32
    %c0_i32_0 = arith.constant 0 : i32
    %c0_i32_1 = arith.constant 0 : i32
    return %c0_i32, %c0_i32_0 : i32, i32
  }
  func.func @transform_6(%arg0: i32) -> (i32, i32) {
    %c0_i32 = arith.constant 0 : i32
    %c0_i32_0 = arith.constant 0 : i32
    %c0_i32_1 = arith.constant 0 : i32
    return %c0_i32, %c0_i32_0 : i32, i32
  }
  func.func @transform_7(%arg0: i32) -> (i32, i32) {
    %c0_i32 = arith.constant 0 : i32
    %c0_i32_0 = arith.constant 0 : i32
    %c0_i32_1 = arith.constant 0 : i32
    return %c0_i32, %c0_i32_0 : i32, i32
  }
  func.func @transform_8(%arg0: i32) -> (i32, i32) {
    %c0_i32 = arith.constant 0 : i32
    %c0_i32_0 = arith.constant 0 : i32
    %c0_i32_1 = arith.constant 0 : i32
    return %c0_i32, %c0_i32_0 : i32, i32
  }
  func.func @transform_9(%arg0: i32) -> (i32, i32) {
    %c0_i32 = arith.constant 0 : i32
    %c0_i32_0 = arith.constant 0 : i32
    %c0_i32_1 = arith.constant 0 : i32
    return %c0_i32, %c0_i32_0 : i32, i32
  }
  func.func @transform_10(%arg0: i32) -> (i32, i32) {
    %c0_i32 = arith.constant 0 : i32
    %c0_i32_0 = arith.constant 0 : i32
    %c0_i32_1 = arith.constant 0 : i32
    return %c0_i32, %c0_i32_0 : i32, i32
  }
  func.func @transform_11(%arg0: i32) -> (i32, i32) {
    %c0_i32 = arith.constant 0 : i32
    %c0_i32_0 = arith.constant 0 : i32
    %c0_i32_1 = arith.constant 0 : i32
    return %c0_i32, %c0_i32_0 : i32, i32
  }
  func.func @transform_12(%arg0: i32) -> (i32, i32) {
    %c0_i32 = arith.constant 0 : i32
    %c0_i32_0 = arith.constant 0 : i32
    %c0_i32_1 = arith.constant 0 : i32
    return %c0_i32, %c0_i32_0 : i32, i32
  }
  func.func @transform_13(%arg0: i32) -> (i32, i32, i32, i32) {
    %c0_i32 = arith.constant 0 : i32
    %c0_i32_0 = arith.constant 0 : i32
    %c0_i32_1 = arith.constant 0 : i32
    %c0_i32_2 = arith.constant 0 : i32
    return %arg0, %c0_i32, %c0_i32_0, %c0_i32_1 : i32, i32, i32, i32
  }
}

</mosaic_0001>

<bundles_post_ra>
// kernel: tiny_block1_forward.1
= control target key start
LH: loop header
LB: loop body
LE: loop exit
PB: predicated region body
PF: predicated region fallthrough
CT: control target
= control target key end

     0   :  { %s9356_s0 = inlined_call_operand.vmem [shape: f32[2,2,16,16,3], index: 0, kind: input, shape index: {}]   ;;  %s9357_s1 = inlined_call_operand.vmem [shape: bf16[27,32], index: 1, kind: input, shape index: {}]   ;;  %s9358_s2 = inlined_call_operand.vmem [shape: f32[1,32], index: 2, kind: input, shape index: {}]   ;;  %s9359_s3 = inlined_call_operand.vmem [shape: bf16[288,32], index: 3, kind: input, shape index: {}]   ;;  %s9360_s4 = inlined_call_operand.vmem [shape: f32[1,32], index: 4, kind: input, shape index: {}]   ;;  %s9361_s5 = inlined_call_operand.vmem [shape: f32[32,32], index: 5, kind: input, shape index: {}]   ;;  %s9362_s6 = inlined_call_operand.vmem [shape: f32[1,32], index: 6, kind: input, shape index: {}]   ;;  %s9363_s7 = inlined_call_operand.vmem [shape: bf16[288,64], index: 7, kind: input, shape index: {}]   ;;  %s9364_s8 = inlined_call_operand.vmem [shape: f32[1,64], index: 8, kind: input, shape index: {}]   ;;  %s9365_s9 = inlined_call_operand.vmem [shape: bf16[576,64], index: 9, kind: input, shape index: {}]   ;;  %s9366_s10 = inlined_call_operand.vmem [shape: f32[1,64], index: 10, kind: input, shape index: {}]   ;;  %s9367_s11 = inlined_call_operand.vmem [shape: f32[64,64], index: 11, kind: input, shape index: {}]   ;;  %s9368_s12 = inlined_call_operand.vmem [shape: f32[1,64], index: 12, kind: input, shape index: {}]   ;;  %s9369_s13 = inlined_call_operand.hbm [shape: f32[2,1,16,64], index: 13, kind: output, shape index: {}]  }
   0x1   :  { %9397 = sst [smem:[#allocation13_spill]] %s9356_s0 }
   0x2   :  { %9398 = sst [smem:[#allocation14_spill]] %s9357_s1 }
   0x3   :  { %9399 = sst [smem:[#allocation15_spill]] %s9358_s2 }
   0x4   :  { %9400 = sst [smem:[#allocation16_spill]] %s9359_s3 }
   0x5   :  { %18 = vsyncpa [#allocation5], 0 }
   0x6   :  { %20 = vsyncpa [#allocation5 + $0x1], 0  ;;  %s6959_s25 = smov 0   ;;  %s6961_s26 = smov 0  }
   0x7   :  { %s6963_s27 = smov 0   ;;  %s6965_s28 = smov 0  }
   0x8 LB: > { %s6980_s29 = sadd.s32 4294967295, %s6869_s28   ;;  %s6005_s30 = sadd.s32 4294967294, %s6869_s28   ;;  %s6869_s28 = sphi %s6965_s28, %s9439_s28   ;;  %s6865_s27 = sphi %s6963_s27, %s9438_s27   ;;  %s6861_s26 = sphi %s6961_s26, %s9437_s26   ;;  %s6857_s25 = sphi %s6959_s25, %s9436_s25  }
   0x9   : > { %s6984_s14 = sadd.s32 1, %s6869_s28   ;;  %s311_s15 = sadd.s32 1, %s6865_s27 }
   0xa   : > { %s308_s16 = ssub.s32 %s6869_s28, %s6984_s14  ;;  %p321_p0 = scmp.ne.s32.totalorder %s6865_s27, %s6861_s26 }
   0xb   : > { %p309_p1 = scmp.eq.s32.totalorder %s308_s16, 0  ;;  %p322_p2 = scmp.eq.s32.totalorder %s6980_s29, 1 }
   0xc   : > { %p327_p3 = scmp.ne.s32.totalorder %s6861_s26, %s6857_s25  ;;  %p328_p4 = scmp.eq.s32.totalorder %s6005_s30, 1 }
   0xd   : > { %s6995_s17 = scalar_select %p309_p1, %s6865_s27, %s311_s15  }
   0xe   : > { %p6997_p5 = por %p322_p2, %p321_p0  ;;  %p7001_p6 = por %p328_p4, %p327_p3 }
   0xf   : > { %p6008_p7 = scmp.ge.s32.totalorder %s6869_s28, 1  ;;  %p390_p8 = scmp.lt.s32.totalorder %s6869_s28, 3 }
  0x11   : > { %p391_p9 = pnand %p6008_p7, %p390_p8 }
  0x13   : > { %394 = sbr.rel (%p391_p9) target bundleno = 2453 (0x995), region = 72 }
  0x18   : > { %vm440_vm0 = vcmask 261120   ;;  %vm443_vm1 = vcmask 254976   ;;  %vm449_vm2 = vcmask 253952   ;;  %v9382_v0 = vmov 0.0   ;;  %p434_p10 = scmp.lt.s32.totalorder %s6980_s29, 1  ;;  %s9403_s0 = sld [smem:[#allocation13_spill]] }
  0x19   : > { %441 = vst.msk [vmem:[#allocation2] sm:$0xff] %vm440_vm0, %v9382_v0  ;;  %442 = vst.msk [vmem:[#allocation2 + $0x8] sm:$0xff] %vm440_vm0, %v9382_v0  ;;  %vm547_vm3 = vcmask 23552   ;;  %s9378_s30 = smov 3   ;;  %s9376_s15 = smov 6   ;;  %vm1731_vm4 = vcmask 1044480  }
  0x1a   : > { %444 = vst.msk [vmem:[#allocation2 + $0x10] sm:$0x3] %vm443_vm1, %v9382_v0  ;;  %448 = vst.msk [vmem:[#allocation2 + $0x1a8] sm:$0x3] %vm443_vm1, %v9382_v0  ;;  %s435_s20 = scalar_select %p434_p10, %s6980_s29, 1  ;;  %vm1732_vm5 = vcmask 1045504  }
  0x1b   : > { %446 = vst.msk [vmem:[#allocation2 + $0x198] sm:$0xff] %vm440_vm0, %v9382_v0  ;;  %447 = vst.msk [vmem:[#allocation2 + $0x1a0] sm:$0xff] %vm440_vm0, %v9382_v0  ;;  %s9374_s16 = smov 9   ;;  %s9380_s22 = smov 18   ;;  %vm1445_vm6 = vcmask 48128   ;;  %vm1478_vm7 = vcmask 72704  }
  0x1c   : > { %451 = vst.msk [vmem:[#allocation2 + $0x18] sm:$0x1] %vm449_vm2, %v9382_v0  ;;  %452 = vst.msk [vmem:[#allocation2 + $0x30] sm:$0x1] %vm449_vm2, %v9382_v0  ;;  %s6265_s21 = sshll.u32 %s435_s20, 9  ;;  %s9370_s20 = smov 12  }
  0x1d   : > { %453 = vst.msk [vmem:[#allocation2 + $0x48] sm:$0x1] %vm449_vm2, %v9382_v0  ;;  %454 = vst.msk [vmem:[#allocation2 + $0x60] sm:$0x1] %vm449_vm2, %v9382_v0  ;;  %s9404_s1 = sld [smem:[#allocation14_spill]]  ;;  %s9408_s23 = smov 12  }
  0x1e   : > { %455 = vst.msk [vmem:[#allocation2 + $0x78] sm:$0x1] %vm449_vm2, %v9382_v0  ;;  %456 = vst.msk [vmem:[#allocation2 + $0x90] sm:$0x1] %vm449_vm2, %v9382_v0  ;;  %s7094_s24 = scalar_lea.vmem %s9403_s0, %s6265_s21  ;;  %s9372_s21 = smov 15   ;;  %vm1511_vm8 = vcmask 97280  }
  0x1f   : > { %457 = vst.msk [vmem:[#allocation2 + $0xa8] sm:$0x1] %vm449_vm2, %v9382_v0  ;;  %458 = vst.msk [vmem:[#allocation2 + $0xc0] sm:$0x1] %vm449_vm2, %v9382_v0  ;;  %v514_v1 = vld [vmem:[%s7094_s24] sm:$0xff]  ;;  %v515_v2 = vld [vmem:[%s7094_s24 + $0x8] sm:$0xff] }
  0x20   : > { %459 = vst.msk [vmem:[#allocation2 + $0xd8] sm:$0x1] %vm449_vm2, %v9382_v0  ;;  %460 = vst.msk [vmem:[#allocation2 + $0xf0] sm:$0x1] %vm449_vm2, %v9382_v0  ;;  %v516_v3 = vld [vmem:[%s7094_s24 + $0x10] sm:$0xff]  ;;  %v628_v4 = vld [vmem:[#allocation2 + $0x1] sm:$0xff] }
  0x21   : > { %461 = vst.msk [vmem:[#allocation2 + $0x108] sm:$0x1] %vm449_vm2, %v9382_v0  ;;  %462 = vst.msk [vmem:[#allocation2 + $0x120] sm:$0x1] %vm449_vm2, %v9382_v0  ;;  %v629_v5 = vld [vmem:[#allocation2 + $0x9] sm:$0xff]  ;;  %v517_v9 = vld [vmem:[%s7094_s24 + $0x18] sm:$0xff] }
  0x22   : > { %463 = vst.msk [vmem:[#allocation2 + $0x138] sm:$0x1] %vm449_vm2, %v9382_v0  ;;  %464 = vst.msk [vmem:[#allocation2 + $0x150] sm:$0x1] %vm449_vm2, %v9382_v0  ;;  %v676_v6 = vld [vmem:[#allocation2 + $0x2] sm:$0xff]  ;;  %v660_v7 = vpack.c.bf16 %v629_v5, %v628_v4  ;;  %v520_v13 = vld [vmem:[%s7094_s24 + $0x30] sm:$0xff] }
  0x23   : > { %465 = vst.msk [vmem:[#allocation2 + $0x168] sm:$0x1] %vm449_vm2, %v9382_v0  ;;  %466 = vst.msk [vmem:[#allocation2 + $0x180] sm:$0x1] %vm449_vm2, %v9382_v0  ;;  %v518_v11 = vld [vmem:[%s7094_s24 + $0x20] sm:$0xff]  ;;  %v519_v12 = vld [vmem:[%s7094_s24 + $0x28] sm:$0xff] }
  0x24   : > { %469 = vst.msk [vmem:[#allocation2 + $0x29] sm:$0x1] %vm449_vm2, %v9382_v0  ;;  %470 = vst.msk [vmem:[#allocation2 + $0x41] sm:$0x1] %vm449_vm2, %v9382_v0  ;;  %1029 = vrot.lane.b32.xlu0 %v660_v7, %s9378_s30  ;;  %v521_v14 = vld [vmem:[%s7094_s24 + $0x38] sm:$0xff]  ;;  %v522_v15 = vld [vmem:[%s7094_s24 + $0x40] sm:$0xff] }
  0x25   : > { %471 = vst.msk [vmem:[#allocation2 + $0x59] sm:$0x1] %vm449_vm2, %v9382_v0  ;;  %472 = vst.msk [vmem:[#allocation2 + $0x71] sm:$0x1] %vm449_vm2, %v9382_v0  ;;  %v6031_v16 = vld [vmem:[%s7094_s24 + $0x100] sm:$0xff]  ;;  %v6032_v17 = vld [vmem:[%s7094_s24 + $0x108] sm:$0xff] }
  0x26   : > { %473 = vst.msk [vmem:[#allocation2 + $0x89] sm:$0x1] %vm449_vm2, %v9382_v0  ;;  %474 = vst.msk [vmem:[#allocation2 + $0xa1] sm:$0x1] %vm449_vm2, %v9382_v0  ;;  %v6033_v18 = vld [vmem:[%s7094_s24 + $0x110] sm:$0xff]  ;;  %v6034_v19 = vld [vmem:[%s7094_s24 + $0x118] sm:$0xff] }
  0x27   : > { %475 = vst.msk [vmem:[#allocation2 + $0xb9] sm:$0x1] %vm449_vm2, %v9382_v0  ;;  %476 = vst.msk [vmem:[#allocation2 + $0xd1] sm:$0x1] %vm449_vm2, %v9382_v0  ;;  %v523_v20 = vld [vmem:[%s7094_s24 + $0x48] sm:$0xff]  ;;  %v6035_v28 = vld [vmem:[%s7094_s24 + $0x120] sm:$0xff] }
  0x28   : > { %477 = vst.msk [vmem:[#allocation2 + $0xe9] sm:$0x1] %vm449_vm2, %v9382_v0  ;;  %478 = vst.msk [vmem:[#allocation2 + $0x101] sm:$0x1] %vm449_vm2, %v9382_v0  ;;  %2412 = vrot.lane.b32.xlu0 %v660_v7, %s9378_s30  ;;  %v6036_v29 = vld [vmem:[%s7094_s24 + $0x128] sm:$0xff]  ;;  %v6037_v37 = vld [vmem:[%s7094_s24 + $0x130] sm:$0xff] }
  0x29   : > { %479 = vst.msk [vmem:[#allocation2 + $0x119] sm:$0x1] %vm449_vm2, %v9382_v0  ;;  %480 = vst.msk [vmem:[#allocation2 + $0x131] sm:$0x1] %vm449_vm2, %v9382_v0  ;;  %v6038_v38 = vld [vmem:[%s7094_s24 + $0x138] sm:$0xff]  ;;  %v6039_v47 = vld [vmem:[%s7094_s24 + $0x140] sm:$0xff] }
  0x2a   : > { %481 = vst.msk [vmem:[#allocation2 + $0x149] sm:$0x1] %vm449_vm2, %v9382_v0  ;;  %482 = vst.msk [vmem:[#allocation2 + $0x161] sm:$0x1] %vm449_vm2, %v9382_v0  ;;  %v6040_v48 = vld [vmem:[%s7094_s24 + $0x148] sm:$0xff]  ;;  %vm1544_vm9 = vcmask 121856  }
  0x2b   : > { %483 = vst.msk [vmem:[#allocation2 + $0x179] sm:$0x1] %vm449_vm2, %v9382_v0  ;;  %484 = vst.msk [vmem:[#allocation2 + $0x191] sm:$0x1] %vm449_vm2, %v9382_v0  ;;  %vm1577_vm10 = vcmask 146432   ;;  %vm1610_vm11 = vcmask 171008  }
  0x2c   : > { %468 = vst.msk [vmem:[#allocation2 + $0x11] sm:$0x1] %vm449_vm2, %v9382_v0  ;;  %450 = vst.msk [vmem:[#allocation2] sm:$0x1] %vm449_vm2, %v9382_v0  ;;  %vm1643_vm12 = vcmask 195584   ;;  %vm1698_vm13 = vcmask 220160  }
  0x2d   : > { %467 = vst.msk [vmem:[#allocation2 + $0x198] sm:$0x1] %vm449_vm2, %v9382_v0  ;;  %485 = vst.msk [vmem:[#allocation2 + $0x1a9] sm:$0x1] %vm449_vm2, %v9382_v0  ;;  %s9415_s0 = smov 24   ;;  %s9425_s2 = sld [smem:[#allocation15_spill]] }
  0x2e   : > { %548 = vst.msk [vmem:[#allocation2 + $0x19] sm:$0xff] %vm547_vm3, %v514_v1  ;;  %549 = vst.msk [vmem:[#allocation2 + $0x21] sm:$0xff] %vm547_vm3, %v515_v2  ;;  %s9428_s3 = sld [smem:[#allocation16_spill]]  ;;  %vm486_vm14 = vcmask 523264   ;;  %vm3795_vm15 = vcmask 785408   ;;  %vm6884_vm1 = vmmov 0  }
  0x2f   : > { %550 = vst.msk [vmem:[#allocation2 + $0x31] sm:$0xff] %vm547_vm3, %v516_v3  ;;  %551 = vst.msk [vmem:[#allocation2 + $0x39] sm:$0xff] %vm547_vm3, %v517_v9  ;;  %vm493_vm2 = vcmask 516096  }
  0x30   : > { %552 = vst.msk [vmem:[#allocation2 + $0x49] sm:$0xff] %vm547_vm3, %v518_v11  ;;  %553 = vst.msk [vmem:[#allocation2 + $0x51] sm:$0xff] %vm547_vm3, %v519_v12  ;;  %v524_v12 = vld [vmem:[%s7094_s24 + $0x50] sm:$0xff] }
  0x31   : > { %554 = vst.msk [vmem:[#allocation2 + $0x61] sm:$0xff] %vm547_vm3, %v520_v13  ;;  %555 = vst.msk [vmem:[#allocation2 + $0x69] sm:$0xff] %vm547_vm3, %v521_v14 }
  0x32   : > { %556 = vst.msk [vmem:[#allocation2 + $0x79] sm:$0xff] %vm547_vm3, %v522_v15  ;;  %557 = vst.msk [vmem:[#allocation2 + $0x81] sm:$0xff] %vm547_vm3, %v523_v20  ;;  %v525_v15 = vld [vmem:[%s7094_s24 + $0x58] sm:$0xff]  ;;  %v526_v20 = vld [vmem:[%s7094_s24 + $0x60] sm:$0xff] }
  0x33   : > { %v677_v8 = vld [vmem:[#allocation2 + $0xa] sm:$0xff]  ;;  %558 = vst.msk [vmem:[#allocation2 + $0x91] sm:$0xff] %vm547_vm3, %v524_v12  ;;  %559 = vst.msk [vmem:[#allocation2 + $0x99] sm:$0xff] %vm547_vm3, %v525_v15 }
  0x34   : > { %v708_v10 = vpack.c.bf16 %v677_v8, %v676_v6  ;;  %560 = vst.msk [vmem:[#allocation2 + $0xa9] sm:$0xff] %vm547_vm3, %v526_v20 }
  0x35   : > { %v678_v21 = vld [vmem:[#allocation2 + $0x1a] sm:$0xff]  ;;  %v679_v22 = vld [vmem:[#allocation2 + $0x22] sm:$0xff] }
  0x36   : > { %1077 = vrot.lane.b32.xlu1 %v708_v10, %s9376_s15  ;;  %v630_v23 = vld [vmem:[#allocation2 + $0x19] sm:$0xff]  ;;  %v7124_v24 = vpack.c.bf16 %v679_v22, %v678_v21  ;;  %v631_v25 = vld [vmem:[#allocation2 + $0x21] sm:$0xff]  ;;  %v584_v26 = vld [vmem:[#allocation2 + $0x30] sm:$0xff] }
  0x37   : > { %v7126_v27 = vld [vmem:[#allocation2 + $0x31] sm:$0xff]  ;;  %v661_v30 = vpack.c.bf16 %v631_v25, %v630_v23  ;;  %v7130_v32 = vld [vmem:[#allocation2 + $0x39] sm:$0xff]  ;;  %v7146_v40 = vld [vmem:[#allocation2 + $0x48] sm:$0xff] }
  0x38   : > { %v585_v31 = vld [vmem:[#allocation2 + $0x38] sm:$0xff]  ;;  %v725_v36 = vld [vmem:[#allocation2 + $0x20] sm:$0xff]  ;;  %1079 = vrot.lane.b32.xlu0 %v7124_v24, %s9376_s15  ;;  %v7148_v41 = vld [vmem:[#allocation2 + $0x50] sm:$0xff] }
  0x39   : > { %v7132_v33 = vld [vmem:[#allocation2 + $0x32] sm:$0xff]  ;;  %v7134_v34 = vld [vmem:[#allocation2 + $0x3a] sm:$0xff]  ;;  %v7141_v39 = vpack.c.bf16 %v585_v31, %v584_v26  ;;  %1933 = vst.msk [vmem:[#allocation2 + $0x21] sm:$0xff] %vm547_vm3, %v6032_v17  ;;  %v7150_v42 = vld [vmem:[#allocation2 + $0x49] sm:$0xff] }
  0x3a   : > { %2460 = vrot.lane.b32.xlu1 %v708_v10, %s9376_s15  ;;  %v724_v35 = vld [vmem:[#allocation2 + $0x18] sm:$0xff]  ;;  %1934 = vst.msk [vmem:[#allocation2 + $0x31] sm:$0xff] %vm547_vm3, %v6033_v18  ;;  %1935 = vst.msk [vmem:[#allocation2 + $0x39] sm:$0xff] %vm547_vm3, %v6034_v19  ;;  %v7157_v45 = vld [vmem:[#allocation2 + $0x4a] sm:$0xff] }
  0x3b   : > { %1932 = vst.msk [vmem:[#allocation2 + $0x19] sm:$0xff] %vm547_vm3, %v6031_v16  ;;  %v7153_v43 = vpack.c.bf16 %v725_v36, %v724_v35  ;;  %v7155_v44 = vld [vmem:[#allocation2 + $0x51] sm:$0xff]  ;;  %1936 = vst.msk [vmem:[#allocation2 + $0x49] sm:$0xff] %vm547_vm3, %v6035_v28  ;;  %v7165_v49 = vld [vmem:[#allocation2 + $0x60] sm:$0xff]  ;;  %v7210_v16 = vpack.c.bf16 %v7130_v32, %v7126_v27 }
  0x3c   : > { %v7159_v46 = vld [vmem:[#allocation2 + $0x52] sm:$0xff]  ;;  %v7167_v50 = vld [vmem:[#allocation2 + $0x68] sm:$0xff]  ;;  %1127 = vrot.lane.b32.xlu0 %v7141_v39, %s9374_s16  ;;  %v7181_v57 = vld [vmem:[#allocation2 + $0x80] sm:$0xff] }
  0x3d   : > { %1937 = vst.msk [vmem:[#allocation2 + $0x51] sm:$0xff] %vm547_vm3, %v6036_v29  ;;  %v636_v51 = vld [vmem:[#allocation2 + $0x61] sm:$0xff]  ;;  %v637_v52 = vld [vmem:[#allocation2 + $0x69] sm:$0xff]  ;;  %v7179_v56 = vld [vmem:[#allocation2 + $0x78] sm:$0xff]  ;;  %v7236_v29 = vpack.c.bf16 %v7134_v34, %v7132_v33  ;;  %v6878_v34 = vmov 65535  }
  0x3e   : > { %1031 = vrot.lane.b32.xlu1 %v661_v30, %s9378_s30  ;;  %v7169_v53 = vld [vmem:[#allocation2 + $0x62] sm:$0xff]  ;;  %v7171_v54 = vld [vmem:[#allocation2 + $0x6a] sm:$0xff]  ;;  %v7177_v55 = vpack.c.bf16 %v637_v52, %v636_v51  ;;  %v638_v58 = vld [vmem:[#allocation2 + $0x79] sm:$0xff]  ;;  %v1733_v35 = vsel %vm1731_vm4, 4294967295, %v6878_v34  ;;  %v7265_v52 = vpack.c.bf16 %v7148_v41, %v7146_v40 }
  0x3f   : > { %1938 = vst.msk [vmem:[#allocation2 + $0x61] sm:$0xff] %vm547_vm3, %v6037_v37  ;;  %1939 = vst.msk [vmem:[#allocation2 + $0x69] sm:$0xff] %vm547_vm3, %v6038_v38  ;;  %v639_v59 = vld [vmem:[#allocation2 + $0x81] sm:$0xff]  ;;  %v6041_v17 = vld [vmem:[%s7094_s24 + $0x150] sm:$0xff]  ;;  %v1734_v36 = vsel %vm1732_vm5, %v1733_v35, 0 }
  0x40   : > { %v7185_v60 = vld [vmem:[#allocation2 + $0x7a] sm:$0xff]  ;;  %v7187_v61 = vld [vmem:[#allocation2 + $0x82] sm:$0xff]  ;;  %v7191_v62 = vpack.c.bf16 %v639_v59, %v638_v58  ;;  %v7223_v22 = vld [vmem:[#allocation2 + $0x90] sm:$0xff] }
  0x41   : > { %1940 = vst.msk [vmem:[#allocation2 + $0x79] sm:$0xff] %vm547_vm3, %v6039_v47  ;;  %1941 = vst.msk [vmem:[#allocation2 + $0x81] sm:$0xff] %vm547_vm3, %v6040_v48  ;;  %v2015_v1 = vld [vmem:[#allocation2 + $0x21] sm:$0xff]  ;;  %v2110_v9 = vld [vmem:[#allocation2 + $0x30] sm:$0xff] }
  0x42   : > { %1125 = vrot.lane.b32.xlu1 %v7153_v43, %s9374_s16  ;;  %v2014_v63 = vld [vmem:[#allocation2 + $0x19] sm:$0xff]  ;;  %v2063_v4 = vld [vmem:[#allocation2 + $0x22] sm:$0xff]  ;;  %v2158_v13 = vld [vmem:[#allocation2 + $0x31] sm:$0xff] }
  0x43   : > { %v2062_v2 = vld [vmem:[#allocation2 + $0x1a] sm:$0xff]  ;;  %v2045_v3 = vpack.c.bf16 %v2015_v1, %v2014_v63  ;;  %v527_v21 = vld [vmem:[%s7094_s24 + $0x68] sm:$0xff]  ;;  %v640_v23 = vld [vmem:[#allocation2 + $0x91] sm:$0xff] }
  0x44   : > { %v2108_v5 = vld [vmem:[#allocation2 + $0x18] sm:$0xff]  ;;  %v2109_v6 = vld [vmem:[#allocation2 + $0x20] sm:$0xff]  ;;  %v2093_v8 = vpack.c.bf16 %v2063_v4, %v2062_v2  ;;  %561 = vst.msk [vmem:[#allocation2 + $0xb1] sm:$0xff] %vm547_vm3, %v527_v21  ;;  %v6724_v33 = vld [vmem:[%s9404_s1 + $0x8] sm:$0x3f]  }
  0x45   : > { %v7194_v7 = vpack.c.bf16 %v2109_v6, %v2108_v5  ;;  %2414 = vrot.lane.b32.xlu0 %v2045_v3, %s9378_s30  ;;  %v2111_v10 = vld [vmem:[#allocation2 + $0x38] sm:$0xff]  ;;  %v7253_v37 = vld [vmem:[#allocation2 + $0xa8] sm:$0xff]  ;;  %v1736_v38 = vand.u32 %v6724_v33, %v1734_v36  ;;  %v2255_v1 = vld [vmem:[#allocation2 + $0x50] sm:$0xff] }
  0x46   : > { %1173 = vrot.lane.b32.xlu1 %v661_v30, %s9370_s20  ;;  %v7200_v11 = vpack.c.bf16 %v2111_v10, %v2110_v9  ;;  %v2159_v14 = vld [vmem:[#allocation2 + $0x39] sm:$0xff]  ;;  %v642_v48 = vld [vmem:[#allocation2 + $0xa9] sm:$0xff]  ;;  %v950_v9 = vpack.c.bf16 %v7155_v44, %v7150_v42  ;;  %v2303_v10 = vld [vmem:[#allocation2 + $0x51] sm:$0xff]  ;;  %v998_v42 = vpack.c.bf16 %v7159_v46, %v7157_v45 }
  0x47   : > { %v7218_v18 = vpack.c.bf16 %v2159_v14, %v2158_v13  ;;  %v6042_v19 = vld [vmem:[%s7094_s24 + $0x158] sm:$0xff]  ;;  %v2254_v58 = vld [vmem:[#allocation2 + $0x48] sm:$0xff]  ;;  %6530 = vmatprep.subr.bf16.mxu0 %v1736_v38  ;;  %v6725_v40 = vld [vmem:[%s9404_s1] sm:$0xff]  }
  0x48   : > { %v2206_v25 = vld [vmem:[#allocation2 + $0x32] sm:$0xff]  ;;  %v7238_v30 = vld [vmem:[#allocation2 + $0x9a] sm:$0xff]  ;;  %v6726_v2 = vld [vmem:[%s9404_s1 + $0x8] sm:$0x3f]   ;;  %6531 = vmatpush3.bf16.msra.mxu0 %v1736_v38  ;;  %v7283_v5 = vpack.c.bf16 %v2255_v1, %v2254_v58  ;;  %v855_v38 = vpack.c.bf16 %v7171_v54, %v7169_v53 }
  0x49   : > { %2462 = vrot.lane.b32.xlu0 %v2093_v8, %s9376_s15  ;;  %v7228_v26 = vld [vmem:[#allocation2 + $0x98] sm:$0xff]  ;;  %v6044_v4 = vld [vmem:[%s7094_s24 + $0x168] sm:$0xff]  ;;  %v3107_v41 = vand.u32 %v6726_v2, %v1734_v36  ;;  %6532 = vmatprep.subr.bf16.mxu0 %v6725_v40  ;;  %s9386_s15 = smov 24   ;;  %v6047_v54 = vld [vmem:[%s7094_s24 + $0x180] sm:$0xff] }
  0x4a   : > { %2508 = vrot.lane.b32.xlu1 %v7194_v7, %s9374_s16  ;;  %v641_v27 = vld [vmem:[#allocation2 + $0x99] sm:$0xff]  ;;  %v2302_v6 = vld [vmem:[#allocation2 + $0x49] sm:$0xff]  ;;  %v2162_v33 = vld [vmem:[#allocation2 + $0x61] sm:$0xff] }
  0x4b   : > { %v7230_v28 = vld [vmem:[#allocation2 + $0x92] sm:$0xff]  ;;  %v7241_v31 = vpack.c.bf16 %v641_v27, %v640_v23  ;;  %v7259_v51 = vld [vmem:[#allocation2 + $0xaa] sm:$0xff]  ;;  %6566 = vmatprep.subr.bf16.mxu1 %v3107_v41  ;;  %v2333_v13 = vpack.c.bf16 %v2303_v10, %v2302_v6  ;;  %v2114_v23 = vld [vmem:[#allocation2 + $0x60] sm:$0xff] }
  0x4c   : > { %1942 = vst.msk [vmem:[#allocation2 + $0x91] sm:$0xff] %vm547_vm3, %v6041_v17  ;;  %1943 = vst.msk [vmem:[#allocation2 + $0x99] sm:$0xff] %vm547_vm3, %v6042_v19  ;;  %v7257_v47 = vld [vmem:[#allocation2 + $0xb0] sm:$0xff]  ;;  %6533 = vmatpush3.bf16.msra.mxu0 %v6725_v40  ;;  %6567 = vmatpush3.bf16.msra.mxu1 %v3107_v41  ;;  %v529_v45 = vld [vmem:[%s7094_s24 + $0x78] sm:$0xff]  ;;  %v7376_v41 = vpack.c.bf16 %v7181_v57, %v7179_v56 }
  0x4d   : > { %2510 = vrot.lane.b32.xlu0 %v7200_v11, %s9374_s16  ;;  %v643_v59 = vld [vmem:[#allocation2 + $0xb1] sm:$0xff]  ;;  %s9405_s16 = smov 6   ;;  %563 = vst.msk [vmem:[#allocation2 + $0xc9] sm:$0xff] %vm547_vm3, %v529_v45  ;;  %v2163_v34 = vld [vmem:[#allocation2 + $0x69] sm:$0xff]  ;;  %v7403_v45 = vpack.c.bf16 %v7187_v61, %v7185_v60 }
  0x4e   : > { %2556 = vrot.lane.b32.xlu1 %v2045_v3, %s9370_s20  ;;  %v7267_v63 = vld [vmem:[#allocation2 + $0xb2] sm:$0xff]  ;;  %v6043_v3 = vld [vmem:[%s7094_s24 + $0x160] sm:$0xff]  ;;  %v7294_v12 = vpack.c.bf16 %v643_v59, %v642_v48  ;;  %v2350_v14 = vld [vmem:[#allocation2 + $0x4a] sm:$0xff]  ;;  %9410 = vst [vmem:[#allocation8_spill] sm:$0xff] %v7376_v41 }
  0x4f   : > { %1944 = vst.msk [vmem:[#allocation2 + $0xa9] sm:$0xff] %vm547_vm3, %v6043_v3  ;;  %1945 = vst.msk [vmem:[#allocation2 + $0xb1] sm:$0xff] %vm547_vm3, %v6044_v4  ;;  %v2351_v15 = vld [vmem:[#allocation2 + $0x52] sm:$0xff]  ;;  %v531_v36 = vld [vmem:[%s7094_s24 + $0x88] sm:$0xff] }
  0x50   : > { %v2381_v44 = vpack.c.bf16 %v2351_v15, %v2350_v14  ;;  %v528_v17 = vld [vmem:[%s7094_s24 + $0x70] sm:$0xff]  ;;  %v6046_v27 = vld [vmem:[%s7094_s24 + $0x178] sm:$0xff]  ;;  %565 = vst.msk [vmem:[#allocation2 + $0xe1] sm:$0xff] %vm547_vm3, %v531_v36  ;;  %v2210_v48 = vld [vmem:[#allocation2 + $0x62] sm:$0xff] }
  0x51   : > { %1175 = vrot.lane.b32.xlu0 %v7210_v16, %s9370_s20  ;;  %562 = vst.msk [vmem:[#allocation2 + $0xc1] sm:$0xff] %vm547_vm3, %v528_v17  ;;  %v2211_v58 = vld [vmem:[#allocation2 + $0x6a] sm:$0xff]  ;;  %v2307_v14 = vld [vmem:[#allocation2 + $0x81] sm:$0xff] }
  0x52   : > { %1221 = vrot.lane.b32.xlu1 %v7124_v24, %s9372_s21  ;;  %v2207_v24 = vld [vmem:[#allocation2 + $0x3a] sm:$0xff]  ;;  %v2239_v59 = vpack.c.bf16 %v2211_v58, %v2210_v48  ;;  %v6048_v6 = vld [vmem:[%s7094_s24 + $0x188] sm:$0xff] }
  0x53   : > { %v7248_v32 = vpack.c.bf16 %v2207_v24, %v2206_v25  ;;  %v2115_v25 = vld [vmem:[#allocation2 + $0x68] sm:$0xff]  ;;  %v6045_v24 = vld [vmem:[%s7094_s24 + $0x170] sm:$0xff] }
  0x54   : > { %v645_v19 = vld [vmem:[#allocation2 + $0xc9] sm:$0xff] }
  0x55   : > { %2558 = vrot.lane.b32.xlu0 %v7218_v18, %s9370_s20  ;;  %s9406_s20 = smov 9   ;;  %v7329_v21 = vld [vmem:[#allocation2 + $0xca] sm:$0xff] }
  0x56   : > { %2604 = vrot.lane.b32.xlu1 %v2093_v8, %s9372_s21  ;;  %v6727_v8 = vld [vmem:[%s9404_s1] sm:$0xff]   ;;  %s9434_s1 = smov 64  }
  0x57   : > { %6568 = vmatprep.subr.bf16.mxu1 %v6727_v8  ;;  %v647_v4 = vld [vmem:[#allocation2 + $0xe1] sm:$0xff] }
  0x58   : > { %6569 = vmatpush3.bf16.msra.mxu1 %v6727_v8  ;;  %v7323_v46 = vld [vmem:[#allocation2 + $0xc0] sm:$0xff]  ;;  %v2258_v8 = vld [vmem:[#allocation2 + $0x78] sm:$0xff] }
  0x59   : > { %1223 = vrot.lane.b32.xlu0 %v7236_v29, %s9372_s21  ;;  %v7327_v20 = vld [vmem:[#allocation2 + $0xc2] sm:$0xff] }
  0x5a   : > { %1269 = vrot.lane.b32.xlu1 %v7141_v39, %s9380_s22  ;;  %v7370_v53 = vld [vmem:[#allocation2 + $0xe2] sm:$0xff] }
  0x5d   : > { %2606 = vrot.lane.b32.xlu0 %v7248_v32, %s9372_s21  ;;  %s6879_s21 = smov 21  }
  0x5e   : > { %2652 = vrot.lane.b32.xlu1 %v7200_v11, %s9380_s22 }
  0x61   : > { %1271 = vrot.lane.b32.xlu0 %v7265_v52, %s9380_s22 }
  0x62   : > { %1317 = vrot.lane.b32.xlu1 %v7210_v16, %s6879_s21 }
  0x65   : > { %2654 = vrot.lane.b32.xlu0 %v7283_v5, %s9380_s22 }
  0x66   : > { %2700 = vrot.lane.b32.xlu1 %v7218_v18, %s6879_s21 }
  0x69   : > { %1319 = vrot.lane.b32.xlu0 %v950_v9, %s6879_s21 }
  0x6a   : > { %1365 = vrot.lane.b32.xlu1 %v7236_v29, %s9386_s15 }
  0x6d   : > { %2702 = vrot.lane.b32.xlu0 %v2333_v13, %s6879_s21 }
  0x6e   : > { %2748 = vrot.lane.b32.xlu1 %v7248_v32, %s9386_s15 }
  0x71   : > { %1033 = vrot.lane.b32.xlu0 %v7210_v16, %s9378_s30  ;;  %v7325_v16 = vld [vmem:[#allocation2 + $0xc8] sm:$0xff] }
  0x72   : > { %1367 = vrot.lane.b32.xlu1 %v998_v42, %s9386_s15  ;;  %1947 = vst.msk [vmem:[#allocation2 + $0xc9] sm:$0xff] %vm547_vm3, %v6046_v27 }
  0x75   : > { %2416 = vrot.lane.b32.xlu0 %v7218_v18, %s9378_s30  ;;  %v644_v18 = vld [vmem:[#allocation2 + $0xc1] sm:$0xff] }
  0x76   : > { %2750 = vrot.lane.b32.xlu1 %v2381_v44, %s9386_s15  ;;  %1946 = vst.msk [vmem:[#allocation2 + $0xc1] sm:$0xff] %vm547_vm3, %v6045_v24  ;;  %v7347_v35 = vpack.c.bf16 %v645_v19, %v644_v18  ;;  %v2354_v19 = vld [vmem:[#allocation2 + $0x7a] sm:$0xff] }
  0x79   : > { %1035 = vrot.lane.b32.xlu0 %v950_v9, %s9378_s30 }
  0x7a   : > { %1081 = vrot.lane.b32.xlu1 %v7236_v29, %s9405_s16  ;;  %v7338_v29 = vpack.c.bf16 %v7167_v50, %v7165_v49  ;;  %v2191_v49 = vpack.c.bf16 %v2163_v34, %v2162_v33  ;;  %v530_v50 = vld [vmem:[%s7094_s24 + $0x80] sm:$0xff]  ;;  %v533_v34 = vld [vmem:[%s7094_s24 + $0x98] sm:$0xff] }
  0x7b   : > { %564 = vst.msk [vmem:[#allocation2 + $0xd9] sm:$0xff] %vm547_vm3, %v530_v50  ;;  %567 = vst.msk [vmem:[#allocation2 + $0xf9] sm:$0xff] %vm547_vm3, %v533_v34 }
  0x7c   : > { %9407 = vst [vmem:[#allocation7_spill] sm:$0xff] %v7338_v29 }
  0x7d   : > { %2418 = vrot.lane.b32.xlu0 %v2333_v13, %s9378_s30  ;;  %s9409_s30 = smov 15  }
  0x7e   : > { %2464 = vrot.lane.b32.xlu1 %v7248_v32, %s9405_s16  ;;  %v2143_v32 = vpack.c.bf16 %v2115_v25, %v2114_v23  ;;  %v2355_v23 = vld [vmem:[#allocation2 + $0x82] sm:$0xff] }
  0x7f   : > { %v7412_v24 = vpack.c.bf16 %v2355_v23, %v2354_v19  ;;  %v2118_v19 = vld [vmem:[#allocation2 + $0x90] sm:$0xff]  ;;  %v2119_v23 = vld [vmem:[#allocation2 + $0x98] sm:$0xff] }
  0x81   : > { %1083 = vrot.lane.b32.xlu0 %v998_v42, %s9405_s16 }
  0x82   : > { %1129 = vrot.lane.b32.xlu1 %v7265_v52, %s9406_s20  ;;  %v7363_v1 = vld [vmem:[#allocation2 + $0xd8] sm:$0xff]  ;;  %v7365_v2 = vld [vmem:[#allocation2 + $0xe0] sm:$0xff] }
  0x83   : > { %v646_v3 = vld [vmem:[#allocation2 + $0xd9] sm:$0xff] }
  0x84   : > { %v7368_v40 = vld [vmem:[#allocation2 + $0xda] sm:$0xff]  ;;  %v7391_v15 = vpack.c.bf16 %v647_v4, %v646_v3 }
  0x85   : > { %2466 = vrot.lane.b32.xlu0 %v2381_v44, %s9405_s16  ;;  %1948 = vst.msk [vmem:[#allocation2 + $0xd9] sm:$0xff] %vm547_vm3, %v6047_v54  ;;  %1949 = vst.msk [vmem:[#allocation2 + $0xe1] sm:$0xff] %vm547_vm3, %v6048_v6  ;;  %v649_v4 = vld [vmem:[#allocation2 + $0xf9] sm:$0xff] }
  0x86   : > { %2512 = vrot.lane.b32.xlu1 %v7283_v5, %s9406_s20  ;;  %v7458_v6 = vld [vmem:[#allocation2 + $0xfa] sm:$0xff] }
  0x87   : > { %9413 = vst [vmem:[#allocation10_spill] sm:$0xff] %v7458_v6  ;;  %v2167_v6 = vld [vmem:[#allocation2 + $0x99] sm:$0xff] }
  0x89   : > { %1131 = vrot.lane.b32.xlu0 %v7338_v29, %s9406_s20 }
  0x8a   : > { %1177 = vrot.lane.b32.xlu1 %v950_v9, %s9408_s23  ;;  %v2259_v9 = vld [vmem:[#allocation2 + $0x80] sm:$0xff] }
  0x8b   : > { %v2287_v10 = vpack.c.bf16 %v2259_v9, %v2258_v8  ;;  %v6049_v8 = vld [vmem:[%s7094_s24 + $0x190] sm:$0xff]  ;;  %v6050_v9 = vld [vmem:[%s7094_s24 + $0x198] sm:$0xff] }
  0x8d   : > { %2514 = vrot.lane.b32.xlu0 %v2143_v32, %s9406_s20 }
  0x8e   : > { %2560 = vrot.lane.b32.xlu1 %v2333_v13, %s9408_s23  ;;  %v2306_v13 = vld [vmem:[#allocation2 + $0x79] sm:$0xff] }
  0x91   : > { %1179 = vrot.lane.b32.xlu0 %v7177_v55, %s9408_s23 }
  0x92   : > { %1225 = vrot.lane.b32.xlu1 %v998_v42, %s9409_s30 }
  0x95   : > { %2562 = vrot.lane.b32.xlu0 %v2191_v49, %s9408_s23 }
  0x96   : > { %2608 = vrot.lane.b32.xlu1 %v2381_v44, %s9409_s30  ;;  %v7387_v56 = vpop.permute.xlu0 %1029  ;;  %v2335_v44 = vpack.c.bf16 %v2307_v14, %v2306_v13  ;;  %v7467_v13 = vpack.c.bf16 %v7228_v26, %v7223_v22  ;;  %v581_v22 = vld [vmem:[#allocation2 + $0x8] sm:$0xff]  ;;  %v580_v26 = vld [vmem:[#allocation2] sm:$0xff] }
  0x99   : > { %1227 = vrot.lane.b32.xlu0 %v855_v38, %s9409_s30 }
  0x9a   : > { %1273 = vrot.lane.b32.xlu1 %v7338_v29, %s9380_s22  ;;  %v7396_v42 = vpop.permute.xlu0 %2412  ;;  %v535_v29 = vld [vmem:[%s7094_s24 + $0xa8] sm:$0xff] }
  0x9b   : > { %569 = vst.msk [vmem:[#allocation2 + $0x111] sm:$0xff] %vm547_vm3, %v535_v29  ;;  %v2214_v29 = vld [vmem:[#allocation2 + $0x92] sm:$0xff] }
  0x9d   : > { %2610 = vrot.lane.b32.xlu0 %v2239_v59, %s9409_s30 }
  0x9e   : > { %2656 = vrot.lane.b32.xlu1 %v2143_v32, %s9380_s22 }
  0xa1   : > { %1275 = vrot.lane.b32.xlu0 %v7376_v41, %s9380_s22 }
  0xa2   : > { %1321 = vrot.lane.b32.xlu1 %v7177_v55, %s6879_s21 }
  0xa5   : > { %2658 = vrot.lane.b32.xlu0 %v2287_v10, %s9380_s22  ;;  %s9411_s22 = smov 3  }
  0xa6   : > { %2704 = vrot.lane.b32.xlu1 %v2191_v49, %s6879_s21 }
  0xa8   : > { %v7389_v57 = vpop.permute.xlu1 %1077 }
  0xa9   : > { %1323 = vrot.lane.b32.xlu0 %v7191_v62, %s6879_s21 }
  0xaa   : > { %1369 = vrot.lane.b32.xlu1 %v855_v38, %s9386_s15  ;;  %v7406_v18 = vpop.permute.xlu0 %1079 }
  0xac   : > { %v7398_v17 = vpop.permute.xlu1 %2460 }
  0xad   : > { %2706 = vrot.lane.b32.xlu0 %v2335_v44, %s6879_s21 }
  0xae   : > { %2752 = vrot.lane.b32.xlu1 %v2239_v59, %s9386_s15  ;;  %v7416_v60 = vpop.permute.xlu0 %1127 }
  0xb0   : > { %v7408_v25 = vpop.permute.xlu1 %1031 }
  0xb1   : > { %1037 = vrot.lane.b32.xlu0 %v7177_v55, %s9411_s22  ;;  %v532_v55 = vld [vmem:[%s7094_s24 + $0x90] sm:$0xff] }
  0xb2   : > { %1371 = vrot.lane.b32.xlu1 %v7403_v45, %s9386_s15  ;;  %566 = vst.msk [vmem:[#allocation2 + $0xf1] sm:$0xff] %vm547_vm3, %v532_v55 }
  0xb4   : > { %v7418_v61 = vpop.permute.xlu1 %1125 }
  0xb5   : > { %2420 = vrot.lane.b32.xlu0 %v2191_v49, %s9411_s22 }
  0xb6   : > { %2754 = vrot.lane.b32.xlu1 %v7412_v24, %s9386_s15  ;;  %s9414_s15 = smov 18  }
  0xb7   : > { %v7425_v32 = vpop.permute.xlu0 %2414 }
  0xb8   : > { %v7423_v27 = vpop.permute.xlu1 %1173 }
  0xb9   : > { %1039 = vrot.lane.b32.xlu0 %v7191_v62, %s9411_s22  ;;  %v7450_v48 = vld [vmem:[#allocation2 + $0xf0] sm:$0xff]  ;;  %v7452_v58 = vld [vmem:[#allocation2 + $0xf8] sm:$0xff] }
  0xba   : > { %1085 = vrot.lane.b32.xlu1 %v855_v38, %s9405_s16  ;;  %v7456_v54 = vld [vmem:[#allocation2 + $0xf2] sm:$0xff] }
  0xbb   : > { %v7434_v50 = vpop.permute.xlu0 %2462  ;;  %9412 = vst [vmem:[#allocation9_spill] sm:$0xff] %v7456_v54  ;;  %1951 = vst.msk [vmem:[#allocation2 + $0xf9] sm:$0xff] %vm547_vm3, %v6050_v9  ;;  %v612_v9 = vpack.c.bf16 %v581_v22, %v580_v26  ;;  %v534_v22 = vld [vmem:[%s7094_s24 + $0xa0] sm:$0xff] }
  0xbc   : > { %v7430_v33 = vpop.permute.xlu1 %2508  ;;  %568 = vst.msk [vmem:[#allocation2 + $0x109] sm:$0xff] %vm547_vm3, %v534_v22 }
  0xbd   : > { %2422 = vrot.lane.b32.xlu0 %v2335_v44, %s9411_s22 }
  0xbe   : > { %2468 = vrot.lane.b32.xlu1 %v2239_v59, %s9405_s16  ;;  %v648_v59 = vld [vmem:[#allocation2 + $0xf1] sm:$0xff] }
  0xbf   : > { %v7442_v36 = vpop.permute.xlu0 %2510  ;;  %1950 = vst.msk [vmem:[#allocation2 + $0xf1] sm:$0xff] %vm547_vm3, %v6049_v8  ;;  %v7485_v54 = vpack.c.bf16 %v649_v4, %v648_v59  ;;  %v2215_v4 = vld [vmem:[#allocation2 + $0x9a] sm:$0xff] }
  0xc0   : > { %v7440_v49 = vpop.permute.xlu1 %2556 }
  0xc1   : > { %1087 = vrot.lane.b32.xlu0 %v7403_v45, %s9405_s16 }
  0xc2   : > { %1133 = vrot.lane.b32.xlu1 %v7376_v41, %s9406_s20  ;;  %v2166_v41 = vld [vmem:[#allocation2 + $0x91] sm:$0xff] }
  0xc3   : > { %v7454_v3 = vpop.permute.xlu0 %1175 }
  0xc4   : > { %v7448_v38 = vpop.permute.xlu1 %1221 }
  0xc5   : > { %2470 = vrot.lane.b32.xlu0 %v7412_v24, %s9405_s16 }
  0xc6   : > { %2516 = vrot.lane.b32.xlu1 %v2287_v10, %s9406_s20  ;;  %v2145_v10 = vpack.c.bf16 %v2119_v23, %v2118_v19  ;;  %v7491_v19 = vpack.c.bf16 %v2167_v6, %v2166_v41 }
  0xc7   : > { %v7473_v55 = vpop.permute.xlu0 %2558 }
  0xc8   : > { %v7471_v14 = vpop.permute.xlu1 %2604 }
  0xc9   : > { %1135 = vrot.lane.b32.xlu0 %v7467_v13, %s9406_s20 }
  0xca   : > { %1181 = vrot.lane.b32.xlu1 %v7191_v62, %s9408_s23 }
  0xcb   : > { %v7479_v8 = vpop.permute.xlu0 %1223 }
  0xcc   : > { %v1270_v34 = vpop.permute.xlu1 %1269 }
  0xcd   : > { %2518 = vrot.lane.b32.xlu0 %v2145_v10, %s9406_s20 }
  0xce   : > { %2564 = vrot.lane.b32.xlu1 %v2335_v44, %s9408_s23  ;;  %v1399_v44 = vsel %vm547_vm3, %v612_v9, %v7387_v56  ;;  %v7509_v56 = vpack.c.bf16 %v7238_v30, %v7230_v28  ;;  %v1402_v28 = vsel %vm547_vm3, %v7153_v43, %v7408_v25 }
  0xcf   : > { %v7483_v62 = vpop.permute.xlu0 %2606  ;;  %v1447_v41 = vsel %vm1445_vm6, %v1399_v44, %v7389_v57 }
  0xd0   : > { %v2653_v0 = vpop.permute.xlu1 %2652  ;;  %v1480_v59 = vsel %vm1478_vm7, %v1447_v41, %v7418_v61  ;;  %v7541_v41 = vld [vmem:[#allocation2 + $0x110] sm:$0xff] }
  0xd1   : > { %1183 = vrot.lane.b32.xlu0 %v7241_v31, %s9408_s23  ;;  %v1513_v57 = vsel %vm1511_vm8, %v1480_v59, %v7423_v27  ;;  %v7529_v27 = vpack.c.bf16 %v2215_v4, %v2214_v29  ;;  %v7547_v59 = vld [vmem:[#allocation2 + $0x10a] sm:$0xff]  ;;  %v6051_v29 = vld [vmem:[%s7094_s24 + $0x1a0] sm:$0xff]  ;;  %v7557_v4 = vpack.c.bf16 %v7257_v47, %v7253_v37  ;;  %v2785_v47 = vsel %vm547_vm3, %v7194_v7, %v7425_v32 }
  0xd2   : > { %1229 = vrot.lane.b32.xlu1 %v7403_v45, %s9409_s30  ;;  %v2782_v45 = vsel %vm547_vm3, %v612_v9, %v7396_v42  ;;  %v1546_v30 = vsel %vm1544_vm9, %v1513_v57, %v7448_v38  ;;  %v7534_v9 = vld [vmem:[#allocation2 + $0x108] sm:$0xff] }
  0xd3   : > { %v7496_v26 = vpop.permute.xlu0 %1271  ;;  %v2829_v42 = vsel %vm1445_vm6, %v2782_v45, %v7398_v17  ;;  %v1579_v61 = vsel %vm1577_vm10, %v1546_v30, %v1270_v34  ;;  %v1449_v17 = vsel %vm1445_vm6, %v1402_v28, %v7406_v18  ;;  %v650_v45 = vld [vmem:[#allocation2 + $0x109] sm:$0xff]  ;;  %v7549_v18 = vld [vmem:[#allocation2 + $0x112] sm:$0xff] }
  0xd4   : > { %v1318_v23 = vpop.permute.xlu1 %1317  ;;  %v2861_v43 = vsel %vm1478_vm7, %v2829_v42, %v7430_v33  ;;  %v651_v33 = vld [vmem:[#allocation2 + $0x111] sm:$0xff]  ;;  %v6052_v57 = vld [vmem:[%s7094_s24 + $0x1a8] sm:$0xff]  ;;  %1952 = vst.msk [vmem:[#allocation2 + $0x109] sm:$0xff] %vm547_vm3, %v6051_v29 }
  0xd5   : > { %2566 = vrot.lane.b32.xlu0 %v7491_v19, %s9408_s23  ;;  %v1612_v25 = vsel %vm1610_vm11, %v1579_v61, %v1318_v23  ;;  %v2893_v34 = vsel %vm1511_vm8, %v2861_v43, %v7440_v49  ;;  %v2262_v30 = vld [vmem:[#allocation2 + $0xa8] sm:$0xff]  ;;  %v2263_v42 = vld [vmem:[#allocation2 + $0xb0] sm:$0xff]  ;;  %1953 = vst.msk [vmem:[#allocation2 + $0x111] sm:$0xff] %vm547_vm3, %v6052_v57 }
  0xd6   : > { %2612 = vrot.lane.b32.xlu1 %v7412_v24, %s9409_s30  ;;  %v2925_v23 = vsel %vm1544_vm9, %v2893_v34, %v7471_v14  ;;  %v1482_v14 = vsel %vm1478_vm7, %v1449_v17, %v7416_v60  ;;  %v7582_v43 = vpack.c.bf16 %v2263_v42, %v2262_v30  ;;  %v2310_v34 = vld [vmem:[#allocation2 + $0xa9] sm:$0xff]  ;;  %v2359_v57 = vld [vmem:[#allocation2 + $0xb2] sm:$0xff] }
  0xd7   : > { %v2655_v6 = vpop.permute.xlu0 %2654  ;;  %v2957_v49 = vsel %vm1577_vm10, %v2925_v23, %v2653_v0  ;;  %v1515_v0 = vsel %vm1511_vm8, %v1482_v14, %v7454_v3 }
  0xd8   : > { %v2701_v24 = vpop.permute.xlu1 %2700  ;;  %v1548_v60 = vsel %vm1544_vm9, %v1515_v0, %v7479_v8  ;;  %v536_v0 = vld [vmem:[%s7094_s24 + $0xb0] sm:$0xff] }
  0xd9   : > { %1231 = vrot.lane.b32.xlu0 %v7509_v56, %s9409_s30  ;;  %v1581_v3 = vsel %vm1577_vm10, %v1548_v60, %v7496_v26  ;;  %570 = vst.msk [vmem:[#allocation2 + $0x121] sm:$0xff] %vm547_vm3, %v536_v0 }
  0xda   : > { %1277 = vrot.lane.b32.xlu1 %v7467_v13, %s9414_s15 }
  0xdb   : > { %v1320_v44 = vpop.permute.xlu0 %1319 }
  0xdc   : > { %v1366_v38 = vpop.permute.xlu1 %1365  ;;  %v1614_v32 = vsel %vm1610_vm11, %v1581_v3, %v1320_v44  ;;  %v2311_v44 = vld [vmem:[#allocation2 + $0xb1] sm:$0xff] }
  0xdd   : > { %v1645_v22 = vsel %vm1643_vm12, %v1612_v25, %v1366_v38  ;;  %2614 = vrot.lane.b32.xlu0 %v7529_v27, %s9409_s30 }
  0xde   : > { %2660 = vrot.lane.b32.xlu1 %v2145_v10, %s9414_s15  ;;  %6534 = vmatprep.mubr.msk.bf16.mxu0 %vm1698_vm13, %v1645_v22  ;;  %v2989_v10 = vsel %vm1610_vm11, %v2957_v49, %v2701_v24  ;;  %v2831_v24 = vsel %vm1445_vm6, %v2785_v47, %v7434_v50 }
  0xdf   : > { %v2703_v61 = vpop.permute.xlu0 %2702  ;;  %v2863_v7 = vsel %vm1478_vm7, %v2831_v24, %v7442_v36 }
  0xe0   : > { %v2749_v28 = vpop.permute.xlu1 %2748  ;;  %v2895_v25 = vsel %vm1511_vm8, %v2863_v7, %v7473_v55  ;;  %v7661_v60 = vld [vmem:[#allocation2 + $0x120] sm:$0xff] }
  0xe1   : > { %v3021_v37 = vsel %vm1643_vm12, %v2989_v10, %v2749_v28  ;;  %1279 = vrot.lane.b32.xlu0 %v7557_v4, %s9414_s15  ;;  %v2927_v26 = vsel %vm1544_vm9, %v2895_v25, %v7483_v62  ;;  %v7604_v62 = vpack.c.bf16 %v651_v33, %v650_v45  ;;  %v1002_v45 = vpack.c.bf16 %v7267_v63, %v7259_v51  ;;  %v2358_v33 = vld [vmem:[#allocation2 + $0xaa] sm:$0xff]  ;;  %v652_v3 = vld [vmem:[#allocation2 + $0x121] sm:$0xff] }
  0xe2   : > { %1325 = vrot.lane.b32.xlu1 %v7241_v31, %s6879_s21  ;;  %6570 = vmatprep.mubr.msk.bf16.mxu1 %vm1698_vm13, %v3021_v37  ;;  %v2959_v36 = vsel %vm1577_vm10, %v2927_v26, %v2655_v6  ;;  %v2337_v6 = vpack.c.bf16 %v2311_v44, %v2310_v34  ;;  %v7625_v28 = vpack.c.bf16 %v2359_v57, %v2358_v33  ;;  %v6053_v25 = vld [vmem:[%s7094_s24 + $0x1b0] sm:$0xff]  ;;  %v2170_v33 = vld [vmem:[#allocation2 + $0xc1] sm:$0xff] }
  0xe3   : > { %v7589_v38 = vpop.permute.xlu0 %1033  ;;  %v2991_v17 = vsel %vm1610_vm11, %v2959_v36, %v2703_v61  ;;  %v537_v61 = vld [vmem:[%s7094_s24 + $0xb8] sm:$0xff]  ;;  %v7679_v26 = vpack.c.bf16 %v7325_v16, %v7323_v46  ;;  %v2171_v57 = vld [vmem:[#allocation2 + $0xc9] sm:$0xff] }
  0xe4   : > { %v1368_v8 = vpop.permute.xlu1 %1367  ;;  %571 = vst.msk [vmem:[#allocation2 + $0x129] sm:$0xff] %vm547_vm3, %v537_v61 }
  0xe5   : > { %v1647_v50 = vsel %vm1643_vm12, %v1614_v32, %v1368_v8  ;;  %2662 = vrot.lane.b32.xlu0 %v7582_v43, %s9414_s15 }
  0xe6   : > { %2708 = vrot.lane.b32.xlu1 %v7491_v19, %s6879_s21  ;;  %6535 = vmatmul.mubr.msk.bf16.vlgmr.msra.gmra.mxu0 %vm1698_vm13, %v1647_v50  ;;  %v6054_v50 = vld [vmem:[%s7094_s24 + $0x1b8] sm:$0xff] }
  0xe7   : > { %v7601_v22 = vpop.permute.xlu0 %2416 }
  0xe8   : > { %v2751_v55 = vpop.permute.xlu1 %2750 }
  0xe9   : > { %v3023_v23 = vsel %vm1643_vm12, %v2991_v17, %v2751_v55  ;;  %1327 = vrot.lane.b32.xlu0 %v7294_v12, %s6879_s21  ;;  %v2122_v17 = vld [vmem:[#allocation2 + $0xc0] sm:$0xff]  ;;  %v2123_v55 = vld [vmem:[#allocation2 + $0xc8] sm:$0xff] }
  0xea   : > { %1373 = vrot.lane.b32.xlu1 %v7509_v56, %s9415_s0  ;;  %6571 = vmatmul.mubr.msk.bf16.vlgmr.msra.gmra.mxu1 %vm1698_vm13, %v3023_v23  ;;  %v2147_v44 = vpack.c.bf16 %v2123_v55, %v2122_v17  ;;  %v1405_v55 = vsel %vm547_vm3, %v7141_v39, %v7589_v38  ;;  %v2218_v39 = vld [vmem:[#allocation2 + $0xc2] sm:$0xff]  ;;  %v2219_v38 = vld [vmem:[#allocation2 + $0xca] sm:$0xff] }
  0xeb   : > { %v7613_v49 = vpop.permute.xlu0 %1035  ;;  %v7663_v24 = vld [vmem:[#allocation2 + $0x128] sm:$0xff] }
  0xec   : > { %v7611_v29 = vpop.permute.xlu1 %1081  ;;  %v7667_v32 = vld [vmem:[#allocation2 + $0x122] sm:$0xff]  ;;  %v7669_v8 = vld [vmem:[#allocation2 + $0x12a] sm:$0xff] }
  0xed   : > { %2710 = vrot.lane.b32.xlu0 %v2337_v6, %s6879_s21  ;;  %1954 = vst.msk [vmem:[#allocation2 + $0x121] sm:$0xff] %vm547_vm3, %v6053_v25 }
  0xee   : > { %2756 = vrot.lane.b32.xlu1 %v7529_v27, %s9415_s0 }
  0xef   : > { %v7622_v10 = vpop.permute.xlu0 %2418 }
  0xf0   : > { %v7620_v14 = vpop.permute.xlu1 %2464 }
  0xf1   : > { %1041 = vrot.lane.b32.xlu0 %v7241_v31, %s9411_s22 }
  0xf2   : > { %1375 = vrot.lane.b32.xlu1 %v1002_v45, %s9415_s0 }
  0xf3   : > { %v7631_v51 = vpop.permute.xlu0 %1083 }
  0xf4   : > { %v7629_v30 = vpop.permute.xlu1 %1129 }
  0xf5   : > { %2424 = vrot.lane.b32.xlu0 %v7491_v19, %s9411_s22 }
  0xf6   : > { %2758 = vrot.lane.b32.xlu1 %v7625_v28, %s9415_s0 }
  0xf7   : > { %v7639_v42 = vpop.permute.xlu0 %2466 }
  0xf8   : > { %v7637_v63 = vpop.permute.xlu1 %2512 }
  0xf9   : > { %1043 = vrot.lane.b32.xlu0 %v7294_v12, %s9411_s22 }
  0xfa   : > { %1089 = vrot.lane.b32.xlu1 %v7509_v56, %s9405_s16 }
  0xfb   : > { %v7647_v37 = vpop.permute.xlu0 %1131 }
  0xfc   : > { %v1178_v31 = vpop.permute.xlu1 %1177 }
  0xfd   : > { %2426 = vrot.lane.b32.xlu0 %v2337_v6, %s9411_s22 }
  0xfe   : > { %2472 = vrot.lane.b32.xlu1 %v7529_v27, %s9405_s16  ;;  %v653_v27 = vld [vmem:[#allocation2 + $0x129] sm:$0xff] }
  0xff   : > { %v7656_v56 = vpop.permute.xlu0 %2514  ;;  %1955 = vst.msk [vmem:[#allocation2 + $0x129] sm:$0xff] %vm547_vm3, %v6054_v50  ;;  %v7695_v61 = vpack.c.bf16 %v653_v27, %v652_v3  ;;  %v538_v50 = vld [vmem:[%s7094_s24 + $0xc0] sm:$0xff]  ;;  %v7717_v3 = vpack.c.bf16 %v7329_v21, %v7327_v20 }
 0x100   : > { %v7654_v19 = vpop.permute.xlu1 %2560  ;;  %572 = vst.msk [vmem:[#allocation2 + $0x139] sm:$0xff] %vm547_vm3, %v538_v50 }
 0x101   : > { %1091 = vrot.lane.b32.xlu0 %v1002_v45, %s9405_s16 }
 0x102   : > { %1137 = vrot.lane.b32.xlu1 %v7557_v4, %s9406_s20 }
 0x103   : > { %v7665_v7 = vpop.permute.xlu0 %1179 }
 0x104   : > { %v1226_v47 = vpop.permute.xlu1 %1225 }
 0x105   : > { %2474 = vrot.lane.b32.xlu0 %v7625_v28, %s9405_s16 }
 0x106   : > { %2520 = vrot.lane.b32.xlu1 %v7582_v43, %s9406_s20 }
 0x107   : > { %v7683_v34 = vpop.permute.xlu0 %2562 }
 0x108   : > { %v2609_v36 = vpop.permute.xlu1 %2608 }
 0x109   : > { %1139 = vrot.lane.b32.xlu0 %v7679_v26, %s9406_s20 }
 0x10a   : > { %1185 = vrot.lane.b32.xlu1 %v7294_v12, %s9408_s23  ;;  %v7700_v12 = vpack.c.bf16 %v2171_v57, %v2170_v33 }
 0x10b   : > { %v7689_v16 = vpop.permute.xlu0 %1227 }
 0x10c   : > { %v1274_v46 = vpop.permute.xlu1 %1273 }
 0x10d   : > { %2522 = vrot.lane.b32.xlu0 %v2147_v44, %s9406_s20 }
 0x10e   : > { %2568 = vrot.lane.b32.xlu1 %v2337_v6, %s9408_s23  ;;  %v539_v6 = vld [vmem:[%s7094_s24 + $0xc8] sm:$0xff] }
 0x10f   : > { %v7693_v0 = vpop.permute.xlu0 %2610  ;;  %573 = vst.msk [vmem:[#allocation2 + $0x141] sm:$0xff] %vm547_vm3, %v539_v6 }
 0x110   : > { %v2657_v23 = vpop.permute.xlu1 %2656 }
 0x111   : > { %1187 = vrot.lane.b32.xlu0 %v7347_v35, %s9408_s23 }
 0x112   : > { %1233 = vrot.lane.b32.xlu1 %v1002_v45, %s9409_s30  ;;  %v1451_v45 = vsel %vm1445_vm6, %v1405_v55, %v7611_v29  ;;  %v2788_v29 = vsel %vm547_vm3, %v7200_v11, %v7601_v22 }
 0x113   : > { %v1276_v17 = vpop.permute.xlu0 %1275  ;;  %v1484_v27 = vsel %vm1478_vm7, %v1451_v45, %v7629_v30  ;;  %v2833_v20 = vsel %vm1445_vm6, %v2788_v29, %v7620_v14  ;;  %v7733_v30 = vpack.c.bf16 %v2219_v38, %v2218_v39  ;;  %v654_v45 = vld [vmem:[#allocation2 + $0x139] sm:$0xff] }
 0x114   : > { %v1322_v25 = vpop.permute.xlu1 %1321  ;;  %v6055_v38 = vld [vmem:[%s7094_s24 + $0x1c0] sm:$0xff] }
 0x115   : > { %2570 = vrot.lane.b32.xlu0 %v7700_v12, %s9408_s23 }
 0x116   : > { %2616 = vrot.lane.b32.xlu1 %v7625_v28, %s9409_s30  ;;  %v1517_v28 = vsel %vm1511_vm8, %v1484_v27, %v1178_v31  ;;  %v2865_v31 = vsel %vm1478_vm7, %v2833_v20, %v7637_v63  ;;  %v7743_v55 = vld [vmem:[#allocation2 + $0x140] sm:$0xff]  ;;  %v1408_v63 = vsel %vm547_vm3, %v7265_v52, %v7613_v49  ;;  %v7763_v52 = vpack.c.bf16 %v7365_v2, %v7363_v1  ;;  %v6056_v49 = vld [vmem:[%s7094_s24 + $0x1c8] sm:$0xff]  ;;  %v2266_v20 = vld [vmem:[#allocation2 + $0xd8] sm:$0xff] }
 0x117   : > { %v2659_v57 = vpop.permute.xlu0 %2658  ;;  %v1550_v50 = vsel %vm1544_vm9, %v1517_v28, %v1226_v47  ;;  %v7738_v47 = vld [vmem:[#allocation2 + $0x138] sm:$0xff]  ;;  %v2897_v6 = vsel %vm1511_vm8, %v2865_v31, %v7654_v19  ;;  %v655_v27 = vld [vmem:[#allocation2 + $0x141] sm:$0xff]  ;;  %v1453_v28 = vsel %vm1445_vm6, %v1408_v63, %v7631_v51  ;;  %v2791_v2 = vsel %vm547_vm3, %v7283_v5, %v7622_v10 }
 0x118   : > { %v2705_v33 = vpop.permute.xlu1 %2704  ;;  %v1583_v21 = vsel %vm1577_vm10, %v1550_v50, %v1274_v46  ;;  %v7751_v39 = vld [vmem:[#allocation2 + $0x13a] sm:$0xff]  ;;  %v7753_v19 = vld [vmem:[#allocation2 + $0x142] sm:$0xff]  ;;  %9416 = vst [vmem:[#allocation11_spill] sm:$0xff] %v7763_v52 }
 0x119   : > { %1235 = vrot.lane.b32.xlu0 %v7717_v3, %s9409_s30  ;;  %v1616_v11 = vsel %vm1610_vm11, %v1583_v21, %v1322_v25  ;;  %v2929_v25 = vsel %vm1544_vm9, %v2897_v6, %v2609_v36  ;;  %1956 = vst.msk [vmem:[#allocation2 + $0x139] sm:$0xff] %vm547_vm3, %v6055_v38  ;;  %v1486_v36 = vsel %vm1478_vm7, %v1453_v28, %v7647_v37  ;;  %v2267_v51 = vld [vmem:[#allocation2 + $0xe0] sm:$0xff]  ;;  %1957 = vst.msk [vmem:[#allocation2 + $0x141] sm:$0xff] %vm547_vm3, %v6056_v49 }
 0x11a   : > { %1281 = vrot.lane.b32.xlu1 %v7679_v26, %s9414_s15  ;;  %v2961_v29 = vsel %vm1577_vm10, %v2929_v25, %v2657_v23  ;;  %v1519_v23 = vsel %vm1511_vm8, %v1486_v36, %v7665_v7  ;;  %v7787_v31 = vpack.c.bf16 %v2267_v51, %v2266_v20  ;;  %v540_v51 = vld [vmem:[%s7094_s24 + $0xd0] sm:$0xff] }
 0x11b   : > { %v1324_v14 = vpop.permute.xlu0 %1323  ;;  %v1552_v37 = vsel %vm1544_vm9, %v1519_v23, %v7689_v16  ;;  %v541_v23 = vld [vmem:[%s7094_s24 + $0xd8] sm:$0xff]  ;;  %574 = vst.msk [vmem:[#allocation2 + $0x151] sm:$0xff] %vm547_vm3, %v540_v51 }
 0x11c   : > { %v1370_v22 = vpop.permute.xlu1 %1369  ;;  %v1585_v7 = vsel %vm1577_vm10, %v1552_v37, %v1276_v17  ;;  %9417 = vst [vmem:[#allocation12_spill] sm:$0xff] %v7787_v31  ;;  %575 = vst.msk [vmem:[#allocation2 + $0x159] sm:$0xff] %vm547_vm3, %v541_v23  ;;  %v1973_v23 = vld [vmem:[#allocation2 + $0x68] sm:$0xff] }
 0x11d   : > { %v1649_v46 = vsel %vm1643_vm12, %v1616_v11, %v1370_v22  ;;  %2618 = vrot.lane.b32.xlu0 %v7733_v30, %s9409_s30  ;;  %v1618_v10 = vsel %vm1610_vm11, %v1585_v7, %v1324_v14  ;;  %v2314_v14 = vld [vmem:[#allocation2 + $0xd9] sm:$0xff] }
 0x11e   : > { %2664 = vrot.lane.b32.xlu1 %v2147_v44, %s9414_s15  ;;  %6538 = vmatprep.mubr.msk.bf16.mxu0 %vm1698_vm13, %v1649_v46  ;;  %v2993_v44 = vsel %vm1610_vm11, %v2961_v29, %v2705_v33  ;;  %v2835_v33 = vsel %vm1445_vm6, %v2791_v2, %v7639_v42  ;;  %v2315_v46 = vld [vmem:[#allocation2 + $0xe1] sm:$0xff] }
 0x11f   : > { %v2707_v21 = vpop.permute.xlu0 %2706  ;;  %v2867_v5 = vsel %vm1478_vm7, %v2835_v33, %v7656_v56  ;;  %v2363_v29 = vld [vmem:[#allocation2 + $0xe2] sm:$0xff] }
 0x120   : > { %v2753_v50 = vpop.permute.xlu1 %2752  ;;  %v2899_v11 = vsel %vm1511_vm8, %v2867_v5, %v7683_v34 }
 0x121   : > { %v3025_v1 = vsel %vm1643_vm12, %v2993_v44, %v2753_v50  ;;  %1283 = vrot.lane.b32.xlu0 %v7763_v52, %s9414_s15  ;;  %v2931_v17 = vsel %vm1544_vm9, %v2899_v11, %v7693_v0  ;;  %v7809_v0 = vpack.c.bf16 %v655_v27, %v654_v45  ;;  %v1004_v45 = vpack.c.bf16 %v7370_v53, %v7368_v40  ;;  %v2362_v27 = vld [vmem:[#allocation2 + $0xda] sm:$0xff] }
 0x122   : > { %1329 = vrot.lane.b32.xlu1 %v7347_v35, %s6879_s21  ;;  %6574 = vmatprep.mubr.msk.bf16.mxu1 %vm1698_vm13, %v3025_v1  ;;  %v2963_v56 = vsel %vm1577_vm10, %v2931_v17, %v2659_v57  ;;  %v2339_v57 = vpack.c.bf16 %v2315_v46, %v2314_v14  ;;  %v7830_v44 = vpack.c.bf16 %v2363_v29, %v2362_v27  ;;  %v7868_v2 = vld [vmem:[#allocation2 + $0x150] sm:$0xff]  ;;  %v6058_v11 = vld [vmem:[%s7094_s24 + $0x1d8] sm:$0xff] }
 0x123   : > { %v7794_v22 = vpop.permute.xlu0 %1037  ;;  %v2995_v6 = vsel %vm1610_vm11, %v2963_v56, %v2707_v21  ;;  %v7870_v37 = vld [vmem:[#allocation2 + $0x158] sm:$0xff]  ;;  %v2126_v56 = vld [vmem:[#allocation2 + $0xf0] sm:$0xff] }
 0x124   : > { %v1372_v16 = vpop.permute.xlu1 %1371  ;;  %v656_v33 = vld [vmem:[#allocation2 + $0x151] sm:$0xff]  ;;  %v2175_v27 = vld [vmem:[#allocation2 + $0xf9] sm:$0xff] }
 0x125   : > { %v1651_v42 = vsel %vm1643_vm12, %v1618_v10, %v1372_v16  ;;  %2666 = vrot.lane.b32.xlu0 %v7787_v31, %s9414_s15  ;;  %v7874_v5 = vld [vmem:[#allocation2 + $0x152] sm:$0xff]  ;;  %v7876_v10 = vld [vmem:[#allocation2 + $0x15a] sm:$0xff] }
 0x126   : > { %2712 = vrot.lane.b32.xlu1 %v7700_v12, %s6879_s21  ;;  %6539 = vmatmul.mubr.msk.bf16.gmra.mxu0 %vm1698_vm13, %v1651_v42  ;;  %v6057_v16 = vld [vmem:[%s7094_s24 + $0x1d0] sm:$0xff]  ;;  %v7886_v42 = vpack.c.bf16 %v7452_v58, %v7450_v48 }
 0x127   : > { %v7806_v63 = vpop.permute.xlu0 %2420  ;;  %1958 = vst.msk [vmem:[#allocation2 + $0x151] sm:$0xff] %vm547_vm3, %v6057_v16 }
 0x128   : > { %v2755_v34 = vpop.permute.xlu1 %2754 }
 0x129   : > { %v3027_v25 = vsel %vm1643_vm12, %v2995_v6, %v2755_v34  ;;  %1331 = vrot.lane.b32.xlu0 %v7391_v15, %s6879_s21  ;;  %v2127_v6 = vld [vmem:[#allocation2 + $0xf8] sm:$0xff] }
 0x12a   : > { %1377 = vrot.lane.b32.xlu1 %v7717_v3, %s9415_s0  ;;  %6575 = vmatmul.mubr.msk.bf16.gmra.mxu1 %vm1698_vm13, %v3027_v25  ;;  %v2149_v14 = vpack.c.bf16 %v2127_v6, %v2126_v56  ;;  %v2174_v25 = vld [vmem:[#allocation2 + $0xf1] sm:$0xff]  ;;  %v543_v6 = vld [vmem:[%s7094_s24 + $0xe8] sm:$0xff] }
 0x12b   : > { %v7818_v28 = vpop.permute.xlu0 %1039  ;;  %v7907_v16 = vpack.c.bf16 %v2175_v27, %v2174_v25  ;;  %577 = vst.msk [vmem:[#allocation2 + $0x171] sm:$0xff] %vm547_vm3, %v543_v6  ;;  %v9419_v25 = vld [vmem:[#allocation9_spill] sm:$0xff]  ;;  %v9420_v27 = vld [vmem:[#allocation10_spill] sm:$0xff] }
 0x12c   : > { %v7816_v38 = vpop.permute.xlu1 %1085 }
 0x12d   : > { %2714 = vrot.lane.b32.xlu0 %v2339_v57, %s6879_s21 }
 0x12e   : > { %2760 = vrot.lane.b32.xlu1 %v7733_v30, %s9415_s0 }
 0x12f   : > { %v7827_v36 = vpop.permute.xlu0 %2422 }
 0x130   : > { %v7825_v49 = vpop.permute.xlu1 %2468 }
 0x131   : > { %1045 = vrot.lane.b32.xlu0 %v7347_v35, %s9411_s22 }
 0x132   : > { %1379 = vrot.lane.b32.xlu1 %v1004_v45, %s9415_s0 }
 0x133   : > { %v7836_v40 = vpop.permute.xlu0 %1087 }
 0x134   : > { %v7834_v50 = vpop.permute.xlu1 %1133 }
 0x135   : > { %2428 = vrot.lane.b32.xlu0 %v7700_v12, %s9411_s22 }
 0x136   : > { %2762 = vrot.lane.b32.xlu1 %v7830_v44, %s9415_s0 }
 0x137   : > { %v7844_v20 = vpop.permute.xlu0 %2470 }
 0x138   : > { %v7842_v53 = vpop.permute.xlu1 %2516 }
 0x139   : > { %1047 = vrot.lane.b32.xlu0 %v7391_v15, %s9411_s22 }
 0x13a   : > { %1093 = vrot.lane.b32.xlu1 %v7717_v3, %s9405_s16 }
 0x13b   : > { %v7854_v21 = vpop.permute.xlu0 %1135 }
 0x13c   : > { %v7850_v35 = vpop.permute.xlu1 %1181 }
 0x13d   : > { %2430 = vrot.lane.b32.xlu0 %v2339_v57, %s9411_s22 }
 0x13e   : > { %2476 = vrot.lane.b32.xlu1 %v7733_v30, %s9405_s16  ;;  %v657_v30 = vld [vmem:[#allocation2 + $0x159] sm:$0xff] }
 0x13f   : > { %v7863_v3 = vpop.permute.xlu0 %2518  ;;  %1959 = vst.msk [vmem:[#allocation2 + $0x159] sm:$0xff] %vm547_vm3, %v6058_v11  ;;  %v7902_v51 = vpack.c.bf16 %v657_v30, %v656_v33 }
 0x140   : > { %v7861_v12 = vpop.permute.xlu1 %2564 }
 0x141   : > { %1095 = vrot.lane.b32.xlu0 %v1004_v45, %s9405_s16 }
 0x142   : > { %1141 = vrot.lane.b32.xlu1 %v7763_v52, %s9406_s20  ;;  %v7926_v52 = vpack.c.bf16 %v9420_v27, %v9419_v25  ;;  %v1975_v25 = vld [vmem:[#allocation2 + $0x80] sm:$0xff] }
 0x143   : > { %v7872_v7 = vpop.permute.xlu0 %1183 }
 0x144   : > { %v1230_v1 = vpop.permute.xlu1 %1229 }
 0x145   : > { %2478 = vrot.lane.b32.xlu0 %v7830_v44, %s9405_s16 }
 0x146   : > { %2524 = vrot.lane.b32.xlu1 %v7787_v31, %s9406_s20  ;;  %v9418_v31 = vld [vmem:[#allocation7_spill] sm:$0xff] }
 0x147   : > { %v7890_v34 = vpop.permute.xlu0 %2566  ;;  %v1411_v33 = vsel %vm547_vm3, %v9418_v31, %v7794_v22  ;;  %v2222_v22 = vld [vmem:[#allocation2 + $0xf2] sm:$0xff] }
 0x148   : > { %v2613_v17 = vpop.permute.xlu1 %2612 }
 0x149   : > { %1143 = vrot.lane.b32.xlu0 %v7886_v42, %s9406_s20 }
 0x14a   : > { %1189 = vrot.lane.b32.xlu1 %v7391_v15, %s9408_s23  ;;  %v1972_v15 = vld [vmem:[#allocation2 + $0x60] sm:$0xff] }
 0x14b   : > { %v7896_v48 = vpop.permute.xlu0 %1231  ;;  %v2000_v30 = vpack.c.bf16 %v1973_v23, %v1972_v15  ;;  %v2223_v15 = vld [vmem:[#allocation2 + $0xfa] sm:$0xff] }
 0x14c   : > { %v1278_v46 = vpop.permute.xlu1 %1277 }
 0x14d   : > { %2526 = vrot.lane.b32.xlu0 %v2149_v14, %s9406_s20 }
 0x14e   : > { %2572 = vrot.lane.b32.xlu1 %v2339_v57, %s9408_s23  ;;  %v542_v57 = vld [vmem:[%s7094_s24 + $0xe0] sm:$0xff] }
 0x14f   : > { %v7900_v29 = vpop.permute.xlu0 %2614  ;;  %576 = vst.msk [vmem:[#allocation2 + $0x169] sm:$0xff] %vm547_vm3, %v542_v57 }
 0x150   : > { %v2661_v58 = vpop.permute.xlu1 %2660 }
 0x151   : > { %1191 = vrot.lane.b32.xlu0 %v7485_v54, %s9408_s23 }
 0x152   : > { %1237 = vrot.lane.b32.xlu1 %v1004_v45, %s9409_s30  ;;  %v1455_v45 = vsel %vm1445_vm6, %v1411_v33, %v7816_v38  ;;  %v2794_v38 = vsel %vm547_vm3, %v2000_v30, %v7806_v63  ;;  %v1974_v33 = vld [vmem:[#allocation2 + $0x78] sm:$0xff] }
 0x153   : > { %v7910_v56 = vpop.permute.xlu0 %1279  ;;  %v1488_v57 = vsel %vm1478_vm7, %v1455_v45, %v7834_v50  ;;  %v2837_v50 = vsel %vm1445_vm6, %v2794_v38, %v7825_v49  ;;  %v9421_v38 = vld [vmem:[#allocation8_spill] sm:$0xff] }
 0x154   : > { %v1326_v11 = vpop.permute.xlu1 %1325  ;;  %v2869_v63 = vsel %vm1478_vm7, %v2837_v50, %v7842_v53  ;;  %v1414_v53 = vsel %vm547_vm3, %v9421_v38, %v7818_v28  ;;  %v7962_v50 = vld [vmem:[#allocation2 + $0x172] sm:$0xff]  ;;  %v7972_v28 = vpack.c.bf16 %v7541_v41, %v7534_v9 }
 0x155   : > { %2574 = vrot.lane.b32.xlu0 %v7907_v16, %s9408_s23 }
 0x156   : > { %2620 = vrot.lane.b32.xlu1 %v7830_v44, %s9409_s30  ;;  %v1521_v44 = vsel %vm1511_vm8, %v1488_v57, %v7850_v35  ;;  %v7942_v35 = vpack.c.bf16 %v2223_v15, %v2222_v22  ;;  %v7947_v27 = vld [vmem:[#allocation2 + $0x168] sm:$0xff]  ;;  %v2901_v57 = vsel %vm1511_vm8, %v2869_v63, %v7861_v12  ;;  %v659_v15 = vld [vmem:[#allocation2 + $0x171] sm:$0xff]  ;;  %v1457_v63 = vsel %vm1445_vm6, %v1414_v53, %v7836_v40 }
 0x157   : > { %v2663_v23 = vpop.permute.xlu0 %2662  ;;  %v1554_v6 = vsel %vm1544_vm9, %v1521_v44, %v1230_v1  ;;  %v7952_v44 = vld [vmem:[#allocation2 + $0x170] sm:$0xff]  ;;  %9422 = vst [vmem:[#allocation7_spill] sm:$0xff] %v7972_v28 }
 0x158   : > { %v2709_v31 = vpop.permute.xlu1 %2708  ;;  %v1587_v45 = vsel %vm1577_vm10, %v1554_v6, %v1278_v46  ;;  %v658_v22 = vld [vmem:[#allocation2 + $0x169] sm:$0xff]  ;;  %v2933_v6 = vsel %vm1544_vm9, %v2901_v57, %v2613_v17 }
 0x159   : > { %1239 = vrot.lane.b32.xlu0 %v7926_v52, %s9409_s30  ;;  %v1620_v1 = vsel %vm1610_vm11, %v1587_v45, %v1326_v11  ;;  %v2001_v11 = vpack.c.bf16 %v1975_v25, %v1974_v33  ;;  %v7960_v12 = vld [vmem:[#allocation2 + $0x16a] sm:$0xff]  ;;  %v6059_v45 = vld [vmem:[%s7094_s24 + $0x1e0] sm:$0xff] }
 0x15a   : > { %1285 = vrot.lane.b32.xlu1 %v7886_v42, %s9414_s15  ;;  %v6060_v17 = vld [vmem:[%s7094_s24 + $0x1e8] sm:$0xff]  ;;  %1960 = vst.msk [vmem:[#allocation2 + $0x169] sm:$0xff] %vm547_vm3, %v6059_v45  ;;  %v2271_v40 = vld [vmem:[#allocation2 + $0x110] sm:$0xff] }
 0x15b   : > { %v1328_v49 = vpop.permute.xlu0 %1327  ;;  %1961 = vst.msk [vmem:[#allocation2 + $0x171] sm:$0xff] %vm547_vm3, %v6060_v17  ;;  %v2797_v41 = vsel %vm547_vm3, %v2001_v11, %v7827_v36  ;;  %v2319_v45 = vld [vmem:[#allocation2 + $0x111] sm:$0xff]  ;;  %v8015_v17 = vpack.c.bf16 %v659_v15, %v658_v22  ;;  %v1006_v22 = vpack.c.bf16 %v7549_v18, %v7547_v59 }
 0x15c   : > { %v1374_v30 = vpop.permute.xlu1 %1373  ;;  %v2366_v15 = vld [vmem:[#allocation2 + $0x10a] sm:$0xff] }
 0x15d   : > { %v1653_v46 = vsel %vm1643_vm12, %v1620_v1, %v1374_v30  ;;  %v2965_v1 = vsel %vm1577_vm10, %v2933_v6, %v2661_v58  ;;  %2622 = vrot.lane.b32.xlu0 %v7942_v35, %s9409_s30  ;;  %v2270_v30 = vld [vmem:[#allocation2 + $0x108] sm:$0xff] }
 0x15e   : > { %2668 = vrot.lane.b32.xlu1 %v2149_v14, %s9414_s15  ;;  %6542 = vmatprep.mubr.msk.bf16.mxu0 %vm1698_vm13, %v1653_v46  ;;  %v1490_v14 = vsel %vm1478_vm7, %v1457_v63, %v7854_v21  ;;  %v2997_v33 = vsel %vm1610_vm11, %v2965_v1, %v2709_v31  ;;  %v2839_v21 = vsel %vm1445_vm6, %v2797_v41, %v7844_v20  ;;  %v545_v41 = vld [vmem:[%s7094_s24 + $0xf8] sm:$0xff] }
 0x15f   : > { %v1523_v58 = vsel %vm1511_vm8, %v1490_v14, %v7872_v7  ;;  %v2711_v57 = vpop.permute.xlu0 %2710  ;;  %v2293_v31 = vpack.c.bf16 %v2271_v40, %v2270_v30  ;;  %v2871_v36 = vsel %vm1478_vm7, %v2839_v21, %v7863_v3  ;;  %579 = vst.msk [vmem:[#allocation2 + $0x189] sm:$0xff] %vm547_vm3, %v545_v41 }
 0x160   : > { %v2757_v25 = vpop.permute.xlu1 %2756  ;;  %v1556_v46 = vsel %vm1544_vm9, %v1523_v58, %v7896_v48  ;;  %v2903_v53 = vsel %vm1511_vm8, %v2871_v36, %v7890_v34  ;;  %v2318_v34 = vld [vmem:[#allocation2 + $0x109] sm:$0xff] }
 0x161   : > { %v3029_v9 = vsel %vm1643_vm12, %v2997_v33, %v2757_v25  ;;  %v1589_v7 = vsel %vm1577_vm10, %v1556_v46, %v7910_v56  ;;  %1287 = vrot.lane.b32.xlu0 %v7972_v28, %s9414_s15  ;;  %v2935_v56 = vsel %vm1544_vm9, %v2903_v53, %v7900_v29  ;;  %v2341_v29 = vpack.c.bf16 %v2319_v45, %v2318_v34  ;;  %v2367_v33 = vld [vmem:[#allocation2 + $0x112] sm:$0xff]  ;;  %v2130_v34 = vld [vmem:[#allocation2 + $0x120] sm:$0xff]  ;;  %v2131_v45 = vld [vmem:[#allocation2 + $0x128] sm:$0xff] }
 0x162   : > { %1333 = vrot.lane.b32.xlu1 %v7485_v54, %s6879_s21  ;;  %6578 = vmatprep.mubr.msk.bf16.mxu1 %vm1698_vm13, %v3029_v9  ;;  %v1622_v48 = vsel %vm1610_vm11, %v1589_v7, %v1328_v49  ;;  %v2967_v3 = vsel %vm1577_vm10, %v2935_v56, %v2663_v23  ;;  %v2389_v40 = vpack.c.bf16 %v2367_v33, %v2366_v15  ;;  %v544_v9 = vld [vmem:[%s7094_s24 + $0xf0] sm:$0xff] }
 0x163   : > { %v8001_v11 = vpop.permute.xlu0 %1041  ;;  %v2999_v49 = vsel %vm1610_vm11, %v2967_v3, %v2711_v57  ;;  %578 = vst.msk [vmem:[#allocation2 + $0x181] sm:$0xff] %vm547_vm3, %v544_v9  ;;  %v6061_v53 = vld [vmem:[%s7094_s24 + $0x1f0] sm:$0xff]  ;;  %v6062_v3 = vld [vmem:[%s7094_s24 + $0x1f8] sm:$0xff]  ;;  %s9433_s24 = smov 32  }
 0x164   : > { %v1376_v38 = vpop.permute.xlu1 %1375  ;;  %v2179_v9 = vld [vmem:[#allocation2 + $0x129] sm:$0xff] }
 0x165   : > { %v1655_v20 = vsel %vm1643_vm12, %v1622_v48, %v1376_v38  ;;  %2670 = vrot.lane.b32.xlu0 %v2293_v31, %s9414_s15 }
 0x166   : > { %2716 = vrot.lane.b32.xlu1 %v7907_v16, %s6879_s21  ;;  %6543 = vmatmul.mubr.msk.bf16.gmra.mxu0 %vm1698_vm13, %v1655_v20  ;;  %v803_v20 = vld [vmem:[#allocation2 + $0x189] sm:$0xff] }
 0x167   : > { %v8012_v63 = vpop.permute.xlu0 %2424  ;;  %v8080_v56 = vld [vmem:[#allocation2 + $0x18a] sm:$0xff] }
 0x168   : > { %v2759_v6 = vpop.permute.xlu1 %2758  ;;  %9424 = vst [vmem:[#allocation10_spill] sm:$0xff] %v8080_v56 }
 0x169   : > { %v3031_v1 = vsel %vm1643_vm12, %v2999_v49, %v2759_v6  ;;  %1335 = vrot.lane.b32.xlu0 %v7604_v62, %s6879_s21  ;;  %v8086_v49 = vpack.c.bf16 %v7663_v24, %v7661_v60  ;;  %v2178_v24 = vld [vmem:[#allocation2 + $0x121] sm:$0xff] }
 0x16a   : > { %1381 = vrot.lane.b32.xlu1 %v7926_v52, %s9415_s0  ;;  %6579 = vmatmul.mubr.msk.bf16.gmra.mxu1 %vm1698_vm13, %v3031_v1  ;;  %v8069_v7 = vld [vmem:[#allocation2 + $0x180] sm:$0xff]  ;;  %v8071_v36 = vld [vmem:[#allocation2 + $0x188] sm:$0xff] }
 0x16b   : > { %v8024_v14 = vpop.permute.xlu0 %1043  ;;  %v802_v48 = vld [vmem:[#allocation2 + $0x181] sm:$0xff] }
 0x16c   : > { %v8022_v23 = vpop.permute.xlu1 %1089 }
 0x16d   : > { %2718 = vrot.lane.b32.xlu0 %v2341_v29, %s6879_s21 }
 0x16e   : > { %2764 = vrot.lane.b32.xlu1 %v7942_v35, %s9415_s0 }
 0x16f   : > { %v8033_v30 = vpop.permute.xlu0 %2426 }
 0x170   : > { %v8031_v25 = vpop.permute.xlu1 %2472 }
 0x171   : > { %1049 = vrot.lane.b32.xlu0 %v7485_v54, %s9411_s22 }
 0x172   : > { %1383 = vrot.lane.b32.xlu1 %v1006_v22, %s9415_s0 }
 0x173   : > { %v8040_v57 = vpop.permute.xlu0 %1091 }
 0x174   : > { %v8038_v58 = vpop.permute.xlu1 %1137 }
 0x175   : > { %2432 = vrot.lane.b32.xlu0 %v7907_v16, %s9411_s22 }
 0x176   : > { %2766 = vrot.lane.b32.xlu1 %v2389_v40, %s9415_s0 }
 0x177   : > { %v8047_v18 = vpop.permute.xlu0 %2474 }
 0x178   : > { %v8045_v59 = vpop.permute.xlu1 %2520 }
 0x179   : > { %1051 = vrot.lane.b32.xlu0 %v7604_v62, %s9411_s22 }
 0x17a   : > { %1097 = vrot.lane.b32.xlu1 %v7926_v52, %s9405_s16 }
 0x17b   : > { %v8055_v46 = vpop.permute.xlu0 %1139 }
 0x17c   : > { %v1186_v54 = vpop.permute.xlu1 %1185 }
 0x17d   : > { %2434 = vrot.lane.b32.xlu0 %v2341_v29, %s9411_s22 }
 0x17e   : > { %2480 = vrot.lane.b32.xlu1 %v7942_v35, %s9405_s16  ;;  %v8075_v35 = vld [vmem:[#allocation2 + $0x182] sm:$0xff] }
 0x17f   : > { %v8064_v16 = vpop.permute.xlu0 %2522  ;;  %9423 = vst [vmem:[#allocation9_spill] sm:$0xff] %v8075_v35  ;;  %1962 = vst.msk [vmem:[#allocation2 + $0x181] sm:$0xff] %vm547_vm3, %v6061_v53  ;;  %v8099_v53 = vpack.c.bf16 %v803_v20, %v802_v48  ;;  %v2227_v35 = vld [vmem:[#allocation2 + $0x12a] sm:$0xff] }
 0x180   : > { %v8062_v52 = vpop.permute.xlu1 %2568  ;;  %1963 = vst.msk [vmem:[#allocation2 + $0x189] sm:$0xff] %vm547_vm3, %v6062_v3  ;;  %v1977_v3 = vld [vmem:[#allocation2 + $0x98] sm:$0xff] }
 0x181   : > { %1099 = vrot.lane.b32.xlu0 %v1006_v22, %s9405_s16 }
 0x182   : > { %1145 = vrot.lane.b32.xlu1 %v7972_v28, %s9406_s20  ;;  %v1417_v28 = vsel %vm547_vm3, %v7467_v13, %v8001_v11 }
 0x183   : > { %v8073_v38 = vpop.permute.xlu0 %1187  ;;  %v1459_v48 = vsel %vm1445_vm6, %v1417_v28, %v8022_v23 }
 0x184   : > { %v1234_v21 = vpop.permute.xlu1 %1233  ;;  %v1492_v20 = vsel %vm1478_vm7, %v1459_v48, %v8038_v58  ;;  %v2803_v48 = vsel %vm547_vm3, %v7582_v43, %v8033_v30 }
 0x185   : > { %2482 = vrot.lane.b32.xlu0 %v2389_v40, %s9405_s16  ;;  %v1525_v13 = vsel %vm1511_vm8, %v1492_v20, %v1186_v54 }
 0x186   : > { %2528 = vrot.lane.b32.xlu1 %v2293_v31, %s9406_s20  ;;  %v2151_v31 = vpack.c.bf16 %v2131_v45, %v2130_v34  ;;  %v8104_v34 = vpack.c.bf16 %v2179_v9, %v2178_v24  ;;  %v2226_v9 = vld [vmem:[#allocation2 + $0x122] sm:$0xff]  ;;  %v1558_v28 = vsel %vm1544_vm9, %v1525_v13, %v1234_v21  ;;  %v8194_v13 = vld [vmem:[%s9425_s2] ss:$0 sm:$0xff] }
 0x187   : > { %v8089_v1 = vpop.permute.xlu0 %2570  ;;  %v8131_v23 = vpack.c.bf16 %v2227_v35, %v2226_v9 }
 0x188   : > { %v2617_v6 = vpop.permute.xlu1 %2616 }
 0x189   : > { %1147 = vrot.lane.b32.xlu0 %v8086_v49, %s9406_s20 }
 0x18a   : > { %1193 = vrot.lane.b32.xlu1 %v7604_v62, %s9408_s23  ;;  %v1976_v62 = vld [vmem:[#allocation2 + $0x90] sm:$0xff] }
 0x18b   : > { %v1236_v33 = vpop.permute.xlu0 %1235  ;;  %v2002_v56 = vpack.c.bf16 %v1977_v3, %v1976_v62  ;;  %v2275_v3 = vld [vmem:[#allocation2 + $0x140] sm:$0xff] }
 0x18c   : > { %v1282_v15 = vpop.permute.xlu1 %1281 }
 0x18d   : > { %2530 = vrot.lane.b32.xlu0 %v2151_v31, %s9406_s20 }
 0x18e   : > { %2576 = vrot.lane.b32.xlu1 %v2341_v29, %s9408_s23 }
 0x18f   : > { %v8097_v41 = vpop.permute.xlu0 %2618 }
 0x190   : > { %v2665_v60 = vpop.permute.xlu1 %2664 }
 0x191   : > { %1195 = vrot.lane.b32.xlu0 %v7695_v61, %s9408_s23 }
 0x192   : > { %1241 = vrot.lane.b32.xlu1 %v1006_v22, %s9409_s30  ;;  %v8116_v22 = vpack.c.bf16 %v7669_v8, %v7667_v32  ;;  %v1591_v8 = vsel %vm1577_vm10, %v1558_v28, %v1282_v15  ;;  %v2322_v28 = vld [vmem:[#allocation2 + $0x139] sm:$0xff] }
 0x193   : > { %v1284_v29 = vpop.permute.xlu0 %1283 }
 0x194   : > { %v1330_v45 = vpop.permute.xlu1 %1329 }
 0x195   : > { %2578 = vrot.lane.b32.xlu0 %v8104_v34, %s9408_s23 }
 0x196   : > { %2624 = vrot.lane.b32.xlu1 %v2389_v40, %s9409_s30  ;;  %v2800_v40 = vsel %vm547_vm3, %v2002_v56, %v8012_v63  ;;  %v1624_v63 = vsel %vm1610_vm11, %v1591_v8, %v1330_v45 }
 0x197   : > { %v2667_v11 = vpop.permute.xlu0 %2666  ;;  %v2841_v32 = vsel %vm1445_vm6, %v2800_v40, %v8031_v25  ;;  %v1420_v25 = vsel %vm547_vm3, %v7557_v4, %v8024_v14 }
 0x198   : > { %v2713_v24 = vpop.permute.xlu1 %2712  ;;  %v2873_v58 = vsel %vm1478_vm7, %v2841_v32, %v8045_v59  ;;  %v1461_v59 = vsel %vm1445_vm6, %v1420_v25, %v8040_v57  ;;  %v2323_v32 = vld [vmem:[#allocation2 + $0x141] sm:$0xff] }
 0x199   : > { %1243 = vrot.lane.b32.xlu0 %v8116_v22, %s9409_s30  ;;  %v2905_v21 = vsel %vm1511_vm8, %v2873_v58, %v8062_v52  ;;  %v8152_v52 = vpack.c.bf16 %v7743_v55, %v7738_v47  ;;  %v1494_v4 = vsel %vm1478_vm7, %v1461_v59, %v8055_v46  ;;  %v2843_v55 = vsel %vm1445_vm6, %v2803_v48, %v8047_v18 }
 0x19a   : > { %1289 = vrot.lane.b32.xlu1 %v8086_v49, %s9414_s15  ;;  %v2937_v15 = vsel %vm1544_vm9, %v2905_v21, %v2617_v6  ;;  %v1527_v57 = vsel %vm1511_vm8, %v1494_v4, %v8073_v38  ;;  %v2875_v43 = vsel %vm1478_vm7, %v2843_v55, %v8064_v16 }
 0x19b   : > { %v1332_v56 = vpop.permute.xlu0 %1331  ;;  %v2969_v35 = vsel %vm1577_vm10, %v2937_v15, %v2665_v60  ;;  %v1560_v47 = vsel %vm1544_vm9, %v1527_v57, %v1236_v33  ;;  %v2907_v20 = vsel %vm1511_vm8, %v2875_v43, %v8089_v1  ;;  %v2371_v57 = vld [vmem:[#allocation2 + $0x142] sm:$0xff] }
 0x19c   : > { %v1378_v54 = vpop.permute.xlu1 %1377  ;;  %v3001_v14 = vsel %vm1610_vm11, %v2969_v35, %v2713_v24  ;;  %v1593_v46 = vsel %vm1577_vm10, %v1560_v47, %v1284_v29  ;;  %v2939_v29 = vsel %vm1544_vm9, %v2907_v20, %v8097_v41 }
 0x19d   : > { %v1657_v62 = vsel %vm1643_vm12, %v1624_v63, %v1378_v54  ;;  %2626 = vrot.lane.b32.xlu0 %v8131_v23, %s9409_s30  ;;  %v1626_v30 = vsel %vm1610_vm11, %v1593_v46, %v1332_v56  ;;  %v2971_v16 = vsel %vm1577_vm10, %v2939_v29, %v2667_v11  ;;  %v2343_v56 = vpack.c.bf16 %v2323_v32, %v2322_v28  ;;  %v2134_v28 = vld [vmem:[#allocation2 + $0x150] sm:$0xff]  ;;  %v2135_v32 = vld [vmem:[#allocation2 + $0x158] sm:$0xff] }
 0x19e   : > { %2672 = vrot.lane.b32.xlu1 %v2151_v31, %s9414_s15  ;;  %6546 = vmatprep.mubr.msk.bf16.mxu0 %vm1698_vm13, %v1657_v62  ;;  %v2274_v31 = vld [vmem:[#allocation2 + $0x138] sm:$0xff] }
 0x19f   : > { %v2715_v45 = vpop.permute.xlu0 %2714  ;;  %v8172_v38 = vpack.c.bf16 %v2275_v3, %v2274_v31  ;;  %v2370_v3 = vld [vmem:[#allocation2 + $0x13a] sm:$0xff] }
 0x1a0   : > { %v2761_v6 = vpop.permute.xlu1 %2760  ;;  %v3003_v1 = vsel %vm1610_vm11, %v2971_v16, %v2715_v45 }
 0x1a1   : > { %v3033_v60 = vsel %vm1643_vm12, %v3001_v14, %v2761_v6  ;;  %1291 = vrot.lane.b32.xlu0 %v8152_v52, %s9414_s15  ;;  %v1008_v14 = vpack.c.bf16 %v7753_v19, %v7751_v39 }
 0x1a2   : > { %1337 = vrot.lane.b32.xlu1 %v7695_v61, %s6879_s21  ;;  %6582 = vmatprep.mubr.msk.bf16.mxu1 %vm1698_vm13, %v3033_v60 }
 0x1a3   : > { %v8179_v24 = vpop.permute.xlu0 %1045 }
 0x1a4   : > { %v1380_v33 = vpop.permute.xlu1 %1379 }
 0x1a5   : > { %v1659_v18 = vsel %vm1643_vm12, %v1626_v30, %v1380_v33  ;;  %2674 = vrot.lane.b32.xlu0 %v8172_v38, %s9414_s15  ;;  %v2391_v30 = vpack.c.bf16 %v2371_v57, %v2370_v3 }
 0x1a6   : > { %2720 = vrot.lane.b32.xlu1 %v8104_v34, %s6879_s21  ;;  %v6536_v9 = vpop.f32.mrf.mxu0  ;;  %6547 = vmatmul.mubr.msk.bf16.gmra.mxu0 %vm1698_vm13, %v1659_v18 }
 0x1a7   : > { %v8196_v8 = vpop.permute.xlu0 %2428  ;;  %v1781_v63 = vadd.f32 %v6536_v9, %v8194_v13 }
 0x1a8   : > { %v2763_v40 = vpop.permute.xlu1 %2762  ;;  %v1772_v41 = vpop.f32.mrf.mxu0 }
 0x1a9   : > { %v3035_v58 = vsel %vm1643_vm12, %v3003_v1, %v2763_v40  ;;  %1339 = vrot.lane.b32.xlu0 %v7809_v0, %s6879_s21  ;;  %v1773_v35 = vadd.f32 %v8194_v13, %v1772_v41 }
 0x1aa   : > { %1385 = vrot.lane.b32.xlu1 %v8116_v22, %s9415_s0  ;;  %v6572_v11 = vpop.f32.mrf.mxu1  ;;  %6583 = vmatmul.mubr.msk.bf16.gmra.mxu1 %vm1698_vm13, %v3035_v58  ;;  %v6537_v54 = vpop.f32.mrf.mxu0 }
 0x1ab   : > { %v3152_v21 = vadd.f32 %v6572_v11, %v8194_v13  ;;  %v8208_v15 = vpop.permute.xlu0 %1047  ;;  %v1784_v45 = vadd.f32 %v6537_v54, %v8194_v13  ;;  %v8268_v11 = vpack.c.bf16 %v2135_v32, %v2134_v28  ;;  %v2183_v54 = vld [vmem:[#allocation2 + $0x159] sm:$0xff]  ;;  %v2278_v32 = vld [vmem:[#allocation2 + $0x168] sm:$0xff] }
 0x1ac   : > { %v8206_v62 = vpop.permute.xlu1 %1093  ;;  %v3143_v59 = vpop.f32.mrf.mxu1 }
 0x1ad   : > { %v3272_v25 = vmax.f32 %v1781_v63, %v3152_v21  ;;  %v3144_v4 = vadd.f32 %v8194_v13, %v3143_v59  ;;  %v1775_v6 = vpop.f32.mrf.mxu0  ;;  %2722 = vrot.lane.b32.xlu0 %v2343_v56, %s6879_s21 }
 0x1ae   : > { %2768 = vrot.lane.b32.xlu1 %v8131_v23, %s9415_s0  ;;  %v6573_v31 = vpop.f32.mrf.mxu1  ;;  %v1776_v39 = vadd.f32 %v8194_v13, %v1775_v6 }
 0x1af   : > { %3304 = vst.msk [vmem:[#allocation2 + $0x31] sm:$0xff] %vm440_vm0, %v3272_v25  ;;  %v3270_v60 = vmax.f32 %v1773_v35, %v3144_v4  ;;  %v3155_v48 = vadd.f32 %v6573_v31, %v8194_v13  ;;  %v8222_v55 = vpop.permute.xlu0 %2430  ;;  %v1981_v25 = vld [vmem:[#allocation2 + $0xc8] sm:$0xff] }
 0x1b0   : > { %v8220_v47 = vpop.permute.xlu1 %2476  ;;  %v3146_v46 = vpop.f32.mrf.mxu1 }
 0x1b1   : > { %3302 = vst.msk [vmem:[#allocation2 + $0x19] sm:$0xff] %vm440_vm0, %v3270_v60  ;;  %v3273_v19 = vmax.f32 %v1784_v45, %v3155_v48  ;;  %v3147_v43 = vadd.f32 %v8194_v13, %v3146_v46  ;;  %1053 = vrot.lane.b32.xlu0 %v7695_v61, %s9411_s22  ;;  %v2230_v45 = vld [vmem:[#allocation2 + $0x152] sm:$0xff]  ;;  %v2231_v60 = vld [vmem:[#allocation2 + $0x15a] sm:$0xff] }
 0x1b2   : > { %1387 = vrot.lane.b32.xlu1 %v1008_v14, %s9415_s0  ;;  %v8304_v46 = vpack.c.bf16 %v2231_v60, %v2230_v45  ;;  %v2327_v45 = vld [vmem:[#allocation2 + $0x171] sm:$0xff] }
 0x1b3   : > { %3305 = vst.msk [vmem:[#allocation2 + $0x39] sm:$0xff] %vm440_vm0, %v3273_v19  ;;  %v3271_v33 = vmax.f32 %v1776_v39, %v3147_v43  ;;  %v8231_v18 = vpop.permute.xlu0 %1095 }
 0x1b4   : > { %v1142_v20 = vpop.permute.xlu1 %1141 }
 0x1b5   : > { %3303 = vst.msk [vmem:[#allocation2 + $0x21] sm:$0xff] %vm440_vm0, %v3271_v33  ;;  %2436 = vrot.lane.b32.xlu0 %v8104_v34, %s9411_s22 }
 0x1b6   : > { %2770 = vrot.lane.b32.xlu1 %v2391_v30, %s9415_s0 }
 0x1b7   : > { %v8237_v9 = vpop.permute.xlu0 %2478 }
 0x1b8   : > { %v2525_v29 = vpop.permute.xlu1 %2524 }
 0x1b9   : > { %1055 = vrot.lane.b32.xlu0 %v7809_v0, %s9411_s22 }
 0x1ba   : > { %1101 = vrot.lane.b32.xlu1 %v8116_v22, %s9405_s16 }
 0x1bb   : > { %v8243_v16 = vpop.permute.xlu0 %1143 }
 0x1bc   : > { %v1190_v61 = vpop.permute.xlu1 %1189 }
 0x1bd   : > { %2438 = vrot.lane.b32.xlu0 %v2343_v56, %s9411_s22 }
 0x1be   : > { %2484 = vrot.lane.b32.xlu1 %v8131_v23, %s9405_s16  ;;  %v8260_v23 = vpack.c.bf16 %v7870_v37, %v7868_v2  ;;  %v2182_v37 = vld [vmem:[#allocation2 + $0x151] sm:$0xff] }
 0x1bf   : > { %v8248_v40 = vpop.permute.xlu0 %2526  ;;  %v8278_v59 = vpack.c.bf16 %v2183_v54, %v2182_v37  ;;  %v9427_v54 = vld [vmem:[#allocation12_spill] sm:$0xff] }
 0x1c0   : > { %v2573_v1 = vpop.permute.xlu1 %2572 }
 0x1c1   : > { %1103 = vrot.lane.b32.xlu0 %v1008_v14, %s9405_s16 }
 0x1c2   : > { %1149 = vrot.lane.b32.xlu1 %v8152_v52, %s9406_s20 }
 0x1c3   : > { %v8253_v22 = vpop.permute.xlu0 %1191 }
 0x1c4   : > { %v1238_v34 = vpop.permute.xlu1 %1237 }
 0x1c5   : > { %2486 = vrot.lane.b32.xlu0 %v2391_v30, %s9405_s16 }
 0x1c6   : > { %2532 = vrot.lane.b32.xlu1 %v8172_v38, %s9406_s20 }
 0x1c7   : > { %v8262_v58 = vpop.permute.xlu0 %2574 }
 0x1c8   : > { %v2621_v41 = vpop.permute.xlu1 %2620 }
 0x1c9   : > { %1151 = vrot.lane.b32.xlu0 %v8260_v23, %s9406_s20 }
 0x1ca   : > { %1197 = vrot.lane.b32.xlu1 %v7809_v0, %s9408_s23  ;;  %v1980_v0 = vld [vmem:[#allocation2 + $0xc0] sm:$0xff] }
 0x1cb   : > { %v1240_v63 = vpop.permute.xlu0 %1239  ;;  %v2004_v6 = vpack.c.bf16 %v1981_v25, %v1980_v0  ;;  %v2809_v0 = vsel %vm547_vm3, %v9427_v54, %v8222_v55 }
 0x1cc   : > { %v1286_v38 = vpop.permute.xlu1 %1285 }
 0x1cd   : > { %2534 = vrot.lane.b32.xlu0 %v8268_v11, %s9406_s20  ;;  %v2806_v48 = vsel %vm547_vm3, %v2004_v6, %v8196_v8 }
 0x1ce   : > { %2580 = vrot.lane.b32.xlu1 %v2343_v56, %s9408_s23  ;;  %v1423_v56 = vsel %vm547_vm3, %v7679_v26, %v8179_v24 }
 0x1cf   : > { %v8273_v21 = vpop.permute.xlu0 %2622  ;;  %v1463_v31 = vsel %vm1445_vm6, %v1423_v56, %v8206_v62 }
 0x1d0   : > { %v2669_v2 = vpop.permute.xlu1 %2668  ;;  %v1496_v3 = vsel %vm1478_vm7, %v1463_v31, %v1142_v20  ;;  %v9426_v20 = vld [vmem:[#allocation11_spill] sm:$0xff] }
 0x1d1   : > { %1199 = vrot.lane.b32.xlu0 %v7902_v51, %s9408_s23  ;;  %v1529_v26 = vsel %vm1511_vm8, %v1496_v3, %v1190_v61 }
 0x1d2   : > { %1245 = vrot.lane.b32.xlu1 %v1008_v14, %s9409_s30  ;;  %v8290_v14 = vpack.c.bf16 %v7876_v10, %v7874_v5  ;;  %v1562_v62 = vsel %vm1544_vm9, %v1529_v26, %v1238_v34  ;;  %v2845_v5 = vsel %vm1445_vm6, %v2806_v48, %v8220_v47  ;;  %v1426_v47 = vsel %vm547_vm3, %v9426_v20, %v8208_v15 }
 0x1d3   : > { %v1288_v4 = vpop.permute.xlu0 %1287  ;;  %v1595_v10 = vsel %vm1577_vm10, %v1562_v62, %v1286_v38  ;;  %v2877_v39 = vsel %vm1478_vm7, %v2845_v5, %v2525_v29  ;;  %v1465_v29 = vsel %vm1445_vm6, %v1426_v47, %v8231_v18  ;;  %v2279_v38 = vld [vmem:[#allocation2 + $0x170] sm:$0xff] }
 0x1d4   : > { %v1334_v35 = vpop.permute.xlu1 %1333  ;;  %v2909_v43 = vsel %vm1511_vm8, %v2877_v39, %v2573_v1  ;;  %v8324_v1 = vpack.c.bf16 %v7952_v44, %v7947_v27  ;;  %v1498_v15 = vsel %vm1478_vm7, %v1465_v29, %v8243_v16  ;;  %v2847_v44 = vsel %vm1445_vm6, %v2809_v0, %v8237_v9  ;;  %v2375_v29 = vld [vmem:[#allocation2 + $0x172] sm:$0xff] }
 0x1d5   : > { %2582 = vrot.lane.b32.xlu0 %v8278_v59, %s9408_s23  ;;  %v1628_v19 = vsel %vm1610_vm11, %v1595_v10, %v1334_v35  ;;  %v2941_v61 = vsel %vm1544_vm9, %v2909_v43, %v2621_v41  ;;  %v1531_v18 = vsel %vm1511_vm8, %v1498_v15, %v8253_v22  ;;  %v8344_v22 = vpack.c.bf16 %v2279_v38, %v2278_v32 }
 0x1d6   : > { %2628 = vrot.lane.b32.xlu1 %v2391_v30, %s9409_s30  ;;  %v2973_v34 = vsel %vm1577_vm10, %v2941_v61, %v2669_v2  ;;  %v1564_v27 = vsel %vm1544_vm9, %v1531_v18, %v1240_v63  ;;  %v2879_v55 = vsel %vm1478_vm7, %v2847_v44, %v8248_v40  ;;  %v2374_v61 = vld [vmem:[#allocation2 + $0x16a] sm:$0xff] }
 0x1d7   : > { %v2671_v24 = vpop.permute.xlu0 %2670  ;;  %v1597_v16 = vsel %vm1577_vm10, %v1564_v27, %v1288_v4  ;;  %v2911_v35 = vsel %vm1511_vm8, %v2879_v55, %v8262_v58 }
 0x1d8   : > { %v2717_v57 = vpop.permute.xlu1 %2716  ;;  %v2943_v4 = vsel %vm1544_vm9, %v2911_v35, %v8273_v21  ;;  %v2138_v35 = vld [vmem:[#allocation2 + $0x180] sm:$0xff] }
 0x1d9   : > { %1247 = vrot.lane.b32.xlu0 %v8290_v14, %s9409_s30  ;;  %v3005_v41 = vsel %vm1610_vm11, %v2973_v34, %v2717_v57  ;;  %v2975_v40 = vsel %vm1577_vm10, %v2943_v4, %v2671_v24  ;;  %v2326_v57 = vld [vmem:[#allocation2 + $0x169] sm:$0xff] }
 0x1da   : > { %1293 = vrot.lane.b32.xlu1 %v8260_v23, %s9414_s15  ;;  %v2345_v5 = vpack.c.bf16 %v2327_v45, %v2326_v57  ;;  %v1984_v57 = vld [vmem:[#allocation2 + $0xf0] sm:$0xff]  ;;  %v1985_v45 = vld [vmem:[#allocation2 + $0xf8] sm:$0xff] }
 0x1db   : > { %v1336_v30 = vpop.permute.xlu0 %1335 }
 0x1dc   : > { %v1382_v8 = vpop.permute.xlu1 %1381  ;;  %v1630_v63 = vsel %vm1610_vm11, %v1597_v16, %v1336_v30 }
 0x1dd   : > { %v1661_v33 = vsel %vm1643_vm12, %v1628_v19, %v1382_v8  ;;  %2630 = vrot.lane.b32.xlu0 %v8304_v46, %s9409_s30 }
 0x1de   : > { %2676 = vrot.lane.b32.xlu1 %v8268_v11, %s9414_s15  ;;  %6550 = vmatprep.mubr.msk.bf16.mxu0 %vm1698_vm13, %v1661_v33  ;;  %v1010_v33 = vpack.c.bf16 %v7962_v50, %v7960_v12 }
 0x1df   : > { %v2719_v37 = vpop.permute.xlu0 %2718 }
 0x1e0   : > { %v2765_v28 = vpop.permute.xlu1 %2764  ;;  %v3007_v58 = vsel %vm1610_vm11, %v2975_v40, %v2719_v37  ;;  %v2393_v37 = vpack.c.bf16 %v2375_v29, %v2374_v61  ;;  %v2235_v61 = vld [vmem:[#allocation2 + $0x18a] sm:$0xff] }
 0x1e1   : > { %v3037_v2 = vsel %vm1643_vm12, %v3005_v41, %v2765_v28  ;;  %1295 = vrot.lane.b32.xlu0 %v8324_v1, %s9414_s15 }
 0x1e2   : > { %1341 = vrot.lane.b32.xlu1 %v7902_v51, %s6879_s21  ;;  %6586 = vmatprep.mubr.msk.bf16.mxu1 %vm1698_vm13, %v3037_v2 }
 0x1e3   : > { %v8351_v56 = vpop.permute.xlu0 %1049 }
 0x1e4   : > { %v1384_v25 = vpop.permute.xlu1 %1383 }
 0x1e5   : > { %v1663_v9 = vsel %vm1643_vm12, %v1630_v63, %v1384_v25  ;;  %2678 = vrot.lane.b32.xlu0 %v8344_v22, %s9414_s15 }
 0x1e6   : > { %2724 = vrot.lane.b32.xlu1 %v8278_v59, %s6879_s21  ;;  %v6540_v6 = vpop.f32.mrf.mxu0  ;;  %6551 = vmatmul.mubr.msk.bf16.gmra.mxu0 %vm1698_vm13, %v1663_v9  ;;  %v2139_v9 = vld [vmem:[#allocation2 + $0x188] sm:$0xff] }
 0x1e7   : > { %v8363_v60 = vpop.permute.xlu0 %2432  ;;  %v1797_v24 = vadd.f32 %v6540_v6, %v8194_v13  ;;  %v2155_v6 = vpack.c.bf16 %v2139_v9, %v2138_v35 }
 0x1e8   : > { %v2767_v31 = vpop.permute.xlu1 %2766  ;;  %v1788_v3 = vpop.f32.mrf.mxu0 }
 0x1e9   : > { %v3039_v21 = vsel %vm1643_vm12, %v3007_v58, %v2767_v31  ;;  %1343 = vrot.lane.b32.xlu0 %v8015_v17, %s6879_s21  ;;  %v1789_v43 = vadd.f32 %v8194_v13, %v1788_v3  ;;  %v2187_v31 = vld [vmem:[#allocation2 + $0x189] sm:$0xff] }
 0x1ea   : > { %1389 = vrot.lane.b32.xlu1 %v8290_v14, %s9415_s0  ;;  %v6576_v26 = vpop.f32.mrf.mxu1  ;;  %6587 = vmatmul.mubr.msk.bf16.gmra.mxu1 %vm1698_vm13, %v3039_v21  ;;  %v6541_v48 = vpop.f32.mrf.mxu0 }
 0x1eb   : > { %v3168_v62 = vadd.f32 %v6576_v26, %v8194_v13  ;;  %v8375_v19 = vpop.permute.xlu0 %1051  ;;  %v1800_v34 = vadd.f32 %v6541_v48, %v8194_v13  ;;  %v6729_v26 = vld [vmem:[%s9428_s3 + $0x38] sm:$0xff]  }
 0x1ec   : > { %v8373_v10 = vpop.permute.xlu1 %1097  ;;  %v3159_v8 = vpop.f32.mrf.mxu1 }
 0x1ed   : > { %v3276_v39 = vmax.f32 %v1797_v24, %v3168_v62  ;;  %v3160_v30 = vadd.f32 %v8194_v13, %v3159_v8  ;;  %v1791_v20 = vpop.f32.mrf.mxu0  ;;  %2726 = vrot.lane.b32.xlu0 %v2345_v5, %s6879_s21  ;;  %v1429_v62 = vsel %vm547_vm3, %v7886_v42, %v8351_v56  ;;  %v6731_v42 = vld [vmem:[%s9428_s3 + $0x30] sm:$0xff]  }
 0x1ee   : > { %2772 = vrot.lane.b32.xlu1 %v8304_v46, %s9415_s0  ;;  %v6577_v47 = vpop.f32.mrf.mxu1  ;;  %v1792_v12 = vadd.f32 %v8194_v13, %v1791_v20  ;;  %v1467_v8 = vsel %vm1445_vm6, %v1429_v62, %v8373_v10 }
 0x1ef   : > { %3308 = vst.msk [vmem:[#allocation2 + $0x61] sm:$0xff] %vm440_vm0, %v3276_v39  ;;  %v3274_v15 = vmax.f32 %v1789_v43, %v3160_v30  ;;  %v3171_v41 = vadd.f32 %v6577_v47, %v8194_v13  ;;  %v8389_v32 = vpop.permute.xlu0 %2434  ;;  %v6730_v39 = vld [vmem:[%s9428_s3 + $0x70] sm:$0xff]   ;;  %v9429_v43 = vld [vmem:[#allocation9_spill] sm:$0xff]  ;;  %v9430_v30 = vld [vmem:[#allocation10_spill] sm:$0xff] }
 0x1f0   : > { %v8387_v28 = vpop.permute.xlu1 %2480  ;;  %v3162_v38 = vpop.f32.mrf.mxu1  ;;  %v2234_v47 = vld [vmem:[#allocation2 + $0x182] sm:$0xff] }
 0x1f1   : > { %3306 = vst.msk [vmem:[#allocation2 + $0x49] sm:$0xff] %vm440_vm0, %v3274_v15  ;;  %v3277_v50 = vmax.f32 %v1800_v34, %v3171_v41  ;;  %v3163_v18 = vadd.f32 %v8194_v13, %v3162_v38  ;;  %1057 = vrot.lane.b32.xlu0 %v7902_v51, %s9411_s22  ;;  %v6732_v41 = vld [vmem:[%s9428_s3 + $0x68] sm:$0xff]  }
 0x1f2   : > { %1391 = vrot.lane.b32.xlu1 %v1010_v33, %s9415_s0  ;;  %v1986_v38 = vld [vmem:[#allocation2 + $0x108] sm:$0xff] }
 0x1f3   : > { %3309 = vst.msk [vmem:[#allocation2 + $0x69] sm:$0xff] %vm440_vm0, %v3277_v50  ;;  %v3275_v2 = vmax.f32 %v1792_v12, %v3163_v18  ;;  %v8398_v0 = vpop.permute.xlu0 %1099  ;;  %v1987_v12 = vld [vmem:[#allocation2 + $0x110] sm:$0xff] }
 0x1f4   : > { %v1146_v54 = vpop.permute.xlu1 %1145 }
 0x1f5   : > { %3307 = vst.msk [vmem:[#allocation2 + $0x51] sm:$0xff] %vm440_vm0, %v3275_v2  ;;  %2440 = vrot.lane.b32.xlu0 %v8278_v59, %s9411_s22  ;;  %v1500_v56 = vsel %vm1478_vm7, %v1467_v8, %v1146_v54 }
 0x1f6   : > { %2774 = vrot.lane.b32.xlu1 %v2393_v37, %s9415_s0 }
 0x1f7   : > { %v8406_v44 = vpop.permute.xlu0 %2482 }
 0x1f8   : > { %v8404_v27 = vpop.permute.xlu1 %2528 }
 0x1f9   : > { %1059 = vrot.lane.b32.xlu0 %v8015_v17, %s9411_s22 }
 0x1fa   : > { %1105 = vrot.lane.b32.xlu1 %v8290_v14, %s9405_s16 }
 0x1fb   : > { %v8412_v16 = vpop.permute.xlu0 %1147 }
 0x1fc   : > { %v1194_v51 = vpop.permute.xlu1 %1193 }
 0x1fd   : > { %2442 = vrot.lane.b32.xlu0 %v2345_v5, %s9411_s22  ;;  %v1533_v29 = vsel %vm1511_vm8, %v1500_v56, %v1194_v51  ;;  %s6886_s22 = smov [#allocation4]  }
 0x1fe   : > { %2488 = vrot.lane.b32.xlu1 %v8304_v46, %s9405_s16  ;;  %v771_v46 = vpack.c.bf16 %v8071_v36, %v8069_v7  ;;  %v2186_v36 = vld [vmem:[#allocation2 + $0x181] sm:$0xff] }
 0x1ff   : > { %v8419_v59 = vpop.permute.xlu0 %2530  ;;  %v8450_v21 = vpack.c.bf16 %v2187_v31, %v2186_v36  ;;  %v2007_v31 = vpack.c.bf16 %v1987_v12, %v1986_v38  ;;  %v6741_v38 = vld [vmem:[%s9428_s3 + $0x48] sm:$0xff]   ;;  %v6742_v12 = vld [vmem:[%s9428_s3 + $0x80] sm:$0xff]  }
 0x200   : > { %v8417_v55 = vpop.permute.xlu1 %2576 }
 0x201   : > { %1107 = vrot.lane.b32.xlu0 %v1010_v33, %s9405_s16  ;;  %v2815_v62 = vsel %vm547_vm3, %v2007_v31, %v8389_v32  ;;  %v6737_v32 = vld [vmem:[%s9428_s3 + $0x18] sm:$0xff]   ;;  %v6744_v31 = vld [vmem:[%s9428_s3 + $0x40] sm:$0xff]  }
 0x202   : > { %1153 = vrot.lane.b32.xlu1 %v8324_v1, %s9406_s20 }
 0x203   : > { %v8424_v63 = vpop.permute.xlu0 %1195 }
 0x204   : > { %v1242_v14 = vpop.permute.xlu1 %1241 }
 0x205   : > { %2490 = vrot.lane.b32.xlu0 %v2393_v37, %s9405_s16  ;;  %v1566_v15 = vsel %vm1544_vm9, %v1533_v29, %v1242_v14  ;;  %v899_v14 = vld [vmem:[#allocation2 + $0x198] sm:$0xff]  ;;  %s9391_s16 = smov 96  }
 0x206   : > { %2536 = vrot.lane.b32.xlu1 %v8344_v22, %s9406_s20 }
 0x207   : > { %v8433_v4 = vpop.permute.xlu0 %2578 }
 0x208   : > { %v8431_v25 = vpop.permute.xlu1 %2624 }
 0x209   : > { %1155 = vrot.lane.b32.xlu0 %v771_v46, %s9406_s20 }
 0x20a   : > { %1201 = vrot.lane.b32.xlu1 %v8015_v17, %s9408_s23  ;;  %v6728_v17 = vld [vmem:[%s9428_s3 + $0x78] sm:$0xff]  }
 0x20b   : > { %v8438_v58 = vpop.permute.xlu0 %1243  ;;  %6375 = vmatprep.subr.bf16.mxu0 %v6728_v17 }
 0x20c   : > { %v1290_v40 = vpop.permute.xlu1 %1289  ;;  %6376 = vmatpush3.bf16.msra.mxu0 %v6729_v26 }
 0x20d   : > { %2538 = vrot.lane.b32.xlu0 %v2155_v6, %s9406_s20  ;;  %6377 = vmatprep.subr.bf16.mxu0 %v6730_v39  ;;  %v1599_v18 = vsel %vm1577_vm10, %v1566_v15, %v1290_v40  ;;  %v9431_v40 = vld [vmem:[#allocation7_spill] sm:$0xff] }
 0x20e   : > { %2584 = vrot.lane.b32.xlu1 %v2345_v5, %s9408_s23  ;;  %v2006_v5 = vpack.c.bf16 %v1985_v45, %v1984_v57  ;;  %v1432_v36 = vsel %vm547_vm3, %v9431_v40, %v8375_v19 }
 0x20f   : > { %v8442_v3 = vpop.permute.xlu0 %2626  ;;  %v1469_v17 = vsel %vm1445_vm6, %v1432_v36, %v8398_v0  ;;  %v9432_v36 = vmov 0.0  }
 0x210   : > { %v2673_v7 = vpop.permute.xlu1 %2672  ;;  %6378 = vmatpush3.bf16.msra.mxu0 %v6731_v42  ;;  %v2812_v34 = vsel %vm547_vm3, %v2006_v5, %v8363_v60  ;;  %v6733_v60 = vld [vmem:[%s9428_s3 + $0x28] sm:$0xff]   ;;  %487 = vst.msk [vmem:[#allocation3] sm:$0xff] %vm486_vm14, %v9432_v36  ;;  %491 = vst.msk [vmem:[#allocation3 + $0x90] sm:$0xff] %vm486_vm14, %v9432_v36 }
 0x211   : > { %1203 = vrot.lane.b32.xlu0 %v8099_v53, %s9408_s23  ;;  %v2849_v50 = vsel %vm1445_vm6, %v2812_v34, %v8387_v28  ;;  %6379 = vmatprep.subr.bf16.mxu0 %v6732_v41  ;;  %506 = vst.msk [vmem:[#allocation3 + $0x29] sm:$0x1] %vm493_vm2, %v9432_v36  ;;  %507 = vst.msk [vmem:[#allocation3 + $0x39] sm:$0x1] %vm493_vm2, %v9432_v36 }
 0x212   : > { %1249 = vrot.lane.b32.xlu1 %v1010_v33, %s9409_s30  ;;  %v8470_v33 = vpack.c.bf16 %v9430_v30, %v9429_v43  ;;  %v2881_v2 = vsel %vm1478_vm7, %v2849_v50, %v8404_v27  ;;  %v947_v43 = vld [vmem:[#allocation2 + $0x199] sm:$0xff]  ;;  %v948_v30 = vld [vmem:[#allocation2 + $0x1a1] sm:$0xff]  ;;  %494 = vst.msk [vmem:[#allocation3] sm:$0x1] %vm493_vm2, %v9432_v36  ;;  %495 = vst.msk [vmem:[#allocation3 + $0x10] sm:$0x1] %vm493_vm2, %v9432_v36 }
 0x213   : > { %v8455_v48 = vpop.permute.xlu0 %1291  ;;  %v2913_v28 = vsel %vm1511_vm8, %v2881_v2, %v8417_v55  ;;  %v6734_v55 = vld [vmem:[%s9428_s3 + $0x60] sm:$0xff]   ;;  %496 = vst.msk [vmem:[#allocation3 + $0x20] sm:$0x1] %vm493_vm2, %v9432_v36  ;;  %497 = vst.msk [vmem:[#allocation3 + $0x30] sm:$0x1] %vm493_vm2, %v9432_v36 }
 0x214   : > { %v1338_v24 = vpop.permute.xlu1 %1337  ;;  %6380 = vmatpush3.bf16.msra.mxu0 %v6733_v60  ;;  %v2945_v27 = vsel %vm1544_vm9, %v2913_v28, %v8431_v25  ;;  %v6735_v25 = vld [vmem:[%s9428_s3 + $0x20] sm:$0xff]   ;;  %498 = vst.msk [vmem:[#allocation3 + $0x40] sm:$0x1] %vm493_vm2, %v9432_v36  ;;  %499 = vst.msk [vmem:[#allocation3 + $0x50] sm:$0x1] %vm493_vm2, %v9432_v36 }
 0x215   : > { %2586 = vrot.lane.b32.xlu0 %v8450_v21, %s9408_s23  ;;  %v1632_v54 = vsel %vm1610_vm11, %v1599_v18, %v1338_v24  ;;  %v2977_v57 = vsel %vm1577_vm10, %v2945_v27, %v2673_v7  ;;  %6381 = vmatprep.subr.bf16.mxu0 %v6734_v55  ;;  %v995_v2 = vld [vmem:[#allocation2 + $0x19a] sm:$0xff]  ;;  %500 = vst.msk [vmem:[#allocation3 + $0x60] sm:$0x1] %vm493_vm2, %v9432_v36  ;;  %501 = vst.msk [vmem:[#allocation3 + $0x70] sm:$0x1] %vm493_vm2, %v9432_v36  ;;  %s431_s23 = sand.u32 1, %s6861_s26  }
 0x216   : > { %2632 = vrot.lane.b32.xlu1 %v2393_v37, %s9409_s30  ;;  %v8491_v37 = vpack.c.bf16 %v2235_v61, %v2234_v47  ;;  %502 = vst.msk [vmem:[#allocation3 + $0x80] sm:$0x1] %vm493_vm2, %v9432_v36  ;;  %503 = vst.msk [vmem:[#allocation3 + $0x90] sm:$0x1] %vm493_vm2, %v9432_v36  ;;  %s6009_s20 = sshll.u32 %s431_s23, 4 }
 0x217   : > { %v8477_v10 = vpop.permute.xlu0 %2674  ;;  %505 = vst.msk [vmem:[#allocation3 + $0x19] sm:$0x1] %vm493_vm2, %v9432_v36  ;;  %508 = vst.msk [vmem:[#allocation3 + $0x49] sm:$0x1] %vm493_vm2, %v9432_v36 }
 0x218   : > { %v2721_v20 = vpop.permute.xlu1 %2720  ;;  %6382 = vmatpush3.bf16.msra.mxu0 %v6735_v25  ;;  %509 = vst.msk [vmem:[#allocation3 + $0x59] sm:$0x1] %vm493_vm2, %v9432_v36  ;;  %510 = vst.msk [vmem:[#allocation3 + $0x69] sm:$0x1] %vm493_vm2, %v9432_v36 }
 0x219   : > { %1251 = vrot.lane.b32.xlu0 %v8470_v33, %s9409_s30  ;;  %v3009_v45 = vsel %vm1610_vm11, %v2977_v57, %v2721_v20  ;;  %v6738_v20 = vld [vmem:[%s9428_s3 + $0x50] sm:$0xff]   ;;  %511 = vst.msk [vmem:[#allocation3 + $0x79] sm:$0x1] %vm493_vm2, %v9432_v36  ;;  %512 = vst.msk [vmem:[#allocation3 + $0x89] sm:$0x1] %vm493_vm2, %v9432_v36 }
 0x21a   : > { %1297 = vrot.lane.b32.xlu1 %v771_v46, %s9414_s15  ;;  %v900_v46 = vld [vmem:[#allocation2 + $0x1a0] sm:$0xff] }
 0x21b   : > { %v1340_v35 = vpop.permute.xlu0 %1339  ;;  %v916_v19 = vpack.c.bf16 %v900_v46, %v899_v14 }
 0x21c   : > { %v1386_v51 = vpop.permute.xlu1 %1385 }
 0x21d   : > { %v1665_v9 = vsel %vm1643_vm12, %v1632_v54, %v1386_v51  ;;  %2634 = vrot.lane.b32.xlu0 %v8491_v37, %s9409_s30  ;;  %v6743_v54 = vld [vmem:[%s9428_s3 + $0x8] sm:$0xff]  }
 0x21e   : > { %2680 = vrot.lane.b32.xlu1 %v2155_v6, %s9414_s15  ;;  %6554 = vmatprep.mubr.msk.bf16.mxu0 %vm1698_vm13, %v1665_v9  ;;  %v1502_v6 = vsel %vm1478_vm7, %v1469_v17, %v8412_v16  ;;  %v6736_v16 = vld [vmem:[%s9428_s3 + $0x58] sm:$0xff]  }
 0x21f   : > { %v1535_v0 = vsel %vm1511_vm8, %v1502_v6, %v8424_v63  ;;  %v2723_v24 = vpop.permute.xlu0 %2722  ;;  %v2851_v63 = vsel %vm1445_vm6, %v2815_v62, %v8406_v44  ;;  %6383 = vmatprep.subr.bf16.mxu0 %v6736_v16 }
 0x220   : > { %v2769_v26 = vpop.permute.xlu1 %2768  ;;  %v1568_v5 = vsel %vm1544_vm9, %v1535_v0, %v8438_v58  ;;  %6384 = vmatpush3.bf16.msra.mxu0 %v6737_v32  ;;  %v3360_v0 = vld [vmem:[#allocation2 + $0x31] ss:$2 sm:$0xff] }
 0x221   : > { %v3041_v7 = vsel %vm1643_vm12, %v3009_v45, %v2769_v26  ;;  %v1601_v39 = vsel %vm1577_vm10, %v1568_v5, %v8455_v48  ;;  %1299 = vrot.lane.b32.xlu0 %v916_v19, %s9414_s15  ;;  %6385 = vmatprep.subr.bf16.mxu0 %v6738_v20  ;;  %v3358_v26 = vld [vmem:[#allocation2 + $0x1] ss:$2 sm:$0xff]  ;;  %v3455_v5 = vld [vmem:[#allocation2 + $0x4a] ss:$2 sm:$0xff] }
 0x222   : > { %1345 = vrot.lane.b32.xlu1 %v8099_v53, %s6879_s21  ;;  %6590 = vmatprep.mubr.msk.bf16.mxu1 %vm1698_vm13, %v3041_v7  ;;  %v2883_v53 = vsel %vm1478_vm7, %v2851_v63, %v8419_v59  ;;  %v1634_v58 = vsel %vm1610_vm11, %v1601_v39, %v1340_v35  ;;  %v3453_v39 = vld [vmem:[#allocation2 + $0x1a] ss:$2 sm:$0xff]  ;;  %v6270_v32 = vpack.c.bf16 %v3360_v0, %v3358_v26 }
 0x223   : > { %v2915_v44 = vsel %vm1511_vm8, %v2883_v53, %v8433_v4  ;;  %v8549_v42 = vpop.permute.xlu0 %1053  ;;  %v6739_v4 = vld [vmem:[%s9428_s3 + $0x88] sm:$0xff]  }
 0x224   : > { %v1388_v8 = vpop.permute.xlu1 %1387  ;;  %v2947_v56 = vsel %vm1544_vm9, %v2915_v44, %v8442_v3  ;;  %v964_v3 = vpack.c.bf16 %v948_v30, %v947_v43  ;;  %6602 = vmatprep.subr.bf16.mxu1 %v6739_v4  ;;  %v3384_v43 = vld [vmem:[#allocation2 + $0x32] ss:$2 sm:$0xff] }
 0x225   : > { %v1667_v48 = vsel %vm1643_vm12, %v1634_v58, %v1388_v8  ;;  %v2979_v47 = vsel %vm1577_vm10, %v2947_v56, %v8477_v10  ;;  %2682 = vrot.lane.b32.xlu0 %v916_v19, %s9414_s15  ;;  %6603 = vmatpush3.bf16.msra.mxu1 %v6739_v4  ;;  %v6286_v58 = vpack.c.bf16 %v3455_v5, %v3453_v39  ;;  %v3382_v8 = vld [vmem:[#allocation2 + $0x2] ss:$2 sm:$0xff]  ;;  %v1990_v39 = vld [vmem:[#allocation2 + $0x138] sm:$0xff]  ;;  %s9435_s15 = smov 96  }
 0x226   : > { %2728 = vrot.lane.b32.xlu1 %v8450_v21, %s6879_s21  ;;  %v6544_v59 = vpop.f32.mrf.mxu0  ;;  %6555 = vmatmul.mubr.msk.bf16.gmra.mxu0 %vm1698_vm13, %v1667_v48  ;;  %v6740_v21 = vld [vmem:[%s9428_s3 + $0x10] sm:$0xff]   ;;  %v3011_v61 = vsel %vm1610_vm11, %v2979_v47, %v2723_v24  ;;  %v3478_v30 = vld [vmem:[#allocation2 + $0x60] ss:$2 sm:$0xff]  ;;  %v6274_v56 = vpack.c.bf16 %v3384_v43, %v3382_v8  ;;  %v3502_v47 = vld [vmem:[#allocation2 + $0x61] ss:$2 sm:$0xff] }
 0x227   : > { %v8570_v15 = vpop.permute.xlu0 %2436  ;;  %6386 = vmatpush3.bf16.msra.mxu0 %v6740_v21  ;;  %v1813_v50 = vadd.f32 %v6544_v59, %v8194_v13  ;;  %6604 = vmatprep.subr.bf16.mxu1 %v6742_v12  ;;  %v3476_v48 = vld [vmem:[#allocation2 + $0x30] ss:$2 sm:$0xff] }
 0x228   : > { %v2771_v29 = vpop.permute.xlu1 %2770  ;;  %v1804_v34 = vpop.f32.mrf.mxu0  ;;  %6387 = vmatprep.subr.bf16.mxu0 %v6741_v38  ;;  %v6290_v20 = vpack.c.bf16 %v3478_v30, %v3476_v48  ;;  %v3407_v4 = vld [vmem:[#allocation2 + $0x48] ss:$2 sm:$0xff]  ;;  %v3362_v38 = vld [vmem:[#allocation2 + $0x61] ss:$2 sm:$0xff] }
 0x229   : > { %v3043_v41 = vsel %vm1643_vm12, %v3011_v61, %v2771_v29  ;;  %1347 = vrot.lane.b32.xlu0 %v964_v3, %s6879_s21  ;;  %6605 = vmatpush3.bf16.msra.mxu1 %v6742_v12  ;;  %v1805_v35 = vadd.f32 %v8194_v13, %v1804_v34  ;;  %v3500_v61 = vld [vmem:[#allocation2 + $0x31] ss:$2 sm:$0xff] }
 0x22a   : > { %1393 = vrot.lane.b32.xlu1 %v8470_v33, %s9415_s0  ;;  %v6580_v10 = vpop.f32.mrf.mxu1  ;;  %6591 = vmatmul.mubr.msk.bf16.gmra.mxu1 %vm1698_vm13, %v3043_v41  ;;  %v6545_v18 = vpop.f32.mrf.mxu0  ;;  %v996_v33 = vld [vmem:[#allocation2 + $0x1a2] sm:$0xff]  ;;  %v6294_v41 = vpack.c.bf16 %v3502_v47, %v3500_v61 }
 0x22b   : > { %v3184_v60 = vadd.f32 %v6580_v10, %v8194_v13  ;;  %v8590_v46 = vpop.permute.xlu0 %1055  ;;  %6388 = vmatpush3.bf16.msra.mxu0 %v6743_v54  ;;  %v1012_v40 = vpack.c.bf16 %v996_v33, %v995_v2  ;;  %6614 = vmatprep.subr.mxu1 %v9432_v36  ;;  %v1816_v17 = vadd.f32 %v6545_v18, %v8194_v13  ;;  %v3386_v2 = vld [vmem:[#allocation2 + $0x62] ss:$2 sm:$0xff] }
 0x22c   : > { %v8588_v51 = vpop.permute.xlu1 %1101  ;;  %v3175_v28 = vpop.f32.mrf.mxu1  ;;  %6389 = vmatprep.subr.bf16.mxu0 %v6744_v31 }
 0x22d   : > { %v3280_v14 = vmax.f32 %v1813_v50, %v3184_v60  ;;  %v3176_v9 = vadd.f32 %v8194_v13, %v3175_v28  ;;  %v1807_v27 = vpop.f32.mrf.mxu0  ;;  %2730 = vrot.lane.b32.xlu0 %v964_v3, %s6879_s21  ;;  %s9395_s21 = smov 32   ;;  %v3405_v3 = vld [vmem:[#allocation2 + $0x18] ss:$2 sm:$0xff] }
 0x22e   : > { %2776 = vrot.lane.b32.xlu1 %v8491_v37, %s9415_s0  ;;  %v6581_v55 = vpop.f32.mrf.mxu1  ;;  %v6745_v37 = vld [vmem:[%s9428_s3] sm:$0xff]   ;;  %v1808_v24 = vadd.f32 %v8194_v13, %v1807_v27  ;;  %v6278_v29 = vpack.c.bf16 %v3407_v4, %v3405_v3 }
 0x22f   : > { %3312 = vst.msk [vmem:[#allocation2 + $0x91] sm:$0xff] %vm440_vm0, %v3280_v14  ;;  %v3278_v57 = vmax.f32 %v1805_v35, %v3176_v9  ;;  %v3187_v19 = vadd.f32 %v6581_v55, %v8194_v13  ;;  %v8613_v6 = vpop.permute.xlu0 %2438  ;;  %6390 = vmatpush3.bf16.msra.mxu0 %v6745_v37  ;;  %v1988_v55 = vld [vmem:[#allocation2 + $0x120] sm:$0xff]  ;;  %v1989_v37 = vld [vmem:[#allocation2 + $0x128] sm:$0xff] }
 0x230   : > { %v8611_v25 = vpop.permute.xlu1 %2484  ;;  %v3178_v45 = vpop.f32.mrf.mxu1 }
 0x231   : > { %3310 = vst.msk [vmem:[#allocation2 + $0x79] sm:$0xff] %vm440_vm0, %v3278_v57  ;;  %v3281_v7 = vmax.f32 %v1816_v17, %v3187_v19  ;;  %v3179_v62 = vadd.f32 %v8194_v13, %v3178_v45  ;;  %1395 = vrot.lane.b32.xlu0 %v1012_v40, %s9415_s0  ;;  %v1435_v19 = vsel %vm547_vm3, %v8086_v49, %v8549_v42 }
 0x232   : > { %2778 = vrot.lane.b32.xlu1 %v1012_v40, %s9415_s0  ;;  %s9393_s0 = smov 64   ;;  %v2008_v45 = vpack.c.bf16 %v1989_v37, %v1988_v55  ;;  %v1471_v26 = vsel %vm1445_vm6, %v1435_v19, %v8588_v51 }
 0x233   : > { %3313 = vst.msk [vmem:[#allocation2 + $0x99] sm:$0xff] %vm440_vm0, %v3281_v7  ;;  %v3279_v16 = vmax.f32 %v1808_v24, %v3179_v62  ;;  %v8621_v53 = vpop.permute.xlu0 %1103 }
 0x234   : > { %v1150_v63 = vpop.permute.xlu1 %1149  ;;  %v2818_v5 = vsel %vm547_vm3, %v2008_v45, %v8570_v15  ;;  %v1438_v15 = vsel %vm547_vm3, %v8152_v52, %v8590_v46 }
 0x235   : > { %3311 = vst.msk [vmem:[#allocation2 + $0x81] sm:$0xff] %vm440_vm0, %v3279_v16  ;;  %3691 = vrot.lane.b32.xlu0 %v6286_v58, %s9395_s21  ;;  %v1504_v0 = vsel %vm1478_vm7, %v1471_v26, %v1150_v63  ;;  %v2853_v49 = vsel %vm1445_vm6, %v2818_v5, %v8611_v25  ;;  %v1473_v25 = vsel %vm1445_vm6, %v1438_v15, %v8621_v53 }
 0x236   : > { %3587 = vrot.lane.b32.xlu1 %v6270_v32, %s9395_s21  ;;  %v1991_v32 = vld [vmem:[#allocation2 + $0x140] sm:$0xff] }
 0x237   : > { %v8626_v59 = vpop.permute.xlu0 %2486  ;;  %v2009_v48 = vpack.c.bf16 %v1991_v32, %v1990_v39 }
 0x238   : > { %v2533_v44 = vpop.permute.xlu1 %2532 }
 0x239   : > { %3719 = vrot.lane.b32.xlu0 %v6290_v20, %s9393_s0  ;;  %v2885_v51 = vsel %vm1478_vm7, %v2853_v49, %v2533_v44  ;;  %v2821_v46 = vsel %vm547_vm3, %v2009_v48, %v8613_v6 }
 0x23a   : > { %3615 = vrot.lane.b32.xlu1 %v6274_v56, %s9393_s0  ;;  %v3364_v10 = vld [vmem:[#allocation2 + $0x91] ss:$2 sm:$0xff]  ;;  %v3388_v60 = vld [vmem:[#allocation2 + $0x92] ss:$2 sm:$0xff]  ;;  %v2855_v53 = vsel %vm1445_vm6, %v2821_v46, %v8626_v59 }
 0x23b   : > { %v1152_v34 = vpop.permute.xlu0 %1151  ;;  %v6271_v50 = vpack.c.bf16 %v3364_v10, %v3362_v38  ;;  %v6275_v54 = vpack.c.bf16 %v3388_v60, %v3386_v2 }
 0x23c   : > { %v1198_v21 = vpop.permute.xlu1 %1197  ;;  %v1506_v20 = vsel %vm1478_vm7, %v1473_v25, %v1152_v34  ;;  %v3409_v48 = vld [vmem:[#allocation2 + $0x78] ss:$2 sm:$0xff] }
 0x23d   : > { %3747 = vrot.lane.b32.xlu0 %v6294_v41, %s9391_s16  ;;  %v1537_v7 = vsel %vm1511_vm8, %v1504_v0, %v1198_v21 }
 0x23e   : > { %3643 = vrot.lane.b32.xlu1 %v6278_v29, %s9391_s16 }
 0x23f   : > { %v2535_v18 = vpop.permute.xlu0 %2534 }
 0x240   : > { %v2581_v12 = vpop.permute.xlu1 %2580  ;;  %v2887_v34 = vsel %vm1478_vm7, %v2855_v53, %v2535_v18  ;;  %v3504_v53 = vld [vmem:[#allocation2 + $0x91] ss:$2 sm:$0xff] }
 0x241   : > { %v2917_v8 = vsel %vm1511_vm8, %v2885_v51, %v2581_v12 }
 0x242   : > { %3589 = vrot.lane.b32.xlu1 %v6271_v50, %s9395_s21 }
 0x243   : > { %v1200_v14 = vpop.permute.xlu0 %1199 }
 0x244   : > { %v1246_v33 = vpop.permute.xlu1 %1245  ;;  %v1539_v3 = vsel %vm1511_vm8, %v1506_v20, %v1200_v14 }
 0x245   : > { %v1570_v16 = vsel %vm1544_vm9, %v1537_v7, %v1246_v33 }
 0x246   : > { %3617 = vrot.lane.b32.xlu1 %v6275_v54, %s9393_s0 }
 0x247   : > { %v2583_v35 = vpop.permute.xlu0 %2582 }
 0x248   : > { %v2629_v28 = vpop.permute.xlu1 %2628  ;;  %v2919_v38 = vsel %vm1511_vm8, %v2887_v34, %v2583_v35 }
 0x249   : > { %v2949_v56 = vsel %vm1544_vm9, %v2917_v8, %v2629_v28 }
 0x24b   : > { %v1248_v40 = vpop.permute.xlu0 %1247 }
 0x24c   : > { %v1294_v9 = vpop.permute.xlu1 %1293  ;;  %v1572_v61 = vsel %vm1544_vm9, %v1539_v3, %v1248_v40  ;;  %v3480_v3 = vld [vmem:[#allocation2 + $0x90] ss:$2 sm:$0xff] }
 0x24d   : > { %v1603_v42 = vsel %vm1577_vm10, %v1570_v16, %v1294_v9 }
 0x24f   : > { %v2631_v27 = vpop.permute.xlu0 %2630 }
 0x250   : > { %v2677_v31 = vpop.permute.xlu1 %2676  ;;  %v2951_v50 = vsel %vm1544_vm9, %v2919_v38, %v2631_v27 }
 0x251   : > { %v2981_v44 = vsel %vm1577_vm10, %v2949_v56, %v2677_v31 }
 0x253   : > { %v1296_v57 = vpop.permute.xlu0 %1295 }
 0x254   : > { %v1342_v17 = vpop.permute.xlu1 %1341  ;;  %v1605_v29 = vsel %vm1577_vm10, %v1572_v61, %v1296_v57 }
 0x255   : > { %v1636_v63 = vsel %vm1610_vm11, %v1603_v42, %v1342_v17 }
 0x257   : > { %v2679_v62 = vpop.permute.xlu0 %2678 }
 0x258   : > { %v2725_v24 = vpop.permute.xlu1 %2724  ;;  %v2983_v59 = vsel %vm1577_vm10, %v2951_v50, %v2679_v62 }
 0x259   : > { %v3013_v4 = vsel %vm1610_vm11, %v2981_v44, %v2725_v24  ;;  %v8695_v24 = vld [vmem:[%s9425_s2] ss:$0 sm:$0xff]  ;;  %s433_s2 = scalar_lea.vmem [#allocation4], %s6009_s20 }
 0x25a   : > { %s5875_s30 = sshll.u32 %s433_s2, 4  ;;  %s9312_s30 = int_to_ptr.vmem [resolvable:$true] %s5875_s30 }
 0x25b   : > { %v1344_v43 = vpop.permute.xlu0 %1343 }
 0x25c   : > { %v1390_v58 = vpop.permute.xlu1 %1389  ;;  %v1638_v41 = vsel %vm1610_vm11, %v1605_v29, %v1344_v43  ;;  %v3457_v43 = vld [vmem:[#allocation2 + $0x7a] ss:$2 sm:$0xff] }
 0x25d   : > { %v1669_v30 = vsel %vm1643_vm12, %v1636_v63, %v1390_v58 }
 0x25e   : > { %6558 = vmatprep.mubr.msk.bf16.mxu0 %vm1698_vm13, %v1669_v30 }
 0x25f   : > { %v2727_v21 = vpop.permute.xlu0 %2726 }
 0x260   : > { %v2773_v47 = vpop.permute.xlu1 %2772  ;;  %v3015_v2 = vsel %vm1610_vm11, %v2983_v59, %v2727_v21 }
 0x261   : > { %v3045_v52 = vsel %vm1643_vm12, %v3013_v4, %v2773_v47 }
 0x262   : > { %6594 = vmatprep.mubr.msk.bf16.mxu1 %vm1698_vm13, %v3045_v52 }
 0x263   : > { %v8673_v12 = vpop.permute.xlu0 %1057 }
 0x264   : > { %v1392_v10 = vpop.permute.xlu1 %1391 }
 0x265   : > { %v1671_v6 = vsel %vm1643_vm12, %v1638_v41, %v1392_v10 }
 0x266   : > { %v6548_v60 = vpop.f32.mrf.mxu0  ;;  %6559 = vmatmul.mubr.msk.bf16.gmra.mxu0 %vm1698_vm13, %v1671_v6 }
 0x267   : > { %v8680_v54 = vpop.permute.xlu0 %2440  ;;  %v1829_v35 = vadd.f32 %v6548_v60, %v8194_v13 }
 0x268   : > { %v2775_v33 = vpop.permute.xlu1 %2774  ;;  %v1820_v18 = vpop.f32.mrf.mxu0 }
 0x269   : > { %v3047_v14 = vsel %vm1643_vm12, %v3015_v2, %v2775_v33  ;;  %v1821_v17 = vadd.f32 %v8194_v13, %v1820_v18  ;;  %v1441_v2 = vsel %vm547_vm3, %v8260_v23, %v8673_v12 }
 0x26a   : > { %v6584_v28 = vpop.f32.mrf.mxu1  ;;  %6595 = vmatmul.mubr.msk.bf16.gmra.mxu1 %vm1698_vm13, %v3047_v14  ;;  %v6549_v9 = vpop.f32.mrf.mxu0 }
 0x26b   : > { %v3200_v40 = vadd.f32 %v6584_v28, %v8194_v13  ;;  %v8686_v55 = vpop.permute.xlu0 %1059  ;;  %v1832_v26 = vadd.f32 %v6549_v9, %v8194_v13  ;;  %v2824_v9 = vsel %vm547_vm3, %v8268_v11, %v8680_v54 }
 0x26c   : > { %v1106_v31 = vpop.permute.xlu1 %1105  ;;  %v3191_v37 = vpop.f32.mrf.mxu1  ;;  %v1444_v54 = vsel %vm547_vm3, %v8324_v1, %v8686_v55 }
 0x26d   : > { %v3284_v27 = vmax.f32 %v1829_v35, %v3200_v40  ;;  %v3192_v57 = vadd.f32 %v8194_v13, %v3191_v37  ;;  %v1823_v19 = vpop.f32.mrf.mxu0  ;;  %v1475_v33 = vsel %vm1445_vm6, %v1441_v2, %v1106_v31 }
 0x26e   : > { %v6585_v45 = vpop.f32.mrf.mxu1  ;;  %v1824_v39 = vadd.f32 %v8695_v24, %v1823_v19 }
 0x26f   : > { %3316 = vst.msk [vmem:[#allocation2 + $0xc1] sm:$0xff] %vm440_vm0, %v3284_v27  ;;  %v3282_v0 = vmax.f32 %v1821_v17, %v3192_v57  ;;  %v3203_v7 = vadd.f32 %v8695_v24, %v6585_v45  ;;  %v2443_v5 = vpop.permute.xlu0 %2442 }
 0x270   : > { %v2489_v62 = vpop.permute.xlu1 %2488  ;;  %v3194_v16 = vpop.f32.mrf.mxu1  ;;  %v2827_v45 = vsel %vm547_vm3, %v8344_v22, %v2443_v5  ;;  %vm488_vm3 = vcmask 517120  }
 0x271   : > { %3314 = vst.msk [vmem:[#allocation2 + $0xa9] sm:$0xff] %vm440_vm0, %v3282_v0  ;;  %v3285_v32 = vmax.f32 %v1832_v26, %v3203_v7  ;;  %v3195_v49 = vadd.f32 %v8695_v24, %v3194_v16  ;;  %v2857_v27 = vsel %vm1445_vm6, %v2824_v9, %v2489_v62 }
 0x272   : > { %489 = vst.msk [vmem:[#allocation3 + $0x8] sm:$0x3] %vm488_vm3, %v9432_v36  ;;  %492 = vst.msk [vmem:[#allocation3 + $0x98] sm:$0x3] %vm488_vm3, %v9432_v36 }
 0x273   : > { %3317 = vst.msk [vmem:[#allocation2 + $0xc9] sm:$0xff] %vm440_vm0, %v3285_v32  ;;  %v3283_v13 = vmax.f32 %v1824_v39, %v3195_v49  ;;  %v1108_v51 = vpop.permute.xlu0 %1107 }
 0x274   : > { %v1154_v42 = vpop.permute.xlu1 %1153  ;;  %v1477_v7 = vsel %vm1445_vm6, %v1444_v54, %v1108_v51  ;;  %504 = vst.msk [vmem:[#allocation3 + $0x9] sm:$0x1] %vm493_vm2, %v9432_v36  ;;  %513 = vst.msk [vmem:[#allocation3 + $0x99] sm:$0x1] %vm493_vm2, %v9432_v36 }
 0x275   : > { %3315 = vst.msk [vmem:[#allocation2 + $0xb1] sm:$0xff] %vm440_vm0, %v3283_v13  ;;  %v1508_v18 = vsel %vm1478_vm7, %v1475_v33, %v1154_v42  ;;  %v3526_v13 = vld [vmem:[#allocation2 + $0x62] ss:$2 sm:$0xff] }
 0x277   : > { %v2491_v58 = vpop.permute.xlu0 %2490 }
 0x278   : > { %v2537_v63 = vpop.permute.xlu1 %2536  ;;  %v2859_v26 = vsel %vm1445_vm6, %v2827_v45, %v2491_v58 }
 0x279   : > { %v2889_v23 = vsel %vm1478_vm7, %v2857_v27, %v2537_v63 }
 0x27a   : > { %v3482_v20 = vld [vmem:[#allocation2 + $0xc0] ss:$2 sm:$0xff]  ;;  %v3506_v52 = vld [vmem:[#allocation2 + $0xc1] ss:$2 sm:$0xff] }
 0x27b   : > { %v1156_v30 = vpop.permute.xlu0 %1155  ;;  %v6291_v21 = vpack.c.bf16 %v3482_v20, %v3480_v3  ;;  %v6295_v29 = vpack.c.bf16 %v3506_v52, %v3504_v53  ;;  %v3334_v3 = vld [vmem:[#allocation2] ss:$2 sm:$0xff] }
 0x27c   : > { %v1202_v8 = vpop.permute.xlu1 %1201  ;;  %v3459_v15 = vld [vmem:[#allocation2 + $0xaa] ss:$2 sm:$0xff]  ;;  %v1510_v22 = vsel %vm1478_vm7, %v1477_v7, %v1156_v30 }
 0x27d   : > { %v3411_v56 = vld [vmem:[#allocation2 + $0xa8] ss:$2 sm:$0xff]  ;;  %v6287_v25 = vpack.c.bf16 %v3459_v15, %v3457_v43  ;;  %v1541_v28 = vsel %vm1511_vm8, %v1508_v18, %v1202_v8 }
 0x27e   : > { %v6279_v44 = vpack.c.bf16 %v3411_v56, %v3409_v48  ;;  %v3524_v43 = vld [vmem:[#allocation2 + $0x32] ss:$2 sm:$0xff]  ;;  %v3530_v52 = vld [vmem:[#allocation2 + $0xc2] ss:$2 sm:$0xff] }
 0x27f   : > { %3693 = vrot.lane.b32.xlu0 %v6287_v25, %s9395_s21  ;;  %v2539_v47 = vpop.permute.xlu0 %2538  ;;  %v6298_v56 = vpack.c.bf16 %v3526_v13, %v3524_v43 }
 0x280   : > { %3645 = vrot.lane.b32.xlu1 %v6279_v44, %s9391_s16  ;;  %v2585_v4 = vpop.permute.xlu1 %2584  ;;  %v2891_v62 = vsel %vm1478_vm7, %v2859_v26, %v2539_v47 }
 0x281   : > { %v2921_v17 = vsel %vm1511_vm8, %v2889_v23, %v2585_v4 }
 0x283   : > { %3721 = vrot.lane.b32.xlu0 %v6291_v21, %s9393_s0  ;;  %v1204_v61 = vpop.permute.xlu0 %1203  ;;  %v3336_v21 = vld [vmem:[#allocation2 + $0x30] ss:$2 sm:$0xff] }
 0x284   : > { %v1250_v46 = vpop.permute.xlu1 %1249  ;;  %v1543_v1 = vsel %vm1511_vm8, %v1510_v22, %v1204_v61 }
 0x285   : > { %v1574_v40 = vsel %vm1544_vm9, %v1541_v28, %v1250_v46  ;;  %v3431_v46 = vld [vmem:[#allocation2 + $0x49] ss:$2 sm:$0xff] }
 0x287   : > { %3749 = vrot.lane.b32.xlu0 %v6295_v29, %s9391_s16  ;;  %v2587_v41 = vpop.permute.xlu0 %2586 }
 0x288   : > { %v2633_v34 = vpop.permute.xlu1 %2632  ;;  %v2923_v5 = vsel %vm1511_vm8, %v2891_v62, %v2587_v41  ;;  %v3528_v41 = vld [vmem:[#allocation2 + $0x92] ss:$2 sm:$0xff]  ;;  %v3366_v62 = vld [vmem:[#allocation2 + $0xc1] ss:$2 sm:$0xff] }
 0x289   : > { %v2953_v11 = vsel %vm1544_vm9, %v2921_v17, %v2633_v34 }
 0x28b   : > { %v1252_v38 = vpop.permute.xlu0 %1251 }
 0x28c   : > { %v1298_v10 = vpop.permute.xlu1 %1297  ;;  %v1576_v42 = vsel %vm1544_vm9, %v1543_v1, %v1252_v38  ;;  %v6266_v38 = vpack.c.bf16 %v3336_v21, %v3334_v3 }
 0x28d   : > { %v1607_v37 = vsel %vm1577_vm10, %v1574_v40, %v1298_v10  ;;  %v3429_v10 = vld [vmem:[#allocation2 + $0x19] ss:$2 sm:$0xff] }
 0x28f   : > { %v2635_v50 = vpop.permute.xlu0 %2634 }
 0x290   : > { %v2681_v6 = vpop.permute.xlu1 %2680  ;;  %v2955_v55 = vsel %vm1544_vm9, %v2923_v5, %v2635_v50  ;;  %v3390_v5 = vld [vmem:[#allocation2 + $0xc2] ss:$2 sm:$0xff] }
 0x291   : > { %v2985_v0 = vsel %vm1577_vm10, %v2953_v11, %v2681_v6 }
 0x293   : > { %v1300_v59 = vpop.permute.xlu0 %1299 }
 0x294   : > { %v1346_v60 = vpop.permute.xlu1 %1345  ;;  %v1609_v63 = vsel %vm1577_vm10, %v1576_v42, %v1300_v59  ;;  %v6282_v59 = vpack.c.bf16 %v3431_v46, %v3429_v10  ;;  %v3435_v46 = vld [vmem:[#allocation2 + $0xa9] ss:$2 sm:$0xff] }
 0x295   : > { %v1640_v12 = vsel %vm1610_vm11, %v1607_v37, %v1346_v60  ;;  %v6299_v60 = vpack.c.bf16 %v3530_v52, %v3528_v41  ;;  %v3338_v41 = vld [vmem:[#allocation2 + $0x60] ss:$2 sm:$0xff] }
 0x297   : > { %v2683_v35 = vpop.permute.xlu0 %2682 }
 0x298   : > { %v2729_v14 = vpop.permute.xlu1 %2728  ;;  %v2987_v51 = vsel %vm1577_vm10, %v2955_v55, %v2683_v35 }
 0x299   : > { %v3017_v16 = vsel %vm1610_vm11, %v2985_v0, %v2729_v14 }
 0x29b   : > { %v1348_v57 = vpop.permute.xlu0 %1347 }
 0x29c   : > { %v1394_v31 = vpop.permute.xlu1 %1393  ;;  %v1642_v30 = vsel %vm1610_vm11, %v1609_v63, %v1348_v57 }
 0x29d   : > { %v1673_v19 = vsel %vm1643_vm12, %v1640_v12, %v1394_v31 }
 0x29e   : > { %6562 = vmatprep.mubr.msk.bf16.mxu0 %vm1698_vm13, %v1673_v19 }
 0x29f   : > { %v2731_v32 = vpop.permute.xlu0 %2730 }
 0x2a0   : > { %v2777_v39 = vpop.permute.xlu1 %2776  ;;  %v3019_v58 = vsel %vm1610_vm11, %v2987_v51, %v2731_v32 }
 0x2a1   : > { %v3049_v49 = vsel %vm1643_vm12, %v3017_v16, %v2777_v39 }
 0x2a2   : > { %6598 = vmatprep.mubr.msk.bf16.mxu1 %vm1698_vm13, %v3049_v49 }
 0x2a3   : > { %v1396_v15 = vpop.permute.xlu0 %1395 }
 0x2a4   : > { %v2779_v8 = vpop.permute.xlu1 %2778  ;;  %v1675_v25 = vsel %vm1643_vm12, %v1642_v30, %v1396_v15 }
 0x2a5   : > { %v3051_v48 = vsel %vm1643_vm12, %v3019_v58, %v2779_v8  ;;  %6563 = vmatmul.mubr.msk.bf16.gmra.mxu0 %vm1698_vm13, %v1675_v25 }
 0x2a6   : > { %v6552_v44 = vpop.f32.mrf.mxu0  ;;  %6599 = vmatmul.mubr.msk.bf16.gmra.mxu1 %vm1698_vm13, %v3051_v48 }
 0x2a7   : > { %6606 = vmatprep.mubr.msk.bf16.mxu1 %vm440_vm0, %v6298_v56  ;;  %v3692_v47 = vpop.permute.xlu0 %3691  ;;  %v1845_v29 = vadd.f32 %v8695_v24, %v6552_v44 }
 0x2a8   : > { %v3588_v20 = vpop.permute.xlu1 %3587  ;;  %v1836_v4 = vpop.f32.mrf.mxu0  ;;  %v3810_v40 = vsel %vm440_vm0, %v6282_v59, %v3692_v47 }
 0x2a9   : > { %v1837_v2 = vadd.f32 %v8695_v24, %v1836_v4  ;;  %v3777_v28 = vsel %vm440_vm0, %v6266_v38, %v3588_v20 }
 0x2aa   : > { %v6553_v61 = vpop.f32.mrf.mxu0  ;;  %v6588_v53 = vpop.f32.mrf.mxu1 }
 0x2ab   : > { %v3216_v34 = vadd.f32 %v8695_v24, %v6588_v53  ;;  %v3720_v18 = vpop.permute.xlu0 %3719  ;;  %v1848_v27 = vadd.f32 %v8695_v24, %v6553_v61  ;;  %v3340_v61 = vld [vmem:[#allocation2 + $0x90] ss:$2 sm:$0xff] }
 0x2ac   : > { %v3207_v6 = vpop.f32.mrf.mxu1  ;;  %v3616_v50 = vpop.permute.xlu1 %3615  ;;  %v3821_v12 = vsel %vm486_vm14, %v3810_v40, %v3720_v18  ;;  %v6267_v38 = vpack.c.bf16 %v3340_v61, %v3338_v41 }
 0x2ad   : > { %v3288_v33 = vmax.f32 %v1845_v29, %v3216_v34  ;;  %v3208_v14 = vadd.f32 %v8695_v24, %v3207_v6  ;;  %v1839_v35 = vpop.f32.mrf.mxu0  ;;  %v3788_v31 = vsel %vm486_vm14, %v3777_v28, %v3616_v50  ;;  %v3433_v29 = vld [vmem:[#allocation2 + $0x79] ss:$2 sm:$0xff] }
 0x2ae   : > { %v6589_v9 = vpop.f32.mrf.mxu1  ;;  %6607 = vmatmul.mubr.msk.bf16.vlgmr.msra.gmra.mxu1 %vm440_vm0, %v6299_v60  ;;  %v1840_v19 = vadd.f32 %v8695_v24, %v1839_v35  ;;  %v6283_v10 = vpack.c.bf16 %v3435_v46, %v3433_v29 }
 0x2af   : > { %3320 = vst.msk [vmem:[#allocation2 + $0xf1] sm:$0xff] %vm440_vm0, %v3288_v33  ;;  %v3286_v37 = vmax.f32 %v1837_v2, %v3208_v14  ;;  %v3219_v23 = vadd.f32 %v8695_v24, %v6589_v9  ;;  %v3748_v11 = vpop.permute.xlu0 %3747 }
 0x2b0   : > { %v3210_v17 = vpop.f32.mrf.mxu1  ;;  %v3644_v57 = vpop.permute.xlu1 %3643  ;;  %v3829_v0 = vsel %vm3795_vm15, %v3821_v12, %v3748_v11 }
 0x2b1   : > { %3318 = vst.msk [vmem:[#allocation2 + $0xd9] sm:$0xff] %vm440_vm0, %v3286_v37  ;;  %v3289_v45 = vmax.f32 %v1848_v27, %v3219_v23  ;;  %v3211_v54 = vadd.f32 %v8695_v24, %v3210_v17  ;;  %v3797_v26 = vsel %vm3795_vm15, %v3788_v31, %v3644_v57  ;;  %4035 = vmatprep.mubr.bf16.mxu0 %v3829_v0 }
 0x2b2   : > { %4036 = vmatmul.mubr.bf16.vlgmr.msra.gmra.mxu0 %v3797_v26 }
 0x2b3   : > { %3321 = vst.msk [vmem:[#allocation2 + $0xf9] sm:$0xff] %vm440_vm0, %v3289_v45  ;;  %v3287_v7 = vmax.f32 %v1840_v19, %v3211_v54 }
 0x2b4   : > { %v3590_v48 = vpop.permute.xlu1 %3589 }
 0x2b5   : > { %3319 = vst.msk [vmem:[#allocation2 + $0xe1] sm:$0xff] %vm440_vm0, %v3287_v7  ;;  %v3780_v60 = vsel %vm440_vm0, %v6267_v38, %v3590_v48 }
 0x2b8   : > { %v3618_v53 = vpop.permute.xlu1 %3617 }
 0x2b9   : > { %v3790_v14 = vsel %vm486_vm14, %v3780_v60, %v3618_v53 }
 0x2ba   : > { %v3368_v16 = vld [vmem:[#allocation2 + $0xf1] ss:$2 sm:$0xff]  ;;  %v3392_v22 = vld [vmem:[#allocation2 + $0xf2] ss:$2 sm:$0xff] }
 0x2bb   : > { %v6272_v39 = vpack.c.bf16 %v3368_v16, %v3366_v62  ;;  %v6276_v32 = vpack.c.bf16 %v3392_v22, %v3390_v5  ;;  %v3532_v33 = vld [vmem:[#allocation2 + $0xf2] ss:$2 sm:$0xff]  ;;  %v3508_v11 = vld [vmem:[#allocation2 + $0xf1] ss:$2 sm:$0xff] }
 0x2bc   : > { %v3461_v9 = vld [vmem:[#allocation2 + $0xda] ss:$2 sm:$0xff] }
 0x2bd   : > { %3591 = vrot.lane.b32.xlu1 %v6272_v39, %s9395_s21  ;;  %v3413_v37 = vld [vmem:[#allocation2 + $0xd8] ss:$2 sm:$0xff] }
 0x2be   : > { %v3484_v57 = vld [vmem:[#allocation2 + $0xf0] ss:$2 sm:$0xff] }
 0x2c1   : > { %3619 = vrot.lane.b32.xlu1 %v6276_v32, %s9393_s0 }
 0x2e6   : > { %v6556_v49 = vpop.f32.mrf.mxu0 }
 0x2e7   : > { %v1861_v42 = vadd.f32 %v8695_v24, %v6556_v49 }
 0x2e8   : > { %v1852_v1 = vpop.f32.mrf.mxu0 }
 0x2e9   : > { %v1853_v58 = vadd.f32 %v8695_v24, %v1852_v1 }
 0x2ea   : > { %v6557_v55 = vpop.f32.mrf.mxu0  ;;  %v6592_v13 = vpop.f32.mrf.mxu1 }
 0x2eb   : > { %v3232_v51 = vadd.f32 %v8695_v24, %v6592_v13  ;;  %v1864_v56 = vadd.f32 %v8695_v24, %v6557_v55 }
 0x2ec   : > { %v3223_v63 = vpop.f32.mrf.mxu1  ;;  %v1855_v30 = vpop.f32.mrf.mxu0 }
 0x2ed   : > { %v3292_v8 = vmax.f32 %v1861_v42, %v3232_v51  ;;  %v3224_v43 = vadd.f32 %v8695_v24, %v3223_v63  ;;  %v1856_v4 = vadd.f32 %v8695_v24, %v1855_v30 }
 0x2ee   : > { %v6593_v15 = vpop.f32.mrf.mxu1 }
 0x2ef   : > { %3324 = vst.msk [vmem:[#allocation2 + $0x121] sm:$0xff] %vm440_vm0, %v3292_v8  ;;  %v3290_v25 = vmax.f32 %v1853_v58, %v3224_v43  ;;  %v3235_v44 = vadd.f32 %v8695_v24, %v6593_v15 }
 0x2f0   : > { %v3226_v20 = vpop.f32.mrf.mxu1 }
 0x2f1   : > { %3322 = vst.msk [vmem:[#allocation2 + $0x109] sm:$0xff] %vm440_vm0, %v3290_v25  ;;  %v3293_v47 = vmax.f32 %v1864_v56, %v3235_v44  ;;  %v3227_v3 = vadd.f32 %v8695_v24, %v3226_v20  ;;  %v3694_v21 = vpop.permute.xlu0 %3693 }
 0x2f2   : > { %v3813_v6 = vsel %vm440_vm0, %v6283_v10, %v3694_v21  ;;  %v3646_v50 = vpop.permute.xlu1 %3645 }
 0x2f3   : > { %3325 = vst.msk [vmem:[#allocation2 + $0x129] sm:$0xff] %vm440_vm0, %v3293_v47  ;;  %v3291_v52 = vmax.f32 %v1856_v4, %v3227_v3  ;;  %v3800_v40 = vsel %vm3795_vm15, %v3790_v14, %v3646_v50 }
 0x2f5   : > { %3323 = vst.msk [vmem:[#allocation2 + $0x111] sm:$0xff] %vm440_vm0, %v3291_v52  ;;  %v3722_v34 = vpop.permute.xlu0 %3721 }
 0x2f6   : > { %v3823_v59 = vsel %vm486_vm14, %v3813_v6, %v3722_v34 }
 0x2f9   : > { %v3750_v2 = vpop.permute.xlu0 %3749 }
 0x2fa   : > { %v3534_v18 = vld [vmem:[#allocation2 + $0x122] ss:$2 sm:$0xff]  ;;  %v3832_v28 = vsel %vm3795_vm15, %v3823_v59, %v3750_v2  ;;  %v3510_v45 = vld [vmem:[#allocation2 + $0x121] ss:$2 sm:$0xff] }
 0x2fb   : > { %v6300_v35 = vpack.c.bf16 %v3534_v18, %v3532_v33  ;;  %4043 = vmatprep.mubr.bf16.mxu0 %v3832_v28  ;;  %v3486_v17 = vld [vmem:[#allocation2 + $0x120] ss:$2 sm:$0xff]  ;;  %v6296_v54 = vpack.c.bf16 %v3510_v45, %v3508_v11  ;;  %v3370_v15 = vld [vmem:[#allocation2 + $0x121] ss:$2 sm:$0xff] }
 0x2fc   : > { %v3463_v27 = vld [vmem:[#allocation2 + $0x10a] ss:$2 sm:$0xff]  ;;  %4044 = vmatmul.mubr.bf16.gmra.mxu0 %v3800_v40  ;;  %v6292_v19 = vpack.c.bf16 %v3486_v17, %v3484_v57 }
 0x2fd   : > { %v3415_v23 = vld [vmem:[#allocation2 + $0x108] ss:$2 sm:$0xff]  ;;  %6610 = vmatprep.mubr.msk.bf16.mxu1 %vm440_vm0, %v6300_v35  ;;  %v6288_v12 = vpack.c.bf16 %v3463_v27, %v3461_v9  ;;  %v3439_v35 = vld [vmem:[#allocation2 + $0x109] ss:$2 sm:$0xff]  ;;  %v3437_v27 = vld [vmem:[#allocation2 + $0xd9] ss:$2 sm:$0xff] }
 0x2fe   : > { %v6280_v31 = vpack.c.bf16 %v3415_v23, %v3413_v37  ;;  %v3394_v44 = vld [vmem:[#allocation2 + $0x122] ss:$2 sm:$0xff]  ;;  %v6284_v23 = vpack.c.bf16 %v3439_v35, %v3437_v27 }
 0x2ff   : > { %3695 = vrot.lane.b32.xlu0 %v6288_v12, %s9395_s21  ;;  %v3344_v9 = vld [vmem:[#allocation2 + $0xf0] ss:$2 sm:$0xff]  ;;  %v3342_v12 = vld [vmem:[#allocation2 + $0xc0] ss:$2 sm:$0xff] }
 0x300   : > { %3647 = vrot.lane.b32.xlu1 %v6280_v31, %s9391_s16  ;;  %v6268_v57 = vpack.c.bf16 %v3344_v9, %v3342_v12 }
 0x303   : > { %3723 = vrot.lane.b32.xlu0 %v6292_v19, %s9393_s0 }
 0x307   : > { %3751 = vrot.lane.b32.xlu0 %v6296_v54, %s9391_s16 }
 0x326   : > { %v6560_v26 = vpop.f32.mrf.mxu0 }
 0x327   : > { %v1877_v16 = vadd.f32 %v8695_v24, %v6560_v26 }
 0x328   : > { %v1868_v0 = vpop.f32.mrf.mxu0 }
 0x329   : > { %v1869_v5 = vadd.f32 %v8695_v24, %v1868_v0 }
 0x32a   : > { %v6561_v7 = vpop.f32.mrf.mxu0  ;;  %v6596_v62 = vpop.f32.mrf.mxu1 }
 0x32b   : > { %v3248_v39 = vadd.f32 %v8695_v24, %v6596_v62  ;;  %v1880_v13 = vadd.f32 %v8695_v24, %v6561_v7 }
 0x32c   : > { %v3239_v22 = vpop.f32.mrf.mxu1  ;;  %v1871_v1 = vpop.f32.mrf.mxu0 }
 0x32d   : > { %v3296_v32 = vmax.f32 %v1877_v16, %v3248_v39  ;;  %v3240_v49 = vadd.f32 %v8695_v24, %v3239_v22  ;;  %v1872_v58 = vadd.f32 %v8695_v24, %v1871_v1 }
 0x32e   : > { %v6597_v55 = vpop.f32.mrf.mxu1 }
 0x32f   : > { %3328 = vst.msk [vmem:[#allocation2 + $0x151] sm:$0xff] %vm440_vm0, %v3296_v32  ;;  %v3294_v42 = vmax.f32 %v1869_v5, %v3240_v49  ;;  %v3251_v51 = vadd.f32 %v8695_v24, %v6597_v55  ;;  %v3592_v18 = vpop.permute.xlu1 %3591 }
 0x330   : > { %v3242_v63 = vpop.f32.mrf.mxu1  ;;  %v3783_v16 = vsel %vm440_vm0, %v6268_v57, %v3592_v18 }
 0x331   : > { %3326 = vst.msk [vmem:[#allocation2 + $0x139] sm:$0xff] %vm440_vm0, %v3294_v42  ;;  %v3297_v8 = vmax.f32 %v1880_v13, %v3251_v51  ;;  %v3243_v43 = vadd.f32 %v8695_v24, %v3242_v63 }
 0x333   : > { %3329 = vst.msk [vmem:[#allocation2 + $0x159] sm:$0xff] %vm440_vm0, %v3297_v8  ;;  %v3295_v30 = vmax.f32 %v1872_v58, %v3243_v43  ;;  %v3620_v40 = vpop.permute.xlu1 %3619 }
 0x334   : > { %v3792_v32 = vsel %vm486_vm14, %v3783_v16, %v3620_v40 }
 0x335   : > { %3327 = vst.msk [vmem:[#allocation2 + $0x141] sm:$0xff] %vm440_vm0, %v3295_v30 }
 0x33a   : > { %v3372_v48 = vld [vmem:[#allocation2 + $0x151] ss:$2 sm:$0xff]  ;;  %v3396_v25 = vld [vmem:[#allocation2 + $0x152] ss:$2 sm:$0xff] }
 0x33b   : > { %v6273_v56 = vpack.c.bf16 %v3372_v48, %v3370_v15  ;;  %v6277_v20 = vpack.c.bf16 %v3396_v25, %v3394_v44  ;;  %v3536_v31 = vld [vmem:[#allocation2 + $0x152] ss:$2 sm:$0xff]  ;;  %v3512_v51 = vld [vmem:[#allocation2 + $0x151] ss:$2 sm:$0xff] }
 0x33c   : > { %v3465_v45 = vld [vmem:[#allocation2 + $0x13a] ss:$2 sm:$0xff]  ;;  %v3441_v48 = vld [vmem:[#allocation2 + $0x139] ss:$2 sm:$0xff] }
 0x33d   : > { %3593 = vrot.lane.b32.xlu1 %v6273_v56, %s9395_s21  ;;  %v3417_v7 = vld [vmem:[#allocation2 + $0x138] ss:$2 sm:$0xff] }
 0x33e   : > { %v3488_v55 = vld [vmem:[#allocation2 + $0x150] ss:$2 sm:$0xff]  ;;  %v3346_v25 = vld [vmem:[#allocation2 + $0x120] ss:$2 sm:$0xff] }
 0x33f   : > { %v3348_v30 = vld [vmem:[#allocation2 + $0x150] ss:$2 sm:$0xff] }
 0x341   : > { %3621 = vrot.lane.b32.xlu1 %v6277_v20, %s9393_s0  ;;  %v6269_v20 = vpack.c.bf16 %v3348_v30, %v3346_v25 }
 0x365   : > { %v6564_v47 = vpop.f32.mrf.mxu0 }
 0x366   : > { %v6600_v4 = vpop.f32.mrf.mxu1  ;;  %v1893_v21 = vadd.f32 %v8695_v24, %v6564_v47 }
 0x367   : > { %v3264_v3 = vadd.f32 %v8695_v24, %v6600_v4  ;;  %v1884_v46 = vpop.f32.mrf.mxu0 }
 0x368   : > { %v3255_v52 = vpop.f32.mrf.mxu1  ;;  %v1885_v29 = vadd.f32 %v8695_v24, %v1884_v46 }
 0x369   : > { %v3256_v61 = vadd.f32 %v8695_v24, %v3255_v52  ;;  %v3300_v53 = vmax.f32 %v1893_v21, %v3264_v3  ;;  %v6565_v41 = vpop.f32.mrf.mxu0 }
 0x36a   : > { %v6601_v34 = vpop.f32.mrf.mxu1  ;;  %v1896_v6 = vadd.f32 %v8695_v24, %v6565_v41  ;;  %v4157_v41 = vld [vmem:[%s9361_s5 + $0x8] sm:$0xff] }
 0x36b   : > { %v3267_v10 = vadd.f32 %v8695_v24, %v6601_v34  ;;  %3332 = vst.msk [vmem:[#allocation2 + $0x181] sm:$0xff] %vm440_vm0, %v3300_v53  ;;  %v3298_v38 = vmax.f32 %v1885_v29, %v3256_v61  ;;  %v1887_v60 = vpop.f32.mrf.mxu0  ;;  %v4159_v29 = vld [vmem:[%s9361_s5 + $0x18] sm:$0xff]  ;;  %v4158_v34 = vld [vmem:[%s9361_s5 + $0x10] sm:$0xff] }
 0x36c   : > { %v3258_v50 = vpop.f32.mrf.mxu1  ;;  %v1888_v33 = vadd.f32 %v8695_v24, %v1887_v60  ;;  %6615 = vmatpush3.msra.mxu1 %v4159_v29 }
 0x36d   : > { %v3259_v59 = vadd.f32 %v8695_v24, %v3258_v50  ;;  %3330 = vst.msk [vmem:[#allocation2 + $0x169] sm:$0xff] %vm440_vm0, %v3298_v38  ;;  %v3301_v2 = vmax.f32 %v1896_v6, %v3267_v10  ;;  %6616 = vmatprep.subr.mxu1 %v9432_v36  ;;  %v4156_v10 = vld [vmem:[%s9361_s5] sm:$0xff] }
 0x36e   : > { %6617 = vmatpush3.msra.mxu1 %v4158_v34  ;;  %v6608_v18 = vpop.f32.mrf.mxu1 }
 0x36f   : > { %3333 = vst.msk [vmem:[#allocation2 + $0x189] sm:$0xff] %vm440_vm0, %v3301_v2  ;;  %v3299_v14 = vmax.f32 %v1888_v33, %v3259_v59  ;;  %6618 = vmatprep.subr.mxu1 %v9432_v36 }
 0x370   : > { %6619 = vmatpush3.msra.mxu1 %v4157_v41 }
 0x371   : > { %v3696_v28 = vpop.permute.xlu0 %3695  ;;  %3331 = vst.msk [vmem:[#allocation2 + $0x171] sm:$0xff] %vm440_vm0, %v3299_v14  ;;  %6620 = vmatprep.subr.mxu1 %v9432_v36 }
 0x372   : > { %v3816_v19 = vsel %vm440_vm0, %v6284_v23, %v3696_v28  ;;  %v3648_v11 = vpop.permute.xlu1 %3647  ;;  %6621 = vmatpush3.msra.mxu1 %v4156_v10  ;;  %v6391_v38 = vpop.f32.mrf.mxu0 }
 0x373   : > { %v3803_v1 = vsel %vm3795_vm15, %v3792_v32, %v3648_v11  ;;  %v4102_v28 = vpop.f32.mrf.mxu1 }
 0x374   : > { %v6392_v6 = vpop.f32.mrf.mxu0 }
 0x375   : > { %v3724_v37 = vpop.permute.xlu0 %3723  ;;  %v6609_v9 = vpop.f32.mrf.mxu1  ;;  %v6393_v12 = vadd.f32 %v6392_v6, %v6391_v38 }
 0x376   : > { %v3538_v17 = vld [vmem:[#allocation2 + $0x182] ss:$2 sm:$0xff]  ;;  %v3825_v54 = vsel %vm486_vm14, %v3816_v19, %v3724_v37  ;;  %v3514_v42 = vld [vmem:[#allocation2 + $0x181] ss:$2 sm:$0xff]  ;;  %v6394_v50 = vpop.f32.mrf.mxu0 }
 0x377   : > { %v6301_v24 = vpack.c.bf16 %v3538_v17, %v3536_v31  ;;  %v3490_v49 = vld [vmem:[#allocation2 + $0x180] ss:$2 sm:$0xff]  ;;  %v6297_v63 = vpack.c.bf16 %v3514_v42, %v3512_v51  ;;  %v4105_v37 = vpop.f32.mrf.mxu1 }
 0x378   : > { %v3467_v0 = vld [vmem:[#allocation2 + $0x16a] ss:$2 sm:$0xff]  ;;  %v6293_v13 = vpack.c.bf16 %v3490_v49, %v3488_v55  ;;  %v3443_v43 = vld [vmem:[#allocation2 + $0x169] ss:$2 sm:$0xff]  ;;  %v6395_v60 = vpop.f32.mrf.mxu0  ;;  %v6118_v17 = vld [vmem:[%s9360_s4] ss:$0 sm:$0xff] }
 0x379   : > { %v3752_v26 = vpop.permute.xlu0 %3751  ;;  %v3419_v62 = vld [vmem:[#allocation2 + $0x168] ss:$2 sm:$0xff]  ;;  %6611 = vmatmul.mubr.msk.bf16.gmra.mxu1 %vm440_vm0, %v6301_v24  ;;  %v6289_v39 = vpack.c.bf16 %v3467_v0, %v3465_v45  ;;  %v6285_v44 = vpack.c.bf16 %v3443_v43, %v3441_v48  ;;  %v6396_v27 = vadd.f32 %v6395_v60, %v6394_v50  ;;  %v4038_v11 = vadd.f32 %v6393_v12, %v6118_v17  ;;  %v6754_v12 = vld [vmem:[%s9363_s7 + $0x60] sm:$0xff]  }
 0x37a   : > { %v6281_v22 = vpack.c.bf16 %v3419_v62, %v3417_v7  ;;  %v3835_v5 = vsel %vm3795_vm15, %v3825_v54, %v3752_v26  ;;  %6622 = vmatprep.mubr.msk.f32.mxu1 %vm6884_vm1, %v9432_v36 }
 0x37b   : > { %4051 = vmatprep.mubr.bf16.mxu0 %v3835_v5  ;;  %3697 = vrot.lane.b32.xlu0 %v6289_v39, %s9395_s21  ;;  %v4041_v19 = vadd.f32 %v6396_v27, %v6118_v17  ;;  %v8860_v39 = vadd.f32 %v4102_v28, %v4038_v11  ;;  %v6747_v28 = vld [vmem:[%s9363_s7 + $0x80] sm:$0xff]   ;;  %v6751_v27 = vld [vmem:[%s9363_s7 + $0x30] sm:$0xff]   ;;  %s6813_s21 = sshll.u32 %s6886_s22, 4  ;;  %s6814_s21 = int_to_ptr.vmem [resolvable:$false] %s6813_s21 }
 0x37c   : > { %3649 = vrot.lane.b32.xlu1 %v6281_v22, %s9391_s16  ;;  %4052 = vmatmul.mubr.bf16.gmra.mxu0 %v3803_v1  ;;  %p6816_p0 = scmp.lt.s32.totalorder %s9312_s30, %s6814_s21 }
 0x37d   : > { %v8858_v7 = vadd.f32 %v4105_v37, %v4041_v19  ;;  %v4133_v42 = vsel %vm440_vm0, %v8860_v39, 0.0  ;;  %v6752_v37 = vld [vmem:[%s9363_s7 + $0x68] sm:$0xff]   ;;  %v6758_v19 = vld [vmem:[%s9363_s7 + $0x50] sm:$0xff]  }
 0x37f   : > { %3725 = vrot.lane.b32.xlu0 %v6293_v13, %s9393_s0  ;;  %v4134_v49 = vsel %vm440_vm0, %v8858_v7, 0.0  ;;  %s6815_s0 = scalar_lea.vmem %s6814_s21, 512 }
 0x383   : > { %3753 = vrot.lane.b32.xlu0 %v6297_v63, %s9391_s16  ;;  %s6338_s16 = sshll.u32 %s6980_s29, 8  ;;  %s9316_s29 = scalar_lea.sflag [#allocation5], %s431_s23 }
 0x3af   : > { %v3594_v58 = vpop.permute.xlu1 %3593 }
 0x3b0   : > { %v3786_v3 = vsel %vm440_vm0, %v6269_v20, %v3594_v58  ;;  %v4135_v58 = vadd.f32 %v4134_v49, %v4133_v42 }
 0x3b3   : > { %v3622_v15 = vpop.permute.xlu1 %3621 }
 0x3b4   : > { %v3794_v46 = vsel %vm486_vm14, %v3786_v3, %v3622_v15 }
 0x3bc   : > { %v6397_v59 = vpop.f32.mrf.mxu0 }
 0x3be   : > { %v6398_v2 = vpop.f32.mrf.mxu0 }
 0x3bf   : > { %v6399_v31 = vadd.f32 %v6398_v2, %v6397_v59 }
 0x3c0   : > { %v6400_v33 = vpop.f32.mrf.mxu0 }
 0x3c1   : > { %v4046_v54 = vadd.f32 %v6399_v31, %v6118_v17  ;;  %v6755_v31 = vld [vmem:[%s9363_s7 + $0x20] sm:$0xff]  }
 0x3c2   : > { %v6401_v14 = vpop.f32.mrf.mxu0 }
 0x3c3   : > { %v6402_v24 = vadd.f32 %v6401_v14, %v6400_v33  ;;  %v8862_v22 = vadd.f32 %v6608_v18, %v4046_v54  ;;  %v6746_v14 = vld [vmem:[%s9363_s7 + $0x88] sm:$0xff]  }
 0x3c4   : > { %6625 = vmatprep.subr.bf16.mxu1 %v6746_v14 }
 0x3c5   : > { %v4049_v62 = vadd.f32 %v6402_v24, %v6118_v17  ;;  %v4136_v51 = vsel %vm440_vm0, %v8862_v22, 0.0  ;;  %v6759_v24 = vld [vmem:[%s9363_s7 + $0x10] sm:$0xff]  }
 0x3c7   : > { %v8866_v1 = vadd.f32 %v6609_v9, %v4049_v62  ;;  %v6749_v9 = vld [vmem:[%s9363_s7 + $0x38] sm:$0xff]  }
 0x3c9   : > { %v4138_v30 = vsel %vm440_vm0, %v8866_v1, 0.0 }
 0x3ed   : > { %v3698_v8 = vpop.permute.xlu0 %3697 }
 0x3ee   : > { %v3819_v4 = vsel %vm440_vm0, %v6285_v44, %v3698_v8  ;;  %v3650_v47 = vpop.permute.xlu1 %3649 }
 0x3ef   : > { %v3806_v53 = vsel %vm3795_vm15, %v3794_v46, %v3650_v47 }
 0x3f1   : > { %v3726_v56 = vpop.permute.xlu0 %3725 }
 0x3f2   : > { %v3827_v21 = vsel %vm486_vm14, %v3819_v4, %v3726_v56  ;;  %v4137_v56 = vadd.f32 %v4136_v51, %v4135_v58 }
 0x3f4   : > { %v4139_v4 = vadd.f32 %v4138_v30, %v4137_v56  ;;  %v6761_v30 = vld [vmem:[%s9363_s7 + $0x8] sm:$0xff]  }
 0x3f5   : > { %v3754_v52 = vpop.permute.xlu0 %3753 }
 0x3f6   : > { %v3838_v61 = vsel %vm3795_vm15, %v3827_v21, %v3754_v52 }
 0x3f7   : > { %4059 = vmatprep.mubr.bf16.mxu0 %v3838_v61 }
 0x3f8   : > { %4060 = vmatmul.mubr.bf16.gmra.mxu0 %v3806_v53 }
 0x439   : > { %v6612_v57 = vpop.f32.mrf.mxu1 }
 0x43b   : > { %v4118_v0 = vpop.f32.mrf.mxu1 }
 0x43c   : > { %v6403_v35 = vpop.f32.mrf.mxu0 }
 0x43d   : > { %v6613_v32 = vpop.f32.mrf.mxu1 }
 0x43e   : > { %v6404_v40 = vpop.f32.mrf.mxu0 }
 0x43f   : > { %v6405_v26 = vadd.f32 %v6404_v40, %v6403_v35  ;;  %v4121_v8 = vpop.f32.mrf.mxu1  ;;  %v6748_v35 = vld [vmem:[%s9363_s7 + $0x78] sm:$0xff]   ;;  %v6750_v40 = vld [vmem:[%s9363_s7 + $0x70] sm:$0xff]  }
 0x440   : > { %v6406_v23 = vpop.f32.mrf.mxu0  ;;  %6426 = vmatprep.subr.bf16.mxu0 %v6748_v35 }
 0x441   : > { %v4054_v5 = vadd.f32 %v6405_v26, %v6118_v17  ;;  %6427 = vmatpush3.bf16.msra.mxu0 %v6749_v9 }
 0x442   : > { %v6407_v45 = vpop.f32.mrf.mxu0  ;;  %6428 = vmatprep.subr.bf16.mxu0 %v6750_v40 }
 0x443   : > { %v6408_v16 = vadd.f32 %v6407_v45, %v6406_v23  ;;  %v8872_v63 = vadd.f32 %v4118_v0, %v4054_v5  ;;  %v6753_v23 = vld [vmem:[%s9363_s7 + $0x28] sm:$0xff]   ;;  %v4160_v45 = vld [vmem:[%s9362_s6] sm:$0x1]  ;;  %v4240_v5 = vlaneseq }
 0x445   : > { %v4057_v55 = vadd.f32 %v6408_v16, %v6118_v17  ;;  %v4140_v44 = vsel %vm440_vm0, %v8872_v63, 0.0  ;;  %6429 = vmatpush3.bf16.msra.mxu0 %v6751_v27 }
 0x446   : > { %v4141_v46 = vadd.f32 %v4140_v44, %v4139_v4  ;;  %6430 = vmatprep.subr.bf16.mxu0 %v6752_v37 }
 0x447   : > { %v8876_v15 = vadd.f32 %v4121_v8, %v4057_v55 }
 0x449   : > { %v4142_v3 = vsel %vm440_vm0, %v8876_v15, 0.0  ;;  %6431 = vmatpush3.bf16.msra.mxu0 %v6753_v23 }
 0x44a   : > { %v4143_v29 = vadd.f32 %v4142_v3, %v4141_v46  ;;  %6432 = vmatprep.subr.bf16.mxu0 %v6754_v12 }
 0x44d   : > { %6433 = vmatpush3.bf16.msra.mxu0 %v6755_v31 }
 0x4b8   : > { %v6409_v13 = vpop.f32.mrf.mxu0 }
 0x4ba   : > { %v6410_v43 = vpop.f32.mrf.mxu0 }
 0x4bb   : > { %v6411_v48 = vadd.f32 %v6410_v43, %v6409_v13  ;;  %v6760_v43 = vld [vmem:[%s9363_s7 + $0x48] sm:$0xff]  }
 0x4bc   : > { %v6412_v25 = vpop.f32.mrf.mxu0 }
 0x4bd   : > { %v4062_v20 = vadd.f32 %v6411_v48, %v6118_v17 }
 0x4be   : > { %v6413_v47 = vpop.f32.mrf.mxu0 }
 0x4bf   : > { %v8882_v21 = vadd.f32 %v6612_v57, %v4062_v20  ;;  %v6414_v52 = vadd.f32 %v6413_v47, %v6412_v25  ;;  %v6757_v57 = vld [vmem:[%s9363_s7 + $0x18] sm:$0xff]  }
 0x4c1   : > { %v4144_v61 = vsel %vm440_vm0, %v8882_v21, 0.0  ;;  %v4065_v53 = vadd.f32 %v6414_v52, %v6118_v17  ;;  %v6756_v17 = vld [vmem:[%s9363_s7 + $0x58] sm:$0xff]  }
 0x4c2   : > { %v4145_v41 = vadd.f32 %v4144_v61, %v4143_v29  ;;  %6434 = vmatprep.subr.bf16.mxu0 %v6756_v17 }
 0x4c3   : > { %v8886_v34 = vadd.f32 %v6613_v32, %v4065_v53  ;;  %6435 = vmatpush3.bf16.msra.mxu0 %v6757_v57  ;;  %v8978_v32 = vshrl.u32 %v4240_v5, 7 }
 0x4c4   : > { %6436 = vmatprep.subr.bf16.mxu0 %v6758_v19 }
 0x4c5   : > { %v4146_v10 = vsel %vm440_vm0, %v8886_v34, 0.0  ;;  %v4242_v49 = vsub.s32 0, %v8978_v32 }
 0x4c6   : > { %v4147_v38 = vadd.f32 %v4146_v10, %v4145_v41  ;;  %v4293_v10 = vld [vmem:[#allocation3 + $0x2] sm:$0xff] }
 0x4c7   : > { %6437 = vmatpush3.bf16.msra.mxu0 %v6759_v24 }
 0x4c8   : > { %v4148_v6 = vrot.slane %v4147_v38, 4  ;;  %6438 = vmatprep.subr.bf16.mxu0 %v6760_v43  ;;  %v4261_v43 = vld [vmem:[#allocation3] sm:$0xff] }
 0x4ca   : > { %v4149_v50 = vadd.f32 %v4148_v6, %v4147_v38 }
 0x4cb   : > { %6439 = vmatpush3.bf16.msra.mxu0 %v6761_v30 }
 0x4cc   : > { %v4150_v60 = vrot.slane %v4149_v50, 2 }
 0x4ce   : > { %v4151_v59 = vadd.f32 %v4150_v60, %v4149_v50 }
 0x4d0   : > { %v4152_v2 = vrot.slane %v4151_v59, 1 }
 0x4d2   : > { %v4153_v33 = vadd.f32 %v4152_v2, %v4151_v59 }
 0x4d4   : > { %v4155_v18 = vmul.f32 0.015625, %v4153_v33  ;;  %v4397_v33 = vld [vmem:[#allocation3 + $0x92] sm:$0xff] }
 0x4d6   : > { %6623 = vmatmul.mubr.msk.f32.vlgmr.msra.gmra.mxu1 %vm440_vm0, %v4155_v18 }
 0x4d7   : > { %6626 = vmatpush3.bf16.msra.mxu1 %v6746_v14 }
 0x4d8   : > { %6627 = vmatprep.subr.bf16.mxu1 %v6747_v28 }
 0x4db   : > { %6628 = vmatpush3.bf16.msra.mxu1 %v6747_v28 }
 0x596   : > { %v4230_v11 = vpop.f32.mrf.mxu1 }
 0x597   : > { %v4231_v54 = vadd.f32 %v4230_v11, %v4160_v45 }
 0x598   : > { %v6624_v26 = vpop.f32.mrf.mxu1 }
 0x599   : > { %v6142_v0 = vmul.f32 -1.442695, %v4231_v54 }
 0x59b   : > { %6800 = vpow2.f32 %v6142_v0 }
 0x5a8   : > { %v6801_v62 = vpop.eup %6800 }
 0x5a9   : > { %v4237_v16 = vadd.f32 1.0, %v6801_v62 }
 0x5ab   : > { %6802 = vrcp.f32 %v4237_v16  ;;  %v4365_v16 = vld [vmem:[#allocation3 + $0x90] sm:$0xff] }
 0x5b8   : > { %v6803_v55 = vpop.eup %6802 }
 0x5b9   : > { %v4243_v13 = vrot.slane %v6803_v55, %v4242_v49 }
 0x5bb   : > { %v4245_v42 = vmul.f32 %v4243_v13, %v8858_v7  ;;  %v4246_v51 = vmul.f32 %v4243_v13, %v8862_v22  ;;  %v4244_v58 = vmul.f32 %v4243_v13, %v8860_v39  ;;  %v4247_v8 = vmul.f32 %v4243_v13, %v8866_v1  ;;  %v6762_v39 = vld [vmem:[%s9363_s7 + $0x40] sm:$0xff]  }
 0x5bc   : > { %v4248_v48 = vmul.f32 %v4243_v13, %v8872_v63  ;;  %v4249_v56 = vmul.f32 %v4243_v13, %v8876_v15  ;;  %v4250_v7 = vmul.f32 %v4243_v13, %v8882_v21  ;;  %v4251_v22 = vmul.f32 %v4243_v13, %v8886_v34  ;;  %v6763_v1 = vld [vmem:[%s9363_s7] sm:$0xff]   ;;  %6440 = vmatprep.subr.bf16.mxu0 %v6762_v39  ;;  %v4277_v63 = vld [vmem:[#allocation3 + $0x1] sm:$0xff] }
 0x5bd   : > { %4254 = vst.msk [vmem:[#allocation3 + $0x21] sm:$0xff] %vm440_vm0, %v4245_v42  ;;  %4255 = vst.msk [vmem:[#allocation3 + $0x31] sm:$0xff] %vm440_vm0, %v4246_v51  ;;  %6441 = vmatpush3.bf16.msra.mxu0 %v6763_v1  ;;  %v4381_v13 = vld [vmem:[#allocation3 + $0x91] sm:$0xff] }
 0x5be   : > { %4253 = vst.msk [vmem:[#allocation3 + $0x11] sm:$0xff] %vm440_vm0, %v4244_v58  ;;  %4256 = vst.msk [vmem:[#allocation3 + $0x41] sm:$0xff] %vm440_vm0, %v4247_v8 }
 0x5bf   : > { %4257 = vst.msk [vmem:[#allocation3 + $0x51] sm:$0xff] %vm440_vm0, %v4248_v48  ;;  %4258 = vst.msk [vmem:[#allocation3 + $0x61] sm:$0xff] %vm440_vm0, %v4249_v56 }
 0x5c0   : > { %4259 = vst.msk [vmem:[#allocation3 + $0x71] sm:$0xff] %vm440_vm0, %v4250_v7  ;;  %4260 = vst.msk [vmem:[#allocation3 + $0x81] sm:$0xff] %vm440_vm0, %v4251_v22 }
 0x5c4   : > { %v4390_v15 = vld [vmem:[#allocation3 + $0x22] sm:$0xff]  ;;  %v4391_v25 = vld [vmem:[#allocation3 + $0x32] sm:$0xff] }
 0x5c5   : > { %v4341_v44 = vld [vmem:[#allocation3 + $0x12] sm:$0xff]  ;;  %v6334_v20 = vpack.c.bf16 %v4391_v25, %v4390_v15  ;;  %v4392_v3 = vld [vmem:[#allocation3 + $0x42] sm:$0xff] }
 0x5c6   : > { %v6322_v4 = vpack.c.bf16 %v4390_v15, %v4341_v44  ;;  %v9011_v47 = vld [vmem:[#allocation3 + $0x11] sm:$0xff]  ;;  %v4394_v61 = vld [vmem:[#allocation3 + $0x62] sm:$0xff]  ;;  %v6310_v6 = vpack.c.bf16 %v4341_v44, %v4293_v10  ;;  %v6323_v35 = vpack.c.bf16 %v4392_v3, %v4391_v25 }
 0x5c7   : > { %v4393_v21 = vld [vmem:[#allocation3 + $0x52] sm:$0xff]  ;;  %v6306_v52 = vpack.c.bf16 %v9011_v47, %v4277_v63  ;;  %v4358_v29 = vld [vmem:[#allocation3 + $0x20] sm:$0xff]  ;;  %6629 = vmatprep.mubr.msk.bf16.mxu1 %vm440_vm0, %v6334_v20 }
 0x5c8   : > { %v6335_v46 = vpack.c.bf16 %v4393_v21, %v4392_v3  ;;  %v4395_v53 = vld [vmem:[#allocation3 + $0x72] sm:$0xff]  ;;  %4550 = vrot.lane.b32.xlu0 %v6322_v4, %s9433_s24  ;;  %v9021_v50 = vld [vmem:[#allocation3 + $0x21] sm:$0xff]  ;;  %v6324_v17 = vpack.c.bf16 %v4394_v61, %v4393_v21 }
 0x5c9   : > { %v6336_v34 = vpack.c.bf16 %v4395_v53, %v4394_v61  ;;  %v4359_v41 = vld [vmem:[#allocation3 + $0x30] sm:$0xff]  ;;  %4446 = vrot.lane.b32.xlu1 %v6306_v52, %s9433_s24  ;;  %v4396_v2 = vld [vmem:[#allocation3 + $0x82] sm:$0xff]  ;;  %v6318_v48 = vpack.c.bf16 %v9021_v50, %v9011_v47 }
 0x5ca   : > { %6630 = vmatmul.mubr.msk.bf16.vlgmr.msra.gmra.mxu1 %vm440_vm0, %v6335_v46  ;;  %v9019_v38 = vpack.c.bf16 %v4359_v41, %v4358_v29  ;;  %v9023_v60 = vld [vmem:[#allocation3 + $0x31] sm:$0xff]  ;;  %v6337_v28 = vpack.c.bf16 %v4397_v33, %v4396_v2  ;;  %v4360_v9 = vld [vmem:[#allocation3 + $0x40] sm:$0xff]  ;;  %v6325_v0 = vpack.c.bf16 %v4396_v2, %v4395_v53 }
 0x5cb   : > { %6633 = vmatprep.mubr.msk.bf16.mxu1 %vm440_vm0, %v6336_v34  ;;  %v4309_v59 = vld [vmem:[#allocation3 + $0x10] sm:$0xff]  ;;  %v6330_v18 = vpack.c.bf16 %v9023_v60, %v9021_v50  ;;  %v4376_v37 = vld [vmem:[#allocation3 + $0x41] sm:$0xff]  ;;  %v6315_v31 = vpack.c.bf16 %v4360_v9, %v4359_v41 }
 0x5cc   : > { %4578 = vrot.lane.b32.xlu0 %v9019_v38, %s9434_s1  ;;  %v6314_v14 = vpack.c.bf16 %v4358_v29, %v4309_v59  ;;  %v4361_v40 = vld [vmem:[#allocation3 + $0x50] sm:$0xff]  ;;  %v4362_v57 = vld [vmem:[#allocation3 + $0x60] sm:$0xff]  ;;  %v6302_v7 = vpack.c.bf16 %v4309_v59, %v4261_v43  ;;  %v6319_v21 = vpack.c.bf16 %v4376_v37, %v9023_v60  ;;  %v6776_v43 = vld [vmem:[%s9365_s9 + $0xe8] sm:$0xff]  }
 0x5cd   : > { %4474 = vrot.lane.b32.xlu1 %v6310_v6, %s9434_s1  ;;  %v9035_v27 = vpack.c.bf16 %v4361_v40, %v4360_v9  ;;  %v9037_v23 = vld [vmem:[#allocation3 + $0x51] sm:$0xff]  ;;  %v4378_v45 = vld [vmem:[#allocation3 + $0x61] sm:$0xff]  ;;  %v6316_v26 = vpack.c.bf16 %v4362_v57, %v4361_v40 }
 0x5ce   : > { %v6331_v12 = vpack.c.bf16 %v9037_v23, %v4376_v37  ;;  %v4363_v19 = vld [vmem:[#allocation3 + $0x70] sm:$0xff]  ;;  %v4364_v62 = vld [vmem:[#allocation3 + $0x80] sm:$0xff]  ;;  %v6320_v2 = vpack.c.bf16 %v4378_v45, %v9037_v23 }
 0x5cf   : > { %v9047_v24 = vpack.c.bf16 %v4363_v19, %v4362_v57  ;;  %v9049_v11 = vld [vmem:[#allocation3 + $0x71] sm:$0xff]  ;;  %v6329_v5 = vpack.c.bf16 %v4365_v16, %v4364_v62  ;;  %v4380_v55 = vld [vmem:[#allocation3 + $0x81] sm:$0xff]  ;;  %v6317_v51 = vpack.c.bf16 %v4364_v62, %v4363_v19 }
 0x5d0   : > { %4606 = vrot.lane.b32.xlu0 %v6330_v18, %s9435_s15  ;;  %v6332_v54 = vpack.c.bf16 %v9049_v11, %v4378_v45  ;;  %v6333_v42 = vpack.c.bf16 %v4381_v13, %v4380_v55  ;;  %v6769_v13 = vld [vmem:[%s9365_s9 + $0xb8] sm:$0xff]  }
 0x5d1   : > { %4502 = vrot.lane.b32.xlu1 %v6314_v14, %s9435_s15 }
 0x5d2   : > { %6634 = vmatmul.mubr.msk.bf16.gmra.mxu1 %vm440_vm0, %v6337_v28 }
 0x5d4   : > { %4552 = vrot.lane.b32.xlu0 %v6323_v35, %s9433_s24 }
 0x5d5   : > { %4448 = vrot.lane.b32.xlu1 %v6330_v18, %s9433_s24 }
 0x5d8   : > { %4580 = vrot.lane.b32.xlu0 %v9035_v27, %s9434_s1 }
 0x5d9   : > { %4476 = vrot.lane.b32.xlu1 %v6334_v20, %s9434_s1 }
 0x5dc   : > { %4608 = vrot.lane.b32.xlu0 %v6331_v12, %s9435_s15 }
 0x5dd   : > { %4504 = vrot.lane.b32.xlu1 %v6315_v31, %s9435_s15 }
 0x5e0   : > { %4554 = vrot.lane.b32.xlu0 %v6324_v17, %s9433_s24  ;;  %v6321_v17 = vpack.c.bf16 %v4380_v55, %v9049_v11  ;;  %v6764_v11 = vld [vmem:[%s9365_s9 + $0x78] sm:$0xff]  }
 0x5e1   : > { %4450 = vrot.lane.b32.xlu1 %v6331_v12, %s9433_s24  ;;  %v6768_v55 = vld [vmem:[%s9365_s9 + $0xf8] sm:$0xff]   ;;  %6472 = vmatprep.subr.bf16.mxu1 %v6764_v11 }
 0x5e2   : > { %6494 = vmatprep.subr.bf16.mxu0 %v6768_v55 }
 0x5e4   : > { %4582 = vrot.lane.b32.xlu0 %v9047_v24, %s9434_s1 }
 0x5e5   : > { %4478 = vrot.lane.b32.xlu1 %v6335_v46, %s9434_s1 }
 0x5e8   : > { %4610 = vrot.lane.b32.xlu0 %v6332_v54, %s9435_s15 }
 0x5e9   : > { %4506 = vrot.lane.b32.xlu1 %v6316_v26, %s9435_s15 }
 0x5ec   : > { %4556 = vrot.lane.b32.xlu0 %v6325_v0, %s9433_s24 }
 0x5ed   : > { %4452 = vrot.lane.b32.xlu1 %v6332_v54, %s9433_s24 }
 0x5f0   : > { %4584 = vrot.lane.b32.xlu0 %v6329_v5, %s9434_s1  ;;  %v6766_v5 = vld [vmem:[%s9365_s9 + $0x70] sm:$0xff]  }
 0x5f1   : > { %4480 = vrot.lane.b32.xlu1 %v6336_v34, %s9434_s1 }
 0x5f4   : > { %4612 = vrot.lane.b32.xlu0 %v6333_v42, %s9435_s15  ;;  %v6772_v42 = vld [vmem:[%s9365_s9 + $0xf0] sm:$0xff]  }
 0x5f5   : > { %4508 = vrot.lane.b32.xlu1 %v6317_v51, %s9435_s15  ;;  %v6767_v51 = vld [vmem:[%s9365_s9 + $0x30] sm:$0xff]   ;;  %s9310_s15 = scalar_lea.hbm %s9369_s13, %s6338_s16 }
 0x63a   : > { %v4551_v58 = vpop.permute.xlu0 %4550 }
 0x63b   : > { %v4447_v8 = vpop.permute.xlu1 %4446  ;;  %v4668_v22 = vsel %vm440_vm0, %v6318_v48, %v4551_v58  ;;  %v6770_v58 = vld [vmem:[%s9365_s9 + $0x68] sm:$0xff]   ;;  %v6774_v48 = vld [vmem:[%s9365_s9 + $0x60] sm:$0xff]  }
 0x63c   : > { %v4636_v39 = vsel %vm440_vm0, %v6302_v7, %v4447_v8  ;;  %v6773_v8 = vld [vmem:[%s9365_s9 + $0xb0] sm:$0xff]   ;;  %v6780_v7 = vld [vmem:[%s9365_s9 + $0xe0] sm:$0xff]  }
 0x63e   : > { %v4579_v30 = vpop.permute.xlu0 %4578 }
 0x63f   : > { %v4475_v56 = vpop.permute.xlu1 %4474  ;;  %v4679_v1 = vsel %vm486_vm14, %v4668_v22, %v4579_v30  ;;  %v6771_v30 = vld [vmem:[%s9365_s9 + $0x28] sm:$0xff]   ;;  %v6775_v22 = vld [vmem:[%s9365_s9 + $0x20] sm:$0xff]  }
 0x640   : > { %v4647_v15 = vsel %vm486_vm14, %v4636_v39, %v4475_v56  ;;  %v6777_v56 = vld [vmem:[%s9365_s9 + $0xa8] sm:$0xff]   ;;  %v6778_v39 = vld [vmem:[%s9365_s9 + $0x58] sm:$0xff]  }
 0x642   : > { %v4607_v63 = vpop.permute.xlu0 %4606 }
 0x643   : > { %v4503_v25 = vpop.permute.xlu1 %4502  ;;  %v4687_v44 = vsel %vm3795_vm15, %v4679_v1, %v4607_v63  ;;  %v6781_v1 = vld [vmem:[%s9365_s9 + $0xa0] sm:$0xff]   ;;  %v6784_v63 = vld [vmem:[%s9365_s9 + $0xd8] sm:$0xff]  }
 0x644   : > { %v4655_v20 = vsel %vm3795_vm15, %v4647_v15, %v4503_v25  ;;  %4893 = vmatprep.mubr.bf16.mxu0 %v4687_v44  ;;  %v6779_v15 = vld [vmem:[%s9365_s9 + $0x18] sm:$0xff]   ;;  %v6782_v25 = vld [vmem:[%s9365_s9 + $0x50] sm:$0xff]  }
 0x645   : > { %4894 = vmatmul.mubr.bf16.vlgmr.msra.gmra.mxu0 %v4655_v20  ;;  %v6785_v44 = vld [vmem:[%s9365_s9 + $0x98] sm:$0xff]   ;;  %v6783_v20 = vld [vmem:[%s9365_s9 + $0x10] sm:$0xff]  }
 0x646   : > { %v4553_v4 = vpop.permute.xlu0 %4552  ;;  %6495 = vmatpush3.bf16.msra.mxu0 %v6769_v13 }
 0x647   : > { %v4449_v47 = vpop.permute.xlu1 %4448  ;;  %v4671_v46 = vsel %vm440_vm0, %v6319_v21, %v4553_v4  ;;  %6496 = vmatprep.subr.bf16.mxu0 %v6772_v42  ;;  %v9164_v21 = vld [vmem:[%s9364_s8] ss:$0 sm:$0xff] }
 0x648   : > { %v4639_v61 = vsel %vm440_vm0, %v9019_v38, %v4449_v47 }
 0x64a   : > { %v4581_v3 = vpop.permute.xlu0 %4580  ;;  %6497 = vmatpush3.bf16.msra.mxu0 %v6773_v8 }
 0x64b   : > { %v4477_v52 = vpop.permute.xlu1 %4476  ;;  %v4681_v53 = vsel %vm486_vm14, %v4671_v46, %v4581_v3  ;;  %6498 = vmatprep.subr.bf16.mxu0 %v6776_v43 }
 0x64c   : > { %v4649_v34 = vsel %vm486_vm14, %v4639_v61, %v4477_v52 }
 0x64e   : > { %v4609_v29 = vpop.permute.xlu0 %4608  ;;  %6499 = vmatpush3.bf16.msra.mxu0 %v6777_v56  ;;  %v6786_v56 = vld [vmem:[%s9365_s9 + $0x48] sm:$0xff]  }
 0x64f   : > { %v4505_v41 = vpop.permute.xlu1 %4504  ;;  %v4690_v10 = vsel %vm3795_vm15, %v4681_v53, %v4609_v29  ;;  %6500 = vmatprep.subr.bf16.mxu0 %v6780_v7  ;;  %v6787_v7 = vld [vmem:[%s9365_s9 + $0x8] sm:$0xff]  }
 0x650   : > { %4901 = vmatprep.mubr.bf16.mxu0 %v4690_v10  ;;  %v4658_v6 = vsel %vm3795_vm15, %v4649_v34, %v4505_v41 }
 0x651   : > { %4902 = vmatmul.mubr.bf16.gmra.mxu0 %v4658_v6 }
 0x652   : > { %v4555_v50 = vpop.permute.xlu0 %4554  ;;  %6501 = vmatpush3.bf16.msra.mxu0 %v6781_v1 }
 0x653   : > { %v4451_v60 = vpop.permute.xlu1 %4450  ;;  %v4674_v38 = vsel %vm440_vm0, %v6320_v2, %v4555_v50  ;;  %6502 = vmatprep.subr.bf16.mxu0 %v6784_v63  ;;  %v6789_v63 = vld [vmem:[%s9365_s9 + $0x90] sm:$0xff]  }
 0x654   : > { %v4642_v18 = vsel %vm440_vm0, %v9035_v27, %v4451_v60 }
 0x656   : > { %v4583_v59 = vpop.permute.xlu0 %4582  ;;  %6503 = vmatpush3.bf16.msra.mxu0 %v6785_v44  ;;  %v5027_v44 = vld [vmem:[#allocation3 + $0x1] ss:$2 sm:$0xf] }
 0x657   : > { %v4479_v33 = vpop.permute.xlu1 %4478  ;;  %v4683_v14 = vsel %vm486_vm14, %v4674_v38, %v4583_v59 }
 0x658   : > { %v4651_v35 = vsel %vm486_vm14, %v4642_v18, %v4479_v33 }
 0x65a   : > { %v4611_v28 = vpop.permute.xlu0 %4610 }
 0x65b   : > { %v4507_v9 = vpop.permute.xlu1 %4506  ;;  %v4693_v40 = vsel %vm3795_vm15, %v4683_v14, %v4611_v28 }
 0x65c   : > { %4909 = vmatprep.mubr.bf16.mxu0 %v4693_v40  ;;  %v4661_v37 = vsel %vm3795_vm15, %v4651_v35, %v4507_v9 }
 0x65d   : > { %4910 = vmatmul.mubr.bf16.gmra.mxu0 %v4661_v37 }
 0x65e   : > { %v4557_v12 = vpop.permute.xlu0 %4556 }
 0x65f   : > { %v4453_v23 = vpop.permute.xlu1 %4452  ;;  %v4677_v27 = vsel %vm440_vm0, %v6321_v17, %v4557_v12 }
 0x660   : > { %v4645_v19 = vsel %vm440_vm0, %v9047_v24, %v4453_v23  ;;  %v6765_v24 = vld [vmem:[%s9365_s9 + $0x38] sm:$0xff]  }
 0x661   : > { %6473 = vmatpush3.bf16.msra.mxu1 %v6765_v24 }
 0x662   : > { %v4585_v31 = vpop.permute.xlu0 %4584  ;;  %6474 = vmatprep.subr.bf16.mxu1 %v6766_v5 }
 0x663   : > { %v4481_v57 = vpop.permute.xlu1 %4480  ;;  %v4685_v45 = vsel %vm486_vm14, %v4677_v27, %v4585_v31 }
 0x664   : > { %v4653_v26 = vsel %vm486_vm14, %v4645_v19, %v4481_v57 }
 0x665   : > { %6475 = vmatpush3.bf16.msra.mxu1 %v6767_v51  ;;  %v6885_v51 = vmov 1983009808  }
 0x666   : > { %v4613_v54 = vpop.permute.xlu0 %4612  ;;  %6476 = vmatprep.subr.bf16.mxu1 %v6770_v58  ;;  %v5127_v58 = vunpack.c.l.s4 %v6885_v51 }
 0x667   : > { %v4509_v0 = vpop.permute.xlu1 %4508  ;;  %v4696_v62 = vsel %vm3795_vm15, %v4685_v45, %v4613_v54 }
 0x668   : > { %4917 = vmatprep.mubr.bf16.mxu0 %v4696_v62  ;;  %v4664_v16 = vsel %vm3795_vm15, %v4653_v26, %v4509_v0 }
 0x669   : > { %4918 = vmatmul.mubr.bf16.gmra.mxu0 %v4664_v16  ;;  %6477 = vmatpush3.bf16.msra.mxu1 %v6771_v30 }
 0x66a   : > { %6478 = vmatprep.subr.bf16.mxu1 %v6774_v48 }
 0x66d   : > { %6479 = vmatpush3.bf16.msra.mxu1 %v6775_v22  ;;  %v6788_v22 = vld [vmem:[%s9365_s9 + $0xd0] sm:$0xff]  }
 0x66e   : > { %6480 = vmatprep.subr.bf16.mxu1 %v6778_v39  ;;  %v5128_v39 = vunpack.c.0.s8 %v5127_v58  ;;  %6504 = vmatprep.subr.bf16.mxu0 %v6788_v22 }
 0x66f   : > { %6505 = vmatpush3.bf16.msra.mxu0 %v6789_v63 }
 0x671   : > { %6481 = vmatpush3.bf16.msra.mxu1 %v6779_v15  ;;  %v6790_v15 = vld [vmem:[%s9365_s9 + $0x40] sm:$0xff]  }
 0x672   : > { %6482 = vmatprep.subr.bf16.mxu1 %v6782_v25 }
 0x675   : > { %6483 = vmatpush3.bf16.msra.mxu1 %v6783_v20 }
 0x676   : > { %6484 = vmatprep.subr.bf16.mxu1 %v6786_v56 }
 0x679   : > { %6485 = vmatpush3.bf16.msra.mxu1 %v6787_v7 }
 0x67a   : > { %6486 = vmatprep.subr.bf16.mxu1 %v6790_v15 }
 0x68a   : > { %v6631_v4 = vpop.f32.mrf.mxu1 }
 0x68c   : > { %v4960_v3 = vpop.f32.mrf.mxu1 }
 0x68e   : > { %v6632_v29 = vpop.f32.mrf.mxu1 }
 0x690   : > { %v4963_v60 = vpop.f32.mrf.mxu1 }
 0x692   : > { %v6635_v23 = vpop.f32.mrf.mxu1 }
 0x694   : > { %v4976_v27 = vpop.f32.mrf.mxu1 }
 0x696   : > { %v6636_v0 = vpop.f32.mrf.mxu1 }
 0x698   : > { %v4979_v55 = vpop.f32.mrf.mxu1 }
 0x705   : > { %v6442_v47 = vpop.f32.mrf.mxu0 }
 0x707   : > { %v6443_v52 = vpop.f32.mrf.mxu0 }
 0x708   : > { %v6444_v46 = vadd.f32 %v6443_v52, %v6442_v47  ;;  %v6792_v52 = vld [vmem:[%s9365_s9 + $0xc8] sm:$0xff]  }
 0x709   : > { %v6445_v61 = vpop.f32.mrf.mxu0  ;;  %6506 = vmatprep.subr.bf16.mxu0 %v6792_v52 }
 0x70a   : > { %v4896_v53 = vadd.f32 %v6444_v46, %v9164_v21  ;;  %v6793_v46 = vld [vmem:[%s9365_s9 + $0x88] sm:$0xff]  }
 0x70b   : > { %v6446_v34 = vpop.f32.mrf.mxu0  ;;  %6507 = vmatpush3.bf16.msra.mxu0 %v6793_v46 }
 0x70c   : > { %v4961_v41 = vadd.f32 %v4960_v3, %v4896_v53  ;;  %v6447_v10 = vadd.f32 %v6446_v34, %v6445_v61  ;;  %v6791_v3 = vld [vmem:[%s9365_s9] sm:$0xff]   ;;  %v9204_v61 = vsub.s32 %v5128_v39, %v8978_v32 }
 0x70d   : > { %6487 = vmatpush3.bf16.msra.mxu1 %v6791_v3 }
 0x70e   : > { %v4999_v6 = vmul.f32 0.33333334, %v4961_v41  ;;  %v4899_v50 = vadd.f32 %v6447_v10, %v9164_v21  ;;  %6637 = vmatprep.subr.bf16.mxu1 %v9432_v36 }
 0x710   : > { %5007 = vst.msk [vmem:[#allocation3 + $0x11] sm:$0xff] %vm486_vm14, %v4999_v6  ;;  %v4964_v59 = vadd.f32 %v4963_v60, %v4899_v50 }
 0x711   : > { %v6448_v2 = vpop.f32.mrf.mxu0 }
 0x712   : > { %v5000_v33 = vmul.f32 0.33333334, %v4964_v59 }
 0x713   : > { %v6449_v38 = vpop.f32.mrf.mxu0 }
 0x714   : > { %5008 = vst.msk [vmem:[#allocation3 + $0x21] sm:$0xff] %vm486_vm14, %v5000_v33  ;;  %v6450_v18 = vadd.f32 %v6449_v38, %v6448_v2 }
 0x715   : > { %v6451_v14 = vpop.f32.mrf.mxu0 }
 0x716   : > { %v4904_v28 = vadd.f32 %v6450_v18, %v9164_v21 }
 0x717   : > { %v6452_v35 = vpop.f32.mrf.mxu0 }
 0x718   : > { %v4969_v9 = vadd.f32 %v6631_v4, %v4904_v28  ;;  %v6453_v40 = vadd.f32 %v6452_v35, %v6451_v14  ;;  %v5074_v14 = vld [vmem:[#allocation3 + $0x12] ss:$2 sm:$0xf] }
 0x719   : > { %v6796_v28 = vld [vmem:[%s9365_s9 + $0x80] sm:$0xff]  }
 0x71a   : > { %v5001_v37 = vmul.f32 0.33333334, %v4969_v9  ;;  %v4907_v12 = vadd.f32 %v6453_v40, %v9164_v21  ;;  %v5050_v9 = vld [vmem:[#allocation3 + $0x10] ss:$2 sm:$0xf] }
 0x71b   : > { %v5029_v20 = vld [vmem:[#allocation3 + $0x21] ss:$2 sm:$0xf]  ;;  %v5017_v22 = vld [vmem:[#allocation3 + $0x20] ss:$2 sm:$0xf] }
 0x71c   : > { %5009 = vst.msk [vmem:[#allocation3 + $0x31] sm:$0xff] %vm486_vm14, %v5001_v37  ;;  %v4972_v31 = vadd.f32 %v6632_v29, %v4907_v12  ;;  %v6204_v34 = vpack.c.bf16 %v5029_v20, %v5027_v44 }
 0x71d   : > { %v6454_v17 = vpop.f32.mrf.mxu0 }
 0x71e   : > { %v5002_v57 = vmul.f32 0.33333334, %v4972_v31  ;;  %v5153_v59 = vrot.slane %v6204_v34, %v9204_v61  ;;  %v5085_v34 = vld [vmem:[#allocation3 + $0x20] ss:$2 sm:$0xf] }
 0x71f   : > { %v6455_v19 = vpop.f32.mrf.mxu0 }
 0x720   : > { %5010 = vst.msk [vmem:[#allocation3 + $0x41] sm:$0xff] %vm486_vm14, %v5002_v57  ;;  %v6456_v45 = vadd.f32 %v6455_v19, %v6454_v17 }
 0x721   : > { %v6457_v54 = vpop.f32.mrf.mxu0 }
 0x722   : > { %v4912_v26 = vadd.f32 %v6456_v45, %v9164_v21  ;;  %v5097_v45 = vld [vmem:[#allocation3 + $0x21] ss:$2 sm:$0xf] }
 0x723   : > { %v6458_v62 = vpop.f32.mrf.mxu0  ;;  %v5076_v33 = vld [vmem:[#allocation3 + $0x32] ss:$2 sm:$0xf] }
 0x724   : > { %v4977_v16 = vadd.f32 %v4976_v27, %v4912_v26  ;;  %v6459_v11 = vadd.f32 %v6458_v62, %v6457_v54  ;;  %v5052_v38 = vld [vmem:[#allocation3 + $0x30] ss:$2 sm:$0xf]  ;;  %v6212_v35 = vpack.c.bf16 %v5076_v33, %v5074_v14  ;;  %v6795_v14 = vld [vmem:[%s9365_s9 + $0x118] sm:$0xff]  }
 0x726   : > { %v5003_v24 = vmul.f32 0.33333334, %v4977_v16  ;;  %v4915_v5 = vadd.f32 %v6459_v11, %v9164_v21  ;;  %v5241_v19 = vrot.slane %v6212_v35, %v9204_v61 }
 0x727   : > { %v5031_v41 = vld [vmem:[#allocation3 + $0x41] ss:$2 sm:$0xf]  ;;  %v5043_v56 = vld [vmem:[#allocation3 + $0x42] ss:$2 sm:$0xf] }
 0x728   : > { %5011 = vst.msk [vmem:[#allocation3 + $0x51] sm:$0xff] %vm486_vm14, %v5003_v24  ;;  %v4980_v13 = vadd.f32 %v4979_v55, %v4915_v5  ;;  %v5099_v40 = vld [vmem:[#allocation3 + $0x41] ss:$2 sm:$0xf] }
 0x729   : > { %v6460_v42 = vpop.f32.mrf.mxu0  ;;  %v6216_v62 = vpack.c.bf16 %v5099_v40, %v5097_v45  ;;  %v5019_v7 = vld [vmem:[#allocation3 + $0x40] ss:$2 sm:$0xf] }
 0x72a   : > { %v5004_v8 = vmul.f32 0.33333334, %v4980_v13  ;;  %v5087_v20 = vld [vmem:[#allocation3 + $0x40] ss:$2 sm:$0xf] }
 0x72b   : > { %v6461_v43 = vpop.f32.mrf.mxu0  ;;  %v5285_v13 = vrot.slane %v6216_v62, %v9204_v61  ;;  %v5111_v45 = vld [vmem:[#allocation3 + $0x42] ss:$2 sm:$0xf] }
 0x72c   : > { %5012 = vst.msk [vmem:[#allocation3 + $0x61] sm:$0xff] %vm486_vm14, %v5004_v8  ;;  %v6462_v30 = vadd.f32 %v6461_v43, %v6460_v42  ;;  %v5015_v8 = vld [vmem:[#allocation3] ss:$2 sm:$0xf] }
 0x72d   : > { %v6463_v48 = vpop.f32.mrf.mxu0  ;;  %v6202_v44 = vpack.c.bf16 %v5017_v22, %v5015_v8  ;;  %v5109_v62 = vld [vmem:[#allocation3 + $0x22] ss:$2 sm:$0xf] }
 0x72e   : > { %v4920_v1 = vadd.f32 %v6462_v30, %v9164_v21  ;;  %v5039_v30 = vld [vmem:[#allocation3 + $0x2] ss:$2 sm:$0xf] }
 0x72f   : > { %v6464_v25 = vpop.f32.mrf.mxu0  ;;  %v5078_v37 = vld [vmem:[#allocation3 + $0x52] ss:$2 sm:$0xf]  ;;  %v5066_v3 = vld [vmem:[#allocation3 + $0x51] ss:$2 sm:$0xf] }
 0x730   : > { %v4985_v4 = vadd.f32 %v6635_v23, %v4920_v1  ;;  %v6465_v47 = vadd.f32 %v6464_v25, %v6463_v48  ;;  %v5054_v12 = vld [vmem:[#allocation3 + $0x50] ss:$2 sm:$0xf]  ;;  %v6208_v23 = vpack.c.bf16 %v5052_v38, %v5050_v9  ;;  %v5041_v48 = vld [vmem:[#allocation3 + $0x22] ss:$2 sm:$0xf] }
 0x731   : > { %v6206_v25 = vpack.c.bf16 %v5041_v48, %v5039_v30  ;;  %v5767_v8 = vld [vmem:[%s9367_s11 + $0x10] sm:$0xff]  ;;  %v5765_v30 = vld [vmem:[%s9367_s11] sm:$0xff] }
 0x732   : > { %v5005_v53 = vmul.f32 0.33333334, %v4985_v4  ;;  %v4923_v29 = vadd.f32 %v6465_v47, %v9164_v21  ;;  %v6794_v21 = vld [vmem:[%s9365_s9 + $0xc0] sm:$0xff]   ;;  %v5197_v26 = vrot.slane %v6208_v23, %v9204_v61 }
 0x733   : > { %v5033_v10 = vld [vmem:[#allocation3 + $0x61] ss:$2 sm:$0xf]  ;;  %6508 = vmatprep.subr.bf16.mxu0 %v6794_v21  ;;  %v5045_v58 = vld [vmem:[#allocation3 + $0x62] ss:$2 sm:$0xf] }
 0x734   : > { %5013 = vst.msk [vmem:[#allocation3 + $0x71] sm:$0xff] %vm486_vm14, %v5005_v53  ;;  %v4988_v6 = vadd.f32 %v6636_v0, %v4923_v29  ;;  %v6205_v50 = vpack.c.bf16 %v5033_v10, %v5031_v41  ;;  %6509 = vmatpush3.bf16.msra.mxu0 %v6796_v28  ;;  %v5101_v16 = vld [vmem:[#allocation3 + $0x61] ss:$2 sm:$0xf]  ;;  %v6207_v39 = vpack.c.bf16 %v5045_v58, %v5043_v56  ;;  %v5768_v58 = vld [vmem:[%s9367_s11 + $0x18] sm:$0xff] }
 0x735   : > { %6649 = vmatprep.subr.mxu0 %v9432_v36  ;;  %v5021_v43 = vld [vmem:[#allocation3 + $0x60] ss:$2 sm:$0xf]  ;;  %v5064_v47 = vld [vmem:[#allocation3 + $0x31] ss:$2 sm:$0xf]  ;;  %v5176_v10 = vrot.slane %v6206_v25, %v9204_v61 }
 0x736   : > { %v5006_v60 = vmul.f32 0.33333334, %v4988_v6  ;;  %v5160_v2 = vrot.slane %v6205_v50, %v9204_v61  ;;  %v6203_v1 = vpack.c.bf16 %v5021_v43, %v5019_v7  ;;  %v5089_v4 = vld [vmem:[#allocation3 + $0x60] ss:$2 sm:$0xf]  ;;  %v5183_v52 = vrot.slane %v6207_v39, %v9204_v61  ;;  %v5766_v43 = vld [vmem:[%s9367_s11 + $0x8] sm:$0xff] }
 0x737   : > { %v5062_v41 = vld [vmem:[#allocation3 + $0x11] ss:$2 sm:$0xf]  ;;  %v6214_v6 = vpack.c.bf16 %v5087_v20, %v5085_v34  ;;  %v5132_v50 = vrot.slane %v6202_v44, %v9204_v61  ;;  %v6220_v25 = vld [vmem:[%s9366_s10] ss:$0 sm:$0xff] }
 0x738   : > { %5014 = vst.msk [vmem:[#allocation3 + $0x81] sm:$0xff] %vm486_vm14, %v5006_v60  ;;  %v5161_v18 = vcombine.low %v5153_v59, %v5160_v2  ;;  %v5139_v53 = vrot.slane %v6203_v1, %v9204_v61  ;;  %v6210_v60 = vpack.c.bf16 %v5064_v47, %v5062_v41  ;;  %v5184_v2 = vcombine.low %v5176_v10, %v5183_v52 }
 0x739   : > { %v5264_v35 = vrot.slane %v6214_v6, %v9204_v61 }
 0x73a   : > { %5162 = vrot.lane.b32.xlu1 %v5161_v18, %s9434_s1  ;;  %v5140_v38 = vcombine.low %v5132_v50, %v5139_v53  ;;  %v5220_v40 = vrot.slane %v6210_v60, %v9204_v61 }
 0x73b   : > { %v5080_v31 = vld [vmem:[#allocation3 + $0x72] ss:$2 sm:$0xf]  ;;  %v5068_v15 = vld [vmem:[#allocation3 + $0x71] ss:$2 sm:$0xf] }
 0x73c   : > { %v5056_v17 = vld [vmem:[#allocation3 + $0x70] ss:$2 sm:$0xf]  ;;  %v6213_v57 = vpack.c.bf16 %v5080_v31, %v5078_v37  ;;  %v6211_v29 = vpack.c.bf16 %v5068_v15, %v5066_v3 }
 0x73d   : > { %v6209_v27 = vpack.c.bf16 %v5056_v17, %v5054_v12  ;;  %v6797_v17 = vld [vmem:[%s9365_s9 + $0x110] sm:$0xff]  }
 0x73e   : > { %v5248_v54 = vrot.slane %v6213_v57, %v9204_v61  ;;  %v5227_v21 = vrot.slane %v6211_v29, %v9204_v61 }
 0x73f   : > { %v5204_v0 = vrot.slane %v6209_v27, %v9204_v61  ;;  %v5103_v11 = vld [vmem:[#allocation3 + $0x81] ss:$2 sm:$0xf]  ;;  %v5091_v63 = vld [vmem:[#allocation3 + $0x80] ss:$2 sm:$0xf] }
 0x740   : > { %v5249_v24 = vcombine.low %v5241_v19, %v5248_v54  ;;  %v6217_v55 = vpack.c.bf16 %v5103_v11, %v5101_v16  ;;  %v6215_v46 = vpack.c.bf16 %v5091_v63, %v5089_v4  ;;  %v5228_v23 = vcombine.low %v5220_v40, %v5227_v21  ;;  %v5115_v19 = vld [vmem:[#allocation3 + $0x82] ss:$2 sm:$0xf]  ;;  %v6798_v54 = vld [vmem:[%s9365_s9 + $0x108] sm:$0xff]   ;;  %v6799_v11 = vld [vmem:[%s9365_s9 + $0x100] sm:$0xff]  }
 0x741   : > { %v5205_v5 = vcombine.low %v5197_v26, %v5204_v0  ;;  %v5113_v26 = vld [vmem:[#allocation3 + $0x62] ss:$2 sm:$0xf]  ;;  %v6218_v16 = vpack.c.bf16 %v5111_v45, %v5109_v62 }
 0x742   : > { %5250 = vrot.lane.b32.xlu1 %v5249_v24, %s9434_s1  ;;  %v5292_v42 = vrot.slane %v6217_v55, %v9204_v61  ;;  %v5271_v33 = vrot.slane %v6215_v46, %v9204_v61  ;;  %v6219_v0 = vpack.c.bf16 %v5115_v19, %v5113_v26 }
 0x743   : > { %5206 = vrot.lane.b32.xlu0 %v5205_v5, %s9434_s1  ;;  %v5308_v5 = vrot.slane %v6218_v16, %v9204_v61 }
 0x744   : > { %v5293_v51 = vcombine.low %v5285_v13, %v5292_v42  ;;  %v5272_v12 = vcombine.low %v5264_v35, %v5271_v33  ;;  %v5315_v24 = vrot.slane %v6219_v0, %v9204_v61  ;;  %v5772_v13 = vld [vmem:[%s9367_s11 + $0x38] sm:$0xff]  ;;  %v5771_v42 = vld [vmem:[%s9367_s11 + $0x30] sm:$0xff]  ;;  %v5770_v61 = vld [vmem:[%s9367_s11 + $0x28] sm:$0xff] }
 0x745   : > { %v5773_v35 = vld [vmem:[%s9368_s12] sm:$0x1] }
 0x746   : > { %v5316_v55 = vcombine.low %v5308_v5, %v5315_v24 }
 0x747   : > { %5294 = vrot.lane.b32.xlu0 %v5293_v51, %s9434_s1  ;;  %v5769_v51 = vld [vmem:[%s9367_s11 + $0x20] sm:$0xff]  ;;  %s6809_s1 = scalar_lea.vmem %s9312_s30, 256 }
 0x748   : > { %p6810_p11 = scmp.ne.s32.totalorder %s9312_s30, %s6809_s1  ;;  %p6817_p1 = scmp.lt.s32.totalorder %s6815_s0, %s6809_s1 }
 0x74a   : > { %p6811_p12 = pnand %p6810_p11, %p6997_p5  ;;  %p6818_p2 = por %p6817_p1, %p6816_p0 }
 0x74c   : > { %p6812_p13 = pneg %p6811_p12 }
 0x74e   : > { %p6819_p3 = pnand %p6818_p2, %p6812_p13 }
 0x7ac   : > { %v5163_v59 = vpop.permute.xlu1 %5162 }
 0x7ad   : > { %v5319_v9 = vsel %vm486_vm14, %v5140_v38, %v5163_v59 }
 0x7b4   : > { %v5251_v37 = vpop.permute.xlu1 %5250 }
 0x7b5   : > { %v5207_v18 = vpop.permute.xlu0 %5206  ;;  %v5327_v27 = vsel %vm486_vm14, %v5228_v23, %v5251_v37 }
 0x7b6   : > { %v5323_v28 = vsel %vm486_vm14, %v5184_v2, %v5207_v18 }
 0x7b7   : > { %5663 = vmatprep.mubr.bf16.mxu1 %v5323_v28 }
 0x7b8   : > { %5664 = vmatmul.mubr.bf16.vlgmr.msra.gmra.mxu1 %v5319_v9 }
 0x7b9   : > { %6638 = vmatpush3.bf16.msra.mxu1 %v6795_v14  ;;  %v5295_v31 = vpop.permute.xlu0 %5294  ;;  %6645 = vmatprep.mubr.msk.bf16.mxu1 %vm6884_vm1, %v9432_v36 }
 0x7ba   : > { %v5331_v57 = vsel %vm486_vm14, %v5272_v12, %v5295_v31  ;;  %6639 = vmatprep.subr.bf16.mxu1 %v9432_v36 }
 0x7bb   : > { %5704 = vmatprep.mubr.bf16.mxu0 %v5331_v57 }
 0x7bc   : > { %5705 = vmatmul.mubr.bf16.vlgmr.msra.gmra.mxu0 %v5327_v27 }
 0x7bd   : > { %6640 = vmatpush3.bf16.msra.mxu1 %v6797_v17  ;;  %6665 = vmatprep.mubr.msk.f32.mxu0 %vm6884_vm1, %v9432_v36 }
 0x7be   : > { %6641 = vmatprep.subr.bf16.mxu1 %v9432_v36  ;;  %6650 = vmatpush3.msra.mxu0 %v5772_v13 }
 0x7bf   : > { %6651 = vmatprep.subr.mxu0 %v9432_v36 }
 0x7c0   : > { %6652 = vmatpush3.msra.mxu0 %v5771_v42 }
 0x7c1   : > { %6642 = vmatpush3.bf16.msra.mxu1 %v6798_v54  ;;  %6653 = vmatprep.subr.mxu0 %v9432_v36 }
 0x7c2   : > { %6643 = vmatprep.subr.bf16.mxu1 %v9432_v36  ;;  %6654 = vmatpush3.msra.mxu0 %v5770_v61 }
 0x7c3   : > { %6655 = vmatprep.subr.mxu0 %v9432_v36 }
 0x7c4   : > { %6656 = vmatpush3.msra.mxu0 %v5769_v51 }
 0x7c5   : > { %6644 = vmatpush3.bf16.msra.mxu1 %v6799_v11  ;;  %6657 = vmatprep.subr.mxu0 %v9432_v36 }
 0x7c6   : > { %6658 = vmatpush3.msra.mxu0 %v5768_v58 }
 0x7c7   : > { %6659 = vmatprep.subr.mxu0 %v9432_v36 }
 0x7c8   : > { %6646 = vmatmul.mubr.msk.bf16.vlgmr.msra.gmra.mxu1 %vm486_vm14, %v5316_v55  ;;  %6660 = vmatpush3.msra.mxu0 %v5767_v8 }
 0x7c9   : > { %6661 = vmatprep.subr.mxu0 %v9432_v36 }
 0x7ca   : > { %6662 = vmatpush3.msra.mxu0 %v5766_v43 }
 0x7cb   : > { %6663 = vmatprep.subr.mxu0 %v9432_v36 }
 0x7cc   : > { %6664 = vmatpush3.msra.mxu0 %v5765_v30 }
 0x878   : > { %v6488_v48 = vpop.f32.mrf.mxu1 }
 0x87a   : > { %v6489_v56 = vpop.f32.mrf.mxu1 }
 0x87b   : > { %v6490_v15 = vadd.f32 %v6489_v56, %v6488_v48 }
 0x87c   : > { %v6510_v7 = vpop.f32.mrf.mxu0  ;;  %v6491_v22 = vpop.f32.mrf.mxu1 }
 0x87d   : > { %v5666_v47 = vadd.f32 %v6490_v15, %v6220_v25 }
 0x87e   : > { %v6511_v39 = vpop.f32.mrf.mxu0  ;;  %v6492_v63 = vpop.f32.mrf.mxu1 }
 0x87f   : > { %v6493_v20 = vadd.f32 %v6492_v63, %v6491_v22  ;;  %v6512_v4 = vadd.f32 %v6511_v39, %v6510_v7 }
 0x880   : > { %v6513_v1 = vpop.f32.mrf.mxu0 }
 0x881   : > { %v5669_v36 = vadd.f32 %v6493_v20, %v6220_v25  ;;  %v5707_v46 = vadd.f32 %v6512_v4, %v5666_v47 }
 0x882   : > { %v6514_v44 = vpop.f32.mrf.mxu0 }
 0x883   : > { %v6515_v3 = vadd.f32 %v6514_v44, %v6513_v1 }
 0x885   : > { %v5710_v34 = vadd.f32 %v6515_v3, %v5669_v36 }
 0x888   : > { %v5747_v52 = vpop.f32.mrf.mxu1 }
 0x889   : > { %v5748_v29 = vadd.f32 %v5747_v52, %v5707_v46 }
 0x88a   : > { %v6647_v53 = vpop.f32.mrf.mxu1 }
 0x88b   : > { %v5754_v50 = vsel %vm486_vm14, %v5748_v29, 0.0 }
 0x88c   : > { %v5750_v41 = vpop.f32.mrf.mxu1 }
 0x88d   : > { %v5751_v10 = vadd.f32 %v5750_v41, %v5710_v34 }
 0x88e   : > { %v6648_v6 = vpop.f32.mrf.mxu1 }
 0x88f   : > { %v5755_v60 = vsel %vm486_vm14, %v5751_v10, 0.0 }
 0x890   : > { %v5756_v59 = vadd.f32 %v5755_v60, %v5754_v50 }
 0x892   : > { %v5757_v2 = vrot.slane %v5756_v59, 4 }
 0x894   : > { %v5758_v33 = vadd.f32 %v5757_v2, %v5756_v59 }
 0x896   : > { %v5759_v38 = vrot.slane %v5758_v33, 2 }
 0x898   : > { %v5760_v21 = vadd.f32 %v5759_v38, %v5758_v33 }
 0x89a   : > { %v5761_v18 = vrot.slane %v5760_v21, 1 }
 0x89c   : > { %v5762_v14 = vadd.f32 %v5761_v18, %v5760_v21 }
 0x89e   : > { %v5764_v28 = vmul.f32 0.0625, %v5762_v14 }
 0x8a0   : > { %6666 = vmatmul.mubr.msk.f32.vlgmr.msra.gmra.mxu0 %vm486_vm14, %v5764_v28 }
 0x960   : > { %v5843_v9 = vpop.f32.mrf.mxu0 }
 0x961   : > { %v5844_v40 = vadd.f32 %v5843_v9, %v5773_v35 }
 0x962   : > { %v6667_v37 = vpop.f32.mrf.mxu0 }
 0x963   : > { %v6259_v12 = vmul.f32 -1.442695, %v5844_v40 }
 0x965   : > { %6804 = vpow2.f32 %v6259_v12 }
 0x972   : > { %v6805_v23 = vpop.eup %6804 }
 0x973   : > { %v5850_v31 = vadd.f32 1.0, %v6805_v23 }
 0x975   : > { %6806 = vrcp.f32 %v5850_v31 }
 0x982   : > { %v6807_v17 = vpop.eup %6806 }
 0x983   : > { %v5856_v57 = vrot.slane %v6807_v17, %v4242_v49 }
 0x985   : > { %v5857_v27 = vmul.f32 %v5856_v57, %v5748_v29  ;;  %v5858_v19 = vmul.f32 %v5856_v57, %v5751_v10 }
 0x987   : > { %5859 = vst.msk [vmem:[%s433_s2] sm:$0xff] %vm486_vm14, %v5857_v27  ;;  %5860 = vst.msk [vmem:[%s433_s2 + $0x8] sm:$0xff] %vm486_vm14, %v5858_v19 }
 0x988   : > { %6822 = shalt.err (!%p6819_p3)
}
 0x989   : > { %s6823_s23 = scalar_lea.hbm %s9310_s15, 256  ;;  %s6827_s2 = scalar_lea.hbm %s9369_s13, 512 }
 0x98a   : > { %p6824_p4 = scmp.ne.s32.totalorder %s9310_s15, %s6823_s23  ;;  %p6828_p9 = scmp.lt.s32.totalorder %s9310_s15, %s9369_s13 }
 0x98b   : > { %p6829_p10 = scmp.lt.s32.totalorder %s6827_s2, %s6823_s23 }
 0x98c   : > { %p6825_p7 = pnand %p6824_p4, %p6997_p5 }
 0x98d   : > { %p6830_p11 = por %p6829_p10, %p6828_p9 }
 0x98e   : > { %p6826_p8 = pneg %p6825_p7 }
 0x990   : > { %p6831_p12 = pnand %p6830_p11, %p6826_p8 }
 0x992   : > { %6834 = shalt.err (!%p6831_p12)
}
 0x993   : > { %s6887_s1 = smov 128   ;;  %s6888_s22 = smov 8  }
 0x994   : > { %6668 = dma.vmem_to_hbm [thread:$0]  (%p6997_p5), %s9312_s30, 256, %s9310_s15, %s9316_s29, %s6887_s1, %s6887_s1, %s6888_s22  }
 0x995 PF: > { %p6674_p13 = scmp.ge.s32.totalorder %s6869_s28, 2  ;;  %s5890_s21 = sand.u32 1, %s6857_s25  }
 0x996   : > { %s5891_s0 = scalar_lea.sflag [#allocation5], %s5890_s21 }
 0x997   : > { %p6671_p0 = pnand %p6674_p13, %p7001_p6 }
 0x999   : > { %p6672_p1 = pneg %p6671_p0 }
 0x99b   : > { %6852 = dma.done.wait (%p6672_p1), %s5891_s0, 256  }
 0x99c   : > { %6854 = vsyncadd (%p6672_p1), %s5891_s0, 4294967040  ;;  %p23_p2 = scmp.ge.s32.totalorder %s6984_s14, 4   ;;  %s9436_s25 = smov %s6861_s26 }
 0x99d   : > { %s9437_s26 = smov %s6865_s27  ;;  %s9438_s27 = smov %s6995_s17 }
 0x99e   : > { %s9439_s28 = smov %s6984_s14  ;;  %25 = sbr.rel (!%p23_p2) target bundleno = 8 (0x8), region = 216 }
 0x9a3   :  { %5896 = vsyncpa [#allocation5], 1 }
 0x9a4   :  { %5898 = vsyncpa [#allocation5 + $0x1], 1 }

</bundles_post_ra>
